<compile_context>
chip_gen: v6e
topology: v6e:2x2x1
jax: 0.10.0
libtpu: 0.0.40
codegen_flags: <defaults>
</compile_context>

<pallas_src>
import functools
import math

import jax
import jax.numpy as jnp
from jax.experimental import pallas as pl
from jax.experimental.pallas import tpu as pltpu


# ----------------------------- in-kernel helpers -----------------------------

def _layer_norm(x, g, b, eps=1e-5):
    # x: (T, D) f32, g/b: (1, D) f32; biased variance like nn.LayerNorm
    mu = jnp.mean(x, axis=-1, keepdims=True)
    var = jnp.mean((x - mu) ** 2, axis=-1, keepdims=True)
    return (x - mu) * jax.lax.rsqrt(var + eps) * g + b


def _mha(xq, xkv, wq_ref, wk_ref, wv_ref, wo_ref, kpad_bias, *, h, d_head, causal):
    """Fused-head multi-head attention for a single batch element.

    xq: (Tq, D) bf16, xkv: (Tkv, D) bf16.
    wq/wk/wv refs: (D, h*d_head) bf16 (wq pre-scaled by the softmax scale).
    wo ref: (h*d_head, D) bf16.
    kpad_bias: (1, Tkv) f32 additive key-padding bias (0 = keep, -1e30 = masked).
    causal: static bool; upper-triangular mask built in-kernel.
    Returns (Tq, D) f32.
    """
    bf16 = jnp.bfloat16
    Tq, _ = xq.shape
    Tkv, _ = xkv.shape

    # Lane-dense fused-head projections: one (T, D) x (D, h*dh) MXU matmul each.
    q = jnp.dot(xq, wq_ref[...], preferred_element_type=jnp.float32)    # (Tq, h*dh)
    k = jnp.dot(xkv, wk_ref[...], preferred_element_type=jnp.float32)   # (Tkv, h*dh)
    v = jnp.dot(xkv, wv_ref[...], preferred_element_type=jnp.float32)   # (Tkv, h*dh)

    # Split heads only for the score / PV contractions (the intrinsically per-head part).
    qh = jnp.swapaxes(q.reshape(Tq, h, d_head), 0, 1).astype(bf16)      # (h, Tq, dh)
    kh = jnp.swapaxes(k.reshape(Tkv, h, d_head), 0, 1).astype(bf16)     # (h, Tkv, dh)
    vh = jnp.swapaxes(v.reshape(Tkv, h, d_head), 0, 1).astype(bf16)     # (h, Tkv, dh)

    s = jnp.einsum("hqk,hsk->hqs", qh, kh,
                   preferred_element_type=jnp.float32)                  # (h, Tq, Tkv)
    s = s + kpad_bias[None, :, :]                                       # key-padding bias

    if causal:
        row = jax.lax.broadcasted_iota(jnp.int32, (Tq, Tkv), 0)
        col = jax.lax.broadcasted_iota(jnp.int32, (Tq, Tkv), 1)
        s = s + jnp.where(col > row, jnp.float32(-1e30), jnp.float32(0.0))[None, :, :]

    m = jnp.max(s, axis=-1, keepdims=True)
    p = jnp.exp(s - m)
    denom = jnp.sum(p, axis=-1, keepdims=True)
    p = p * pl.reciprocal(denom, approx=True)                           # EUP reciprocal

    o = jnp.einsum("hqs,hsk->hqk", p.astype(bf16), vh,
                   preferred_element_type=jnp.float32)                  # (h, Tq, dh)
    o = jnp.swapaxes(o, 0, 1).reshape(Tq, h * d_head)                   # (Tq, h*dh)

    # Output projection: one matmul with full h*d_v contraction depth.
    return jnp.dot(o.astype(bf16), wo_ref[...], preferred_element_type=jnp.float32)


def _ffn(x, w1_ref, b1_ref, w2_ref, b2_ref):
    bf16 = jnp.bfloat16
    hdn = jnp.dot(x.astype(bf16), w1_ref[...],
                  preferred_element_type=jnp.float32) + b1_ref[...]
    hdn = jnp.maximum(hdn, 0.0)
    return jnp.dot(hdn.astype(bf16), w2_ref[...],
                   preferred_element_type=jnp.float32) + b2_ref[...]


# --------------------------------- kernels -----------------------------------

def _encoder_stack_kernel(x_ref, kpad_ref,
                          wq, wk, wv, wo, ln1_g, ln1_b,
                          ff_w1, ff_b1, ff_w2, ff_b2, ln2_g, ln2_b,
                          out_ref, resid_ref, *, h, d_k):
    layer = pl.program_id(1)

    @pl.when(layer == 0)
    def _():
        resid_ref[...] = x_ref[...].astype(jnp.float32)

    x = resid_ref[...]                        # (T, D) f32 residual stream
    x_bf = x.astype(jnp.bfloat16)

    # self-attention + add & norm.  TODO(synk): dropout omitted (eval-mode identity).
    sa = _mha(x_bf, x_bf, wq, wk, wv, wo, kpad_ref[...],
              h=h, d_head=d_k, causal=False)
    x = _layer_norm(x + sa, ln1_g[...], ln1_b[...])

    # position-wise FFN + add & norm
    x = _layer_norm(x + _ffn(x, ff_w1, ff_b1, ff_w2, ff_b2), ln2_g[...], ln2_b[...])

    resid_ref[...] = x

    @pl.when(layer == pl.num_programs(1) - 1)
    def _():
        out_ref[...] = x.astype(out_ref.dtype)


def _decoder_stack_kernel(x_ref, xe_ref, tpad_ref, spad_ref,
                          sa_wq, sa_wk, sa_wv, sa_wo, ln1_g, ln1_b,
                          ca_wq, ca_wk, ca_wv, ca_wo, ln2_g, ln2_b,
                          ff_w1, ff_b1, ff_w2, ff_b2, ln3_g, ln3_b,
                          out_ref, resid_ref, *, h, d_k, d_v):
    layer = pl.program_id(1)

    @pl.when(layer == 0)
    def _():
        resid_ref[...] = x_ref[...].astype(jnp.float32)

    x = resid_ref[...]                        # (Tt, D) f32 residual stream
    xe = xe_ref[...]                          # (Ts, D) bf16 encoder output

    # masked self-attention + add & norm (causal mask built in-kernel)
    x_bf = x.astype(jnp.bfloat16)
    sa = _mha(x_bf, x_bf, sa_wq, sa_wk, sa_wv, sa_wo, tpad_ref[...],
              h=h, d_head=d_k, causal=True)
    x = _layer_norm(x + sa, ln1_g[...], ln1_b[...])

    # encoder-decoder attention + add & norm (reference uses d_v as its head width)
    ca = _mha(x.astype(jnp.bfloat16), xe, ca_wq, ca_wk, ca_wv, ca_wo, spad_ref[...],
              h=h, d_head=d_v, causal=False)
    x = _layer_norm(x + ca, ln2_g[...], ln2_b[...])

    # position-wise FFN + add & norm
    x = _layer_norm(x + _ffn(x, ff_w1, ff_b1, ff_w2, ff_b2), ln3_g[...], ln3_b[...])

    resid_ref[...] = x

    @pl.when(layer == pl.num_programs(1) - 1)
    def _():
        out_ref[...] = x.astype(out_ref.dtype)


def _projection_kernel(x_ref, w_ref, out_ref):
    out_ref[...] = jnp.dot(x_ref[...], w_ref[...],
                           preferred_element_type=jnp.float32)


# ------------------------------ VMEM budgeting --------------------------------

def _padded_block_bytes(shape, dtype):
    shape = list(shape)
    if len(shape) >= 1:
        shape[-1] = pl.cdiv(shape[-1], 128) * 128
    if len(shape) >= 2:
        shape[-2] = pl.cdiv(shape[-2], 8) * 8
    size = 1
    for s in shape:
        size *= int(s)
    return size * jnp.dtype(dtype).itemsize


def _vmem_capacity_bytes():
    # Generation-aware VMEM capacity (v5e/v6e: 128 MiB, v7x: 64 MiB per TC).
    try:
        cap = getattr(pltpu.get_tpu_info(), "vmem_capacity_bytes", None)
    except Exception:
        cap = None
    return int(cap) if cap else 64 * 1024 * 1024   # conservative (v7x) fallback


def _vmem_budget(blocks, scratch=()):
    # blocks: (shape, dtype) pairs double-buffered by the pipeline; scratch single-buffered.
    total = sum(2 * _padded_block_bytes(s, d) for s, d in blocks)
    total += sum(_padded_block_bytes(s, d) for s, d in scratch)
    total += 4 * 1024 * 1024                       # headroom for compiler temps
    cap = int(_vmem_capacity_bytes() * 0.75)       # leave room for the runtime
    return int(min(max(total, 32 * 1024 * 1024), cap))


# --------------------------------- wrappers -----------------------------------

def _weight_spec(w):
    nz = w.ndim - 1
    return pl.BlockSpec((None,) + tuple(w.shape[1:]),
                        lambda b, l, _nz=nz: (l,) + (0,) * _nz)


_ENC_KEYS = ("wq", "wk", "wv", "wo", "ln1_g", "ln1_b",
             "ff_w1", "ff_b1", "ff_w2", "ff_b2", "ln2_g", "ln2_b")

_DEC_KEYS = ("sa_wq", "sa_wk", "sa_wv", "sa_wo", "ln1_g", "ln1_b",
             "ca_wq", "ca_wk", "ca_wv", "ca_wo", "ln2_g", "ln2_b",
             "ff_w1", "ff_b1", "ff_w2", "ff_b2", "ln3_g", "ln3_b")


def encoder_stack(x, src_kpad, params, *, h, d_k):
    B, T, D = x.shape
    n = params["wq"].shape[0]
    weights = [params[k] for k in _ENC_KEYS]

    in_specs = [
        pl.BlockSpec((None, T, D), lambda b, l: (b, 0, 0)),
        pl.BlockSpec((None, 1, T), lambda b, l: (b, 0, 0)),
    ] + [_weight_spec(w) for w in weights]

    blocks = ([((T, D), x.dtype), ((1, T), src_kpad.dtype)]
              + [(w.shape[1:], w.dtype) for w in weights]
              + [((T, D), jnp.bfloat16)])
    scratch = [((T, D), jnp.float32)]

    kernel = functools.partial(_encoder_stack_kernel, h=h, d_k=d_k)
    return pl.pallas_call(
        kernel,
        out_shape=jax.ShapeDtypeStruct((B, T, D), jnp.bfloat16),
        grid=(B, n),
        in_specs=in_specs,
        out_specs=pl.BlockSpec((None, T, D), lambda b, l: (b, 0, 0)),
        scratch_shapes=[pltpu.VMEM((T, D), jnp.float32)],
        compiler_params=pltpu.CompilerParams(
            dimension_semantics=("parallel", "arbitrary"),
            vmem_limit_bytes=_vmem_budget(blocks, scratch)),
    )(x, src_kpad, *weights)


def decoder_stack(x, x_enc, trg_kpad, src_kpad, params, *, h, d_k, d_v):
    B, T, D = x.shape
    _, Te, _ = x_enc.shape
    n = params["sa_wq"].shape[0]
    weights = [params[k] for k in _DEC_KEYS]

    in_specs = [
        pl.BlockSpec((None, T, D), lambda b, l: (b, 0, 0)),
        pl.BlockSpec((None, Te, D), lambda b, l: (b, 0, 0)),
        pl.BlockSpec((None, 1, T), lambda b, l: (b, 0, 0)),
        pl.BlockSpec((None, 1, Te), lambda b, l: (b, 0, 0)),
    ] + [_weight_spec(w) for w in weights]

    blocks = ([((T, D), x.dtype), ((Te, D), x_enc.dtype),
               ((1, T), trg_kpad.dtype), ((1, Te), src_kpad.dtype)]
              + [(w.shape[1:], w.dtype) for w in weights]
              + [((T, D), jnp.bfloat16)])
    scratch = [((T, D), jnp.float32)]

    kernel = functools.partial(_decoder_stack_kernel, h=h, d_k=d_k, d_v=d_v)
    return pl.pallas_call(
        kernel,
        out_shape=jax.ShapeDtypeStruct((B, T, D), jnp.bfloat16),
        grid=(B, n),
        in_specs=in_specs,
        out_specs=pl.BlockSpec((None, T, D), lambda b, l: (b, 0, 0)),
        scratch_shapes=[pltpu.VMEM((T, D), jnp.float32)],
        compiler_params=pltpu.CompilerParams(
            dimension_semantics=("parallel", "arbitrary"),
            vmem_limit_bytes=_vmem_budget(blocks, scratch)),
    )(x, x_enc, trg_kpad, src_kpad, *weights)


def _pick_tile(dim, pref, align):
    # Largest aligned tile <= pref that divides dim; fall back to the full dim.
    if dim <= pref:
        return dim
    t = (pref // align) * align
    while t >= align:
        if dim % t == 0:
            return t
        t -= align
    return dim


def projection(x, w):
    # Tiled, pipelined bf16 matmul over (rows, vocab tiles); no bias (matches reference).
    B, T, D = x.shape
    V = w.shape[1]
    M = B * T
    x2 = x.reshape(M, D).astype(jnp.bfloat16)
    w = w.astype(jnp.bfloat16)

    tm = _pick_tile(M, 256, 8)
    tn = _pick_tile(V, 512, 128)

    blocks = [((tm, D), jnp.bfloat16), ((D, tn), jnp.bfloat16), ((tm, tn), jnp.float32)]
    out = pl.pallas_call(
        _projection_kernel,
        out_shape=jax.ShapeDtypeStruct((M, V), jnp.float32),
        grid=(M // tm, V // tn),
        in_specs=[pl.BlockSpec((tm, D), lambda i, j: (i, 0)),
                  pl.BlockSpec((D, tn), lambda i, j: (0, j))],
        out_specs=pl.BlockSpec((tm, tn), lambda i, j: (i, j)),
        compiler_params=pltpu.CompilerParams(
            dimension_semantics=("parallel", "parallel"),
            vmem_limit_bytes=_vmem_budget(blocks)),
    )(x2, w)
    return out.reshape(B, T, V)


# ------------------------------ parameter init --------------------------------

def _linear_init(key, shape, fan_in, scale=1.0):
    w = jax.random.normal(key, shape, jnp.float32) * (scale / math.sqrt(fan_in))
    return w.astype(jnp.bfloat16)


def init_encoder_params(key, n, d_model, d_k, d_v, h, d_ff):
    ks = jax.random.split(key, 6)
    # Softmax scale d_k**-0.5 folded into wq (one-time, instead of per-layer VALU pass).
    return {
        "wq": _linear_init(ks[0], (n, d_model, h * d_k), d_model, scale=d_k ** -0.5),
        "wk": _linear_init(ks[1], (n, d_model, h * d_k), d_model),
        "wv": _linear_init(ks[2], (n, d_model, h * d_v), d_model),
        "wo": _linear_init(ks[3], (n, h * d_v, d_model), h * d_v),
        "ln1_g": jnp.ones((n, 1, d_model), jnp.float32),
        "ln1_b": jnp.zeros((n, 1, d_model), jnp.float32),
        "ff_w1": _linear_init(ks[4], (n, d_model, d_ff), d_model),
        "ff_b1": jnp.zeros((n, 1, d_ff), jnp.float32),
        "ff_w2": _linear_init(ks[5], (n, d_ff, d_model), d_ff),
        "ff_b2": jnp.zeros((n, 1, d_model), jnp.float32),
        "ln2_g": jnp.ones((n, 1, d_model), jnp.float32),
        "ln2_b": jnp.zeros((n, 1, d_model), jnp.float32),
    }


def init_decoder_params(key, n, d_model, d_k, d_v, h, d_ff):
    ks = jax.random.split(key, 10)
    return {
        "sa_wq": _linear_init(ks[0], (n, d_model, h * d_k), d_model, scale=d_k ** -0.5),
        "sa_wk": _linear_init(ks[1], (n, d_model, h * d_k), d_model),
        "sa_wv": _linear_init(ks[2], (n, d_model, h * d_v), d_model),
        "sa_wo": _linear_init(ks[3], (n, h * d_v, d_model), h * d_v),
        "ln1_g": jnp.ones((n, 1, d_model), jnp.float32),
        "ln1_b": jnp.zeros((n, 1, d_model), jnp.float32),
        # enc-dec attention uses d_v as head width and scale (reference semantics)
        "ca_wq": _linear_init(ks[4], (n, d_model, h * d_v), d_model, scale=d_v ** -0.5),
        "ca_wk": _linear_init(ks[5], (n, d_model, h * d_v), d_model),
        "ca_wv": _linear_init(ks[6], (n, d_model, h * d_v), d_model),
        "ca_wo": _linear_init(ks[7], (n, h * d_v, d_model), h * d_v),
        "ln2_g": jnp.ones((n, 1, d_model), jnp.float32),
        "ln2_b": jnp.zeros((n, 1, d_model), jnp.float32),
        "ff_w1": _linear_init(ks[8], (n, d_model, d_ff), d_model),
        "ff_b1": jnp.zeros((n, 1, d_ff), jnp.float32),
        "ff_w2": _linear_init(ks[9], (n, d_ff, d_model), d_ff),
        "ff_b2": jnp.zeros((n, 1, d_model), jnp.float32),
        "ln3_g": jnp.ones((n, 1, d_model), jnp.float32),
        "ln3_b": jnp.zeros((n, 1, d_model), jnp.float32),
    }


def make_positional_encoding(max_len, d_model):
    pos = jnp.arange(max_len, dtype=jnp.float32)[:, None]
    div = jnp.exp(jnp.arange(0, d_model, 2, dtype=jnp.float32)
                  * (-math.log(10000.0) / d_model))
    pe = jnp.zeros((max_len, d_model), jnp.float32)
    pe = pe.at[:, 0::2].set(jnp.sin(pos * div))
    pe = pe.at[:, 1::2].set(jnp.cos(pos * div))
    return pe


def init_transformer_params(key, *, n, d_model, d_k, d_v, h, d_ff,
                            src_vocab, trg_vocab, src_pad, trg_pad, max_seq_len):
    k_se, k_te, k_enc, k_dec, k_pr = jax.random.split(key, 5)
    src_emb = jax.random.normal(k_se, (src_vocab, d_model), jnp.float32)
    src_emb = src_emb.at[src_pad].set(0.0)
    trg_emb = jax.random.normal(k_te, (trg_vocab, d_model), jnp.float32)
    trg_emb = trg_emb.at[trg_pad].set(0.0)
    return {
        "src_emb": src_emb,
        "trg_emb": trg_emb,
        "pe": make_positional_encoding(max_seq_len, d_model),
        "enc": init_encoder_params(k_enc, n, d_model, d_k, d_v, h, d_ff),
        "dec": init_decoder_params(k_dec, n, d_model, d_k, d_v, h, d_ff),
        "proj_w": (jax.random.normal(k_pr, (d_model, trg_vocab), jnp.float32)
                   / math.sqrt(d_model)).astype(jnp.bfloat16),
    }


# -------------------------------- full forward --------------------------------

def transformer_forward(params, src, trg, *, h, d_k, d_v, src_pad, trg_pad):
    d_model = params["src_emb"].shape[1]
    B, Ts = src.shape
    _, Tt = trg.shape
    emb_scale = d_model ** 0.5

    # Embeddings + positional encoding in plain JAX (token gather has no clean
    # dense-Pallas equivalent at this scale).  Dropout is the eval-mode identity.
    # TODO(synk): training-mode dropout would need pltpu.prng_* inside the kernels.
    src_x = jnp.take(params["src_emb"], src, axis=0) * emb_scale
    src_x = src_x + params["pe"][None, :Ts, :]
    trg_x = jnp.take(params["trg_emb"], trg, axis=0) * emb_scale
    trg_x = trg_x + params["pe"][None, :Tt, :]

    # Compact key-padding biases: one (1, T) row per batch element (0 keep, -1e30 masked).
    # The causal part of the decoder self-attention mask is generated in-kernel.
    neg = jnp.float32(-1e30)
    src_kpad = jnp.where(src == src_pad, neg, jnp.float32(0.0))[:, None, :]  # (B, 1, Ts)
    trg_kpad = jnp.where(trg == trg_pad, neg, jnp.float32(0.0))[:, None, :]  # (B, 1, Tt)

    enc_out = encoder_stack(src_x.astype(jnp.bfloat16), src_kpad, params["enc"],
                            h=h, d_k=d_k)
    dec_out = decoder_stack(trg_x.astype(jnp.bfloat16), enc_out,
                            trg_kpad, src_kpad, params["dec"],
                            h=h, d_k=d_k, d_v=d_v)
    return projection(dec_out, params["proj_w"])


# ----------------------------------- main --------------------------------------

if __name__ == "__main__":
    # small config: n=2 layers, d_model=32, h=4 (d_k=d_v=8), d_ff=64
    n, d_model, h = 2, 32, 4
    d_k = d_v = d_model // h
    d_ff = 64
    src_vocab, trg_vocab = 53, 61
    src_pad = trg_pad = 0
    B, T_src, T_trg = 2, 8, 8

    root = jax.random.PRNGKey(0)
    k_param, k_src, k_trg = jax.random.split(root, 3)

    params = init_transformer_params(
        k_param, n=n, d_model=d_model, d_k=d_k, d_v=d_v, h=h, d_ff=d_ff,
        src_vocab=src_vocab, trg_vocab=trg_vocab,
        src_pad=src_pad, trg_pad=trg_pad, max_seq_len=64)

    src = jax.random.randint(k_src, (B, T_src), 1, src_vocab, dtype=jnp.int32)
    trg = jax.random.randint(k_trg, (B, T_trg), 1, trg_vocab, dtype=jnp.int32)
    src = src.at[1, -2:].set(src_pad)   # trailing padding to exercise padding masks
    trg = trg.at[1, -1:].set(trg_pad)

    fwd = jax.jit(functools.partial(transformer_forward, h=h, d_k=d_k, d_v=d_v,
                                    src_pad=src_pad, trg_pad=trg_pad))
    logits = jax.block_until_ready(fwd(params, src, trg))

    assert logits.shape == (B, T_trg, trg_vocab)
    assert bool(jnp.all(jnp.isfinite(logits)))
    print("KERNEL_OK")
</pallas_src>

<mosaic_0001>
module attributes {stable_mosaic.version = 11 : i64} {
  func.func @_projection_kernel(%arg0: i32, %arg1: i32, %arg2: memref<16x32xbf16, #tpu.memory_space<vmem>>, %arg3: memref<32x61xbf16, #tpu.memory_space<vmem>>, %arg4: memref<16x61xf32, #tpu.memory_space<vmem>>) attributes {dimension_semantics = [#tpu.dimension_semantics<parallel>, #tpu.dimension_semantics<parallel>], iteration_bounds = array<i64: 1, 1>, scalar_prefetch = 0 : i64, scratch_operands = 0 : i64, tpu.core_type = #tpu.core_type<tc>, window_params = [{transform_indices = @transform_0, window_bounds = array<i64: 16, 32>}, {transform_indices = @transform_1, window_bounds = array<i64: 32, 61>}, {transform_indices = @transform_2, window_bounds = array<i64: 16, 61>}]} {
    %c0 = arith.constant 0 : index
    %c0_0 = arith.constant 0 : index
    %0 = vector.load %arg2[%c0, %c0_0] : memref<16x32xbf16, #tpu.memory_space<vmem>>, vector<16x32xbf16>
    %c0_1 = arith.constant 0 : index
    %c0_2 = arith.constant 0 : index
    %1 = vector.load %arg3[%c0_1, %c0_2] : memref<32x61xbf16, #tpu.memory_space<vmem>>, vector<32x61xbf16>
    %cst = arith.constant dense<0.000000e+00> : vector<16x61xf32>
    %2 = tpu.matmul %0, %1, %cst {dimension_numbers = #tpu.dot_dimension_numbers<[1], [0], [0], [1], [0, 0, 1, 1], [], []>} : vector<16x32xbf16>, vector<32x61xbf16>, vector<16x61xf32> -> vector<16x61xf32>
    %c0_3 = arith.constant 0 : index
    %c0_4 = arith.constant 0 : index
    %3 = vector.load %arg4[%c0_3, %c0_4] : memref<16x61xf32, #tpu.memory_space<vmem>>, vector<16x61xf32>
    tpu.vector_store %arg4[%c0_3, %c0_4], %2 {strides = array<i32>} : memref<16x61xf32, #tpu.memory_space<vmem>>, vector<16x61xf32>,
    return
  }
  func.func @transform_0(%arg0: i32, %arg1: i32) -> (i32, i32) {
    %c0_i32 = arith.constant 0 : i32
    %c0_i32_0 = arith.constant 0 : i32
    return %arg0, %c0_i32 : i32, i32
  }
  func.func @transform_1(%arg0: i32, %arg1: i32) -> (i32, i32) {
    %c0_i32 = arith.constant 0 : i32
    %c0_i32_0 = arith.constant 0 : i32
    return %c0_i32, %arg1 : i32, i32
  }
  func.func @transform_2(%arg0: i32, %arg1: i32) -> (i32, i32) {
    %c0_i32 = arith.constant 0 : i32
    return %arg0, %arg1 : i32, i32
  }
}

module attributes {stable_mosaic.version = 11 : i64} {
  func.func @_encoder_stack_kernel(%arg0: i32, %arg1: i32, %arg2: memref<1x8x32xbf16, #tpu.memory_space<vmem>>, %arg3: memref<1x1x8xf32, #tpu.memory_space<vmem>>, %arg4: memref<1x32x32xbf16, #tpu.memory_space<vmem>>, %arg5: memref<1x32x32xbf16, #tpu.memory_space<vmem>>, %arg6: memref<1x32x32xbf16, #tpu.memory_space<vmem>>, %arg7: memref<1x32x32xbf16, #tpu.memory_space<vmem>>, %arg8: memref<1x1x32xf32, #tpu.memory_space<vmem>>, %arg9: memref<1x1x32xf32, #tpu.memory_space<vmem>>, %arg10: memref<1x32x64xbf16, #tpu.memory_space<vmem>>, %arg11: memref<1x1x64xf32, #tpu.memory_space<vmem>>, %arg12: memref<1x64x32xbf16, #tpu.memory_space<vmem>>, %arg13: memref<1x1x32xf32, #tpu.memory_space<vmem>>, %arg14: memref<1x1x32xf32, #tpu.memory_space<vmem>>, %arg15: memref<1x1x32xf32, #tpu.memory_space<vmem>>, %arg16: memref<1x8x32xbf16, #tpu.memory_space<vmem>>, %arg17: memref<8x32xf32, #tpu.memory_space<vmem>>) attributes {dimension_semantics = [#tpu.dimension_semantics<parallel>, #tpu.dimension_semantics<arbitrary>], iteration_bounds = array<i64: 2, 2>, scalar_prefetch = 0 : i64, scratch_operands = 1 : i64, tpu.core_type = #tpu.core_type<tc>, window_params = [{transform_indices = @transform_0, window_bounds = array<i64: 1, 8, 32>}, {transform_indices = @transform_1, window_bounds = array<i64: 1, 1, 8>}, {transform_indices = @transform_2, window_bounds = array<i64: 1, 32, 32>}, {transform_indices = @transform_3, window_bounds = array<i64: 1, 32, 32>}, {transform_indices = @transform_4, window_bounds = array<i64: 1, 32, 32>}, {transform_indices = @transform_5, window_bounds = array<i64: 1, 32, 32>}, {transform_indices = @transform_6, window_bounds = array<i64: 1, 1, 32>}, {transform_indices = @transform_7, window_bounds = array<i64: 1, 1, 32>}, {transform_indices = @transform_8, window_bounds = array<i64: 1, 32, 64>}, {transform_indices = @transform_9, window_bounds = array<i64: 1, 1, 64>}, {transform_indices = @transform_10, window_bounds = array<i64: 1, 64, 32>}, {transform_indices = @transform_11, window_bounds = array<i64: 1, 1, 32>}, {transform_indices = @transform_12, window_bounds = array<i64: 1, 1, 32>}, {transform_indices = @transform_13, window_bounds = array<i64: 1, 1, 32>}, {transform_indices = @transform_14, window_bounds = array<i64: 1, 8, 32>}]} {
    %c0_i32 = arith.constant 0 : i32
    %0 = arith.cmpi eq, %arg1, %c0_i32 : i32
    %1 = arith.extui %0 : i1 to i32
    %c0_i32_0 = arith.constant 0 : i32
    %2 = arith.cmpi ne, %1, %c0_i32_0 : i32
    scf.if %2 {
      %c0_64 = arith.constant 0 : index
      %c0_65 = arith.constant 0 : index
      %c0_66 = arith.constant 0 : index
      %123 = vector.load %arg2[%c0_64, %c0_65, %c0_66] : memref<1x8x32xbf16, #tpu.memory_space<vmem>>, vector<1x8x32xbf16>
      %124 = vector.shape_cast %123 : vector<1x8x32xbf16> to vector<8x32xbf16>
      %125 = arith.extf %124 : vector<8x32xbf16> to vector<8x32xf32>
      %c0_67 = arith.constant 0 : index
      %c0_68 = arith.constant 0 : index
      %126 = vector.load %arg17[%c0_67, %c0_68] : memref<8x32xf32, #tpu.memory_space<vmem>>, vector<8x32xf32>
      tpu.vector_store %arg17[%c0_67, %c0_68], %125 {strides = array<i32>} : memref<8x32xf32, #tpu.memory_space<vmem>>, vector<8x32xf32>,
    } else {
    }
    %c0 = arith.constant 0 : index
    %c0_1 = arith.constant 0 : index
    %3 = vector.load %arg17[%c0, %c0_1] : memref<8x32xf32, #tpu.memory_space<vmem>>, vector<8x32xf32>
    %4 = arith.truncf %3 : vector<8x32xf32> to vector<8x32xbf16>
    %c0_2 = arith.constant 0 : index
    %c0_3 = arith.constant 0 : index
    %c0_4 = arith.constant 0 : index
    %5 = vector.load %arg3[%c0_2, %c0_3, %c0_4] : memref<1x1x8xf32, #tpu.memory_space<vmem>>, vector<1x1x8xf32>
    %6 = vector.shape_cast %5 : vector<1x1x8xf32> to vector<1x8xf32>
    %c0_5 = arith.constant 0 : index
    %c0_6 = arith.constant 0 : index
    %c0_7 = arith.constant 0 : index
    %7 = vector.load %arg4[%c0_5, %c0_6, %c0_7] : memref<1x32x32xbf16, #tpu.memory_space<vmem>>, vector<1x32x32xbf16>
    %8 = vector.shape_cast %7 : vector<1x32x32xbf16> to vector<32x32xbf16>
    %cst = arith.constant dense<0.000000e+00> : vector<8x32xf32>
    %9 = tpu.matmul %4, %8, %cst {dimension_numbers = #tpu.dot_dimension_numbers<[1], [0], [0], [1], [0, 0, 1, 1], [], []>} : vector<8x32xbf16>, vector<32x32xbf16>, vector<8x32xf32> -> vector<8x32xf32>
    %c0_8 = arith.constant 0 : index
    %c0_9 = arith.constant 0 : index
    %c0_10 = arith.constant 0 : index
    %10 = vector.load %arg5[%c0_8, %c0_9, %c0_10] : memref<1x32x32xbf16, #tpu.memory_space<vmem>>, vector<1x32x32xbf16>
    %11 = vector.shape_cast %10 : vector<1x32x32xbf16> to vector<32x32xbf16>
    %cst_11 = arith.constant dense<0.000000e+00> : vector<8x32xf32>
    %12 = tpu.matmul %4, %11, %cst_11 {dimension_numbers = #tpu.dot_dimension_numbers<[1], [0], [0], [1], [0, 0, 1, 1], [], []>} : vector<8x32xbf16>, vector<32x32xbf16>, vector<8x32xf32> -> vector<8x32xf32>
    %c0_12 = arith.constant 0 : index
    %c0_13 = arith.constant 0 : index
    %c0_14 = arith.constant 0 : index
    %13 = vector.load %arg6[%c0_12, %c0_13, %c0_14] : memref<1x32x32xbf16, #tpu.memory_space<vmem>>, vector<1x32x32xbf16>
    %14 = vector.shape_cast %13 : vector<1x32x32xbf16> to vector<32x32xbf16>
    %cst_15 = arith.constant dense<0.000000e+00> : vector<8x32xf32>
    %15 = tpu.matmul %4, %14, %cst_15 {dimension_numbers = #tpu.dot_dimension_numbers<[1], [0], [0], [1], [0, 0, 1, 1], [], []>} : vector<8x32xbf16>, vector<32x32xbf16>, vector<8x32xf32> -> vector<8x32xf32>
    %16 = vector.shape_cast %9 : vector<8x32xf32> to vector<8x4x8xf32>
    %17 = tpu.transpose %16, [1, 0, 2] : vector<8x4x8xf32> -> vector<4x8x8xf32>
    %18 = arith.truncf %17 : vector<4x8x8xf32> to vector<4x8x8xbf16>
    %19 = vector.shape_cast %12 : vector<8x32xf32> to vector<8x4x8xf32>
    %20 = tpu.transpose %19, [1, 0, 2] : vector<8x4x8xf32> -> vector<4x8x8xf32>
    %21 = arith.truncf %20 : vector<4x8x8xf32> to vector<4x8x8xbf16>
    %22 = vector.shape_cast %15 : vector<8x32xf32> to vector<8x4x8xf32>
    %23 = tpu.transpose %22, [1, 0, 2] : vector<8x4x8xf32> -> vector<4x8x8xf32>
    %24 = arith.truncf %23 : vector<4x8x8xf32> to vector<4x8x8xbf16>
    "tpu.trace_start"() <{level = 10 : i32, message = "hqk,hsk->hqs"}> : () -> ()
    %cst_16 = arith.constant dense<0.000000e+00> : vector<4x8x8xf32>
    %25 = tpu.matmul %18, %21, %cst_16 {dimension_numbers = #tpu.dot_dimension_numbers<[2], [2], [1], [1], [0, 0, 0, 1, 1, 1], [0], [0]>} : vector<4x8x8xbf16>, vector<4x8x8xbf16>, vector<4x8x8xf32> -> vector<4x8x8xf32>
    "tpu.trace_stop"() : () -> ()
    %26 = vector.shape_cast %6 : vector<1x8xf32> to vector<1x1x8xf32>
    %27 = vector.broadcast %26 : vector<1x1x8xf32> to vector<4x8x8xf32>
    %28 = arith.addf %25, %27 : vector<4x8x8xf32>
    %cst_17 = arith.constant dense<0xFF800000> : vector<4x8xf32>
    %29 = vector.multi_reduction <maximumf>, %28, %cst_17 [2] : vector<4x8x8xf32> to vector<4x8xf32>
    %30 = vector.shape_cast %29 : vector<4x8xf32> to vector<4x8x1xf32>
    %31 = vector.broadcast %30 : vector<4x8x1xf32> to vector<4x8x8xf32>
    %32 = arith.subf %28, %31 : vector<4x8x8xf32>
    %33 = math.exp %32 : vector<4x8x8xf32>
    %cst_18 = arith.constant dense<0.000000e+00> : vector<4x8xf32>
    %34 = vector.multi_reduction <add>, %33, %cst_18 [2] : vector<4x8x8xf32> to vector<4x8xf32>
    %35 = vector.shape_cast %34 : vector<4x8xf32> to vector<4x8x1xf32>
    %36 = tpu.reciprocal %35 {approx = true} : vector<4x8x1xf32> -> vector<4x8x1xf32>
    %37 = vector.broadcast %36 : vector<4x8x1xf32> to vector<4x8x8xf32>
    %38 = arith.mulf %33, %37 : vector<4x8x8xf32>
    %39 = arith.truncf %38 : vector<4x8x8xf32> to vector<4x8x8xbf16>
    "tpu.trace_start"() <{level = 10 : i32, message = "hqs,hsk->hqk"}> : () -> ()
    %cst_19 = arith.constant dense<0.000000e+00> : vector<4x8x8xf32>
    %40 = tpu.matmul %39, %24, %cst_19 {dimension_numbers = #tpu.dot_dimension_numbers<[2], [1], [1], [2], [0, 0, 0, 1, 1, 2], [0], [0]>} : vector<4x8x8xbf16>, vector<4x8x8xbf16>, vector<4x8x8xf32> -> vector<4x8x8xf32>
    "tpu.trace_stop"() : () -> ()
    %41 = tpu.transpose %40, [1, 0, 2] : vector<4x8x8xf32> -> vector<8x4x8xf32>
    %42 = vector.shape_cast %41 : vector<8x4x8xf32> to vector<8x32xf32>
    %43 = arith.truncf %42 : vector<8x32xf32> to vector<8x32xbf16>
    %c0_20 = arith.constant 0 : index
    %c0_21 = arith.constant 0 : index
    %c0_22 = arith.constant 0 : index
    %44 = vector.load %arg7[%c0_20, %c0_21, %c0_22] : memref<1x32x32xbf16, #tpu.memory_space<vmem>>, vector<1x32x32xbf16>
    %45 = vector.shape_cast %44 : vector<1x32x32xbf16> to vector<32x32xbf16>
    %cst_23 = arith.constant dense<0.000000e+00> : vector<8x32xf32>
    %46 = tpu.matmul %43, %45, %cst_23 {dimension_numbers = #tpu.dot_dimension_numbers<[1], [0], [0], [1], [0, 0, 1, 1], [], []>} : vector<8x32xbf16>, vector<32x32xbf16>, vector<8x32xf32> -> vector<8x32xf32>
    %47 = arith.addf %3, %46 : vector<8x32xf32>
    %c0_24 = arith.constant 0 : index
    %c0_25 = arith.constant 0 : index
    %c0_26 = arith.constant 0 : index
    %48 = vector.load %arg8[%c0_24, %c0_25, %c0_26] : memref<1x1x32xf32, #tpu.memory_space<vmem>>, vector<1x1x32xf32>
    %49 = vector.shape_cast %48 : vector<1x1x32xf32> to vector<1x32xf32>
    %c0_27 = arith.constant 0 : index
    %c0_28 = arith.constant 0 : index
    %c0_29 = arith.constant 0 : index
    %50 = vector.load %arg9[%c0_27, %c0_28, %c0_29] : memref<1x1x32xf32, #tpu.memory_space<vmem>>, vector<1x1x32xf32>
    %51 = vector.shape_cast %50 : vector<1x1x32xf32> to vector<1x32xf32>
    %cst_30 = arith.constant dense<0.000000e+00> : vector<8xf32>
    %52 = vector.multi_reduction <add>, %47, %cst_30 [1] : vector<8x32xf32> to vector<8xf32>
    %53 = vector.shape_cast %52 : vector<8xf32> to vector<8x1xf32>
    %cst_31 = arith.constant 3.200000e+01 : f32
    %54 = vector.broadcast %cst_31 : f32 to vector<8x1xf32>
    %55 = arith.divf %53, %54 : vector<8x1xf32>
    %56 = vector.broadcast %55 : vector<8x1xf32> to vector<8x32xf32>
    %57 = arith.subf %47, %56 : vector<8x32xf32>
    %58 = arith.mulf %57, %57 : vector<8x32xf32>
    %cst_32 = arith.constant dense<0.000000e+00> : vector<8xf32>
    %59 = vector.multi_reduction <add>, %58, %cst_32 [1] : vector<8x32xf32> to vector<8xf32>
    %60 = vector.shape_cast %59 : vector<8xf32> to vector<8x1xf32>
    %cst_33 = arith.constant 3.200000e+01 : f32
    %61 = vector.broadcast %cst_33 : f32 to vector<8x1xf32>
    %62 = arith.divf %60, %61 : vector<8x1xf32>
    %63 = vector.broadcast %55 : vector<8x1xf32> to vector<8x32xf32>
    %64 = arith.subf %47, %63 : vector<8x32xf32>
    %cst_34 = arith.constant 9.99999974E-6 : f32
    %65 = vector.broadcast %cst_34 : f32 to vector<8x1xf32>
    %66 = arith.addf %62, %65 : vector<8x1xf32>
    %67 = math.rsqrt %66 : vector<8x1xf32>
    %68 = vector.broadcast %67 : vector<8x1xf32> to vector<8x32xf32>
    %69 = arith.mulf %64, %68 : vector<8x32xf32>
    %70 = vector.broadcast %49 : vector<1x32xf32> to vector<8x32xf32>
    %71 = arith.mulf %69, %70 : vector<8x32xf32>
    %72 = vector.broadcast %51 : vector<1x32xf32> to vector<8x32xf32>
    %73 = arith.addf %71, %72 : vector<8x32xf32>
    %74 = arith.truncf %73 : vector<8x32xf32> to vector<8x32xbf16>
    %c0_35 = arith.constant 0 : index
    %c0_36 = arith.constant 0 : index
    %c0_37 = arith.constant 0 : index
    %75 = vector.load %arg10[%c0_35, %c0_36, %c0_37] : memref<1x32x64xbf16, #tpu.memory_space<vmem>>, vector<1x32x64xbf16>
    %76 = vector.shape_cast %75 : vector<1x32x64xbf16> to vector<32x64xbf16>
    %cst_38 = arith.constant dense<0.000000e+00> : vector<8x64xf32>
    %77 = tpu.matmul %74, %76, %cst_38 {dimension_numbers = #tpu.dot_dimension_numbers<[1], [0], [0], [1], [0, 0, 1, 1], [], []>} : vector<8x32xbf16>, vector<32x64xbf16>, vector<8x64xf32> -> vector<8x64xf32>
    %c0_39 = arith.constant 0 : index
    %c0_40 = arith.constant 0 : index
    %c0_41 = arith.constant 0 : index
    %78 = vector.load %arg11[%c0_39, %c0_40, %c0_41] : memref<1x1x64xf32, #tpu.memory_space<vmem>>, vector<1x1x64xf32>
    %79 = vector.shape_cast %78 : vector<1x1x64xf32> to vector<1x64xf32>
    %80 = vector.broadcast %79 : vector<1x64xf32> to vector<8x64xf32>
    %81 = arith.addf %77, %80 : vector<8x64xf32>
    %cst_42 = arith.constant 0.000000e+00 : f32
    %82 = vector.broadcast %cst_42 : f32 to vector<8x64xf32>
    %83 = arith.maximumf %81, %82 : vector<8x64xf32>
    %84 = arith.truncf %83 : vector<8x64xf32> to vector<8x64xbf16>
    %c0_43 = arith.constant 0 : index
    %c0_44 = arith.constant 0 : index
    %c0_45 = arith.constant 0 : index
    %85 = vector.load %arg12[%c0_43, %c0_44, %c0_45] : memref<1x64x32xbf16, #tpu.memory_space<vmem>>, vector<1x64x32xbf16>
    %86 = vector.shape_cast %85 : vector<1x64x32xbf16> to vector<64x32xbf16>
    %cst_46 = arith.constant dense<0.000000e+00> : vector<8x32xf32>
    %87 = tpu.matmul %84, %86, %cst_46 {dimension_numbers = #tpu.dot_dimension_numbers<[1], [0], [0], [1], [0, 0, 1, 1], [], []>} : vector<8x64xbf16>, vector<64x32xbf16>, vector<8x32xf32> -> vector<8x32xf32>
    %c0_47 = arith.constant 0 : index
    %c0_48 = arith.constant 0 : index
    %c0_49 = arith.constant 0 : index
    %88 = vector.load %arg13[%c0_47, %c0_48, %c0_49] : memref<1x1x32xf32, #tpu.memory_space<vmem>>, vector<1x1x32xf32>
    %89 = vector.shape_cast %88 : vector<1x1x32xf32> to vector<1x32xf32>
    %90 = vector.broadcast %89 : vector<1x32xf32> to vector<8x32xf32>
    %91 = arith.addf %87, %90 : vector<8x32xf32>
    %92 = arith.addf %73, %91 : vector<8x32xf32>
    %c0_50 = arith.constant 0 : index
    %c0_51 = arith.constant 0 : index
    %c0_52 = arith.constant 0 : index
    %93 = vector.load %arg14[%c0_50, %c0_51, %c0_52] : memref<1x1x32xf32, #tpu.memory_space<vmem>>, vector<1x1x32xf32>
    %94 = vector.shape_cast %93 : vector<1x1x32xf32> to vector<1x32xf32>
    %c0_53 = arith.constant 0 : index
    %c0_54 = arith.constant 0 : index
    %c0_55 = arith.constant 0 : index
    %95 = vector.load %arg15[%c0_53, %c0_54, %c0_55] : memref<1x1x32xf32, #tpu.memory_space<vmem>>, vector<1x1x32xf32>
    %96 = vector.shape_cast %95 : vector<1x1x32xf32> to vector<1x32xf32>
    %cst_56 = arith.constant dense<0.000000e+00> : vector<8xf32>
    %97 = vector.multi_reduction <add>, %92, %cst_56 [1] : vector<8x32xf32> to vector<8xf32>
    %98 = vector.shape_cast %97 : vector<8xf32> to vector<8x1xf32>
    %cst_57 = arith.constant 3.200000e+01 : f32
    %99 = vector.broadcast %cst_57 : f32 to vector<8x1xf32>
    %100 = arith.divf %98, %99 : vector<8x1xf32>
    %101 = vector.broadcast %100 : vector<8x1xf32> to vector<8x32xf32>
    %102 = arith.subf %92, %101 : vector<8x32xf32>
    %103 = arith.mulf %102, %102 : vector<8x32xf32>
    %cst_58 = arith.constant dense<0.000000e+00> : vector<8xf32>
    %104 = vector.multi_reduction <add>, %103, %cst_58 [1] : vector<8x32xf32> to vector<8xf32>
    %105 = vector.shape_cast %104 : vector<8xf32> to vector<8x1xf32>
    %cst_59 = arith.constant 3.200000e+01 : f32
    %106 = vector.broadcast %cst_59 : f32 to vector<8x1xf32>
    %107 = arith.divf %105, %106 : vector<8x1xf32>
    %108 = vector.broadcast %100 : vector<8x1xf32> to vector<8x32xf32>
    %109 = arith.subf %92, %108 : vector<8x32xf32>
    %cst_60 = arith.constant 9.99999974E-6 : f32
    %110 = vector.broadcast %cst_60 : f32 to vector<8x1xf32>
    %111 = arith.addf %107, %110 : vector<8x1xf32>
    %112 = math.rsqrt %111 : vector<8x1xf32>
    %113 = vector.broadcast %112 : vector<8x1xf32> to vector<8x32xf32>
    %114 = arith.mulf %109, %113 : vector<8x32xf32>
    %115 = vector.broadcast %94 : vector<1x32xf32> to vector<8x32xf32>
    %116 = arith.mulf %114, %115 : vector<8x32xf32>
    %117 = vector.broadcast %96 : vector<1x32xf32> to vector<8x32xf32>
    %118 = arith.addf %116, %117 : vector<8x32xf32>
    %c0_61 = arith.constant 0 : index
    %c0_62 = arith.constant 0 : index
    %119 = vector.load %arg17[%c0_61, %c0_62] : memref<8x32xf32, #tpu.memory_space<vmem>>, vector<8x32xf32>
    tpu.vector_store %arg17[%c0_61, %c0_62], %118 {strides = array<i32>} : memref<8x32xf32, #tpu.memory_space<vmem>>, vector<8x32xf32>,
    %c1_i32 = arith.constant 1 : i32
    %120 = arith.cmpi eq, %arg1, %c1_i32 : i32
    %121 = arith.extui %120 : i1 to i32
    %c0_i32_63 = arith.constant 0 : i32
    %122 = arith.cmpi ne, %121, %c0_i32_63 : i32
    scf.if %122 {
      %123 = arith.truncf %118 : vector<8x32xf32> to vector<8x32xbf16>
      %c0_64 = arith.constant 0 : index
      %c0_65 = arith.constant 0 : index
      %c0_66 = arith.constant 0 : index
      %124 = vector.load %arg16[%c0_64, %c0_65, %c0_66] : memref<1x8x32xbf16, #tpu.memory_space<vmem>>, vector<1x8x32xbf16>
      %125 = vector.shape_cast %124 : vector<1x8x32xbf16> to vector<8x32xbf16>
      %126 = vector.shape_cast %123 : vector<8x32xbf16> to vector<1x8x32xbf16>
      tpu.vector_store %arg16[%c0_64, %c0_65, %c0_66], %126 {strides = array<i32>} : memref<1x8x32xbf16, #tpu.memory_space<vmem>>, vector<1x8x32xbf16>,
    } else {
    }
    return
  }
  func.func @transform_0(%arg0: i32, %arg1: i32) -> (i32, i32, i32) {
    %c0_i32 = arith.constant 0 : i32
    %c0_i32_0 = arith.constant 0 : i32
    %c0_i32_1 = arith.constant 0 : i32
    return %arg0, %c0_i32, %c0_i32_0 : i32, i32, i32
  }
  func.func @transform_1(%arg0: i32, %arg1: i32) -> (i32, i32, i32) {
    %c0_i32 = arith.constant 0 : i32
    %c0_i32_0 = arith.constant 0 : i32
    %c0_i32_1 = arith.constant 0 : i32
    return %arg0, %c0_i32, %c0_i32_0 : i32, i32, i32
  }
  func.func @transform_2(%arg0: i32, %arg1: i32) -> (i32, i32, i32) {
    %c0_i32 = arith.constant 0 : i32
    %c0_i32_0 = arith.constant 0 : i32
    %c0_i32_1 = arith.constant 0 : i32
    return %arg1, %c0_i32, %c0_i32_0 : i32, i32, i32
  }
  func.func @transform_3(%arg0: i32, %arg1: i32) -> (i32, i32, i32) {
    %c0_i32 = arith.constant 0 : i32
    %c0_i32_0 = arith.constant 0 : i32
    %c0_i32_1 = arith.constant 0 : i32
    return %arg1, %c0_i32, %c0_i32_0 : i32, i32, i32
  }
  func.func @transform_4(%arg0: i32, %arg1: i32) -> (i32, i32, i32) {
    %c0_i32 = arith.constant 0 : i32
    %c0_i32_0 = arith.constant 0 : i32
    %c0_i32_1 = arith.constant 0 : i32
    return %arg1, %c0_i32, %c0_i32_0 : i32, i32, i32
  }
  func.func @transform_5(%arg0: i32, %arg1: i32) -> (i32, i32, i32) {
    %c0_i32 = arith.constant 0 : i32
    %c0_i32_0 = arith.constant 0 : i32
    %c0_i32_1 = arith.constant 0 : i32
    return %arg1, %c0_i32, %c0_i32_0 : i32, i32, i32
  }
  func.func @transform_6(%arg0: i32, %arg1: i32) -> (i32, i32, i32) {
    %c0_i32 = arith.constant 0 : i32
    %c0_i32_0 = arith.constant 0 : i32
    %c0_i32_1 = arith.constant 0 : i32
    return %arg1, %c0_i32, %c0_i32_0 : i32, i32, i32
  }
  func.func @transform_7(%arg0: i32, %arg1: i32) -> (i32, i32, i32) {
    %c0_i32 = arith.constant 0 : i32
    %c0_i32_0 = arith.constant 0 : i32
    %c0_i32_1 = arith.constant 0 : i32
    return %arg1, %c0_i32, %c0_i32_0 : i32, i32, i32
  }
  func.func @transform_8(%arg0: i32, %arg1: i32) -> (i32, i32, i32) {
    %c0_i32 = arith.constant 0 : i32
    %c0_i32_0 = arith.constant 0 : i32
    %c0_i32_1 = arith.constant 0 : i32
    return %arg1, %c0_i32, %c0_i32_0 : i32, i32, i32
  }
  func.func @transform_9(%arg0: i32, %arg1: i32) -> (i32, i32, i32) {
    %c0_i32 = arith.constant 0 : i32
    %c0_i32_0 = arith.constant 0 : i32
    %c0_i32_1 = arith.constant 0 : i32
    return %arg1, %c0_i32, %c0_i32_0 : i32, i32, i32
  }
  func.func @transform_10(%arg0: i32, %arg1: i32) -> (i32, i32, i32) {
    %c0_i32 = arith.constant 0 : i32
    %c0_i32_0 = arith.constant 0 : i32
    %c0_i32_1 = arith.constant 0 : i32
    return %arg1, %c0_i32, %c0_i32_0 : i32, i32, i32
  }
  func.func @transform_11(%arg0: i32, %arg1: i32) -> (i32, i32, i32) {
    %c0_i32 = arith.constant 0 : i32
    %c0_i32_0 = arith.constant 0 : i32
    %c0_i32_1 = arith.constant 0 : i32
    return %arg1, %c0_i32, %c0_i32_0 : i32, i32, i32
  }
  func.func @transform_12(%arg0: i32, %arg1: i32) -> (i32, i32, i32) {
    %c0_i32 = arith.constant 0 : i32
    %c0_i32_0 = arith.constant 0 : i32
    %c0_i32_1 = arith.constant 0 : i32
    return %arg1, %c0_i32, %c0_i32_0 : i32, i32, i32
  }
  func.func @transform_13(%arg0: i32, %arg1: i32) -> (i32, i32, i32) {
    %c0_i32 = arith.constant 0 : i32
    %c0_i32_0 = arith.constant 0 : i32
    %c0_i32_1 = arith.constant 0 : i32
    return %arg1, %c0_i32, %c0_i32_0 : i32, i32, i32
  }
  func.func @transform_14(%arg0: i32, %arg1: i32) -> (i32, i32, i32) {
    %c0_i32 = arith.constant 0 : i32
    %c0_i32_0 = arith.constant 0 : i32
    %c0_i32_1 = arith.constant 0 : i32
    return %arg0, %c0_i32, %c0_i32_0 : i32, i32, i32
  }
}

module attributes {stable_mosaic.version = 11 : i64} {
  func.func @_decoder_stack_kernel(%arg0: i32, %arg1: i32, %arg2: memref<1x8x32xbf16, #tpu.memory_space<vmem>>, %arg3: memref<1x8x32xbf16, #tpu.memory_space<vmem>>, %arg4: memref<1x1x8xf32, #tpu.memory_space<vmem>>, %arg5: memref<1x1x8xf32, #tpu.memory_space<vmem>>, %arg6: memref<1x32x32xbf16, #tpu.memory_space<vmem>>, %arg7: memref<1x32x32xbf16, #tpu.memory_space<vmem>>, %arg8: memref<1x32x32xbf16, #tpu.memory_space<vmem>>, %arg9: memref<1x32x32xbf16, #tpu.memory_space<vmem>>, %arg10: memref<1x1x32xf32, #tpu.memory_space<vmem>>, %arg11: memref<1x1x32xf32, #tpu.memory_space<vmem>>, %arg12: memref<1x32x32xbf16, #tpu.memory_space<vmem>>, %arg13: memref<1x32x32xbf16, #tpu.memory_space<vmem>>, %arg14: memref<1x32x32xbf16, #tpu.memory_space<vmem>>, %arg15: memref<1x32x32xbf16, #tpu.memory_space<vmem>>, %arg16: memref<1x1x32xf32, #tpu.memory_space<vmem>>, %arg17: memref<1x1x32xf32, #tpu.memory_space<vmem>>, %arg18: memref<1x32x64xbf16, #tpu.memory_space<vmem>>, %arg19: memref<1x1x64xf32, #tpu.memory_space<vmem>>, %arg20: memref<1x64x32xbf16, #tpu.memory_space<vmem>>, %arg21: memref<1x1x32xf32, #tpu.memory_space<vmem>>, %arg22: memref<1x1x32xf32, #tpu.memory_space<vmem>>, %arg23: memref<1x1x32xf32, #tpu.memory_space<vmem>>, %arg24: memref<1x8x32xbf16, #tpu.memory_space<vmem>>, %arg25: memref<8x32xf32, #tpu.memory_space<vmem>>) attributes {dimension_semantics = [#tpu.dimension_semantics<parallel>, #tpu.dimension_semantics<arbitrary>], iteration_bounds = array<i64: 2, 2>, scalar_prefetch = 0 : i64, scratch_operands = 1 : i64, tpu.core_type = #tpu.core_type<tc>, window_params = [{transform_indices = @transform_0, window_bounds = array<i64: 1, 8, 32>}, {transform_indices = @transform_1, window_bounds = array<i64: 1, 8, 32>}, {transform_indices = @transform_2, window_bounds = array<i64: 1, 1, 8>}, {transform_indices = @transform_3, window_bounds = array<i64: 1, 1, 8>}, {transform_indices = @transform_4, window_bounds = array<i64: 1, 32, 32>}, {transform_indices = @transform_5, window_bounds = array<i64: 1, 32, 32>}, {transform_indices = @transform_6, window_bounds = array<i64: 1, 32, 32>}, {transform_indices = @transform_7, window_bounds = array<i64: 1, 32, 32>}, {transform_indices = @transform_8, window_bounds = array<i64: 1, 1, 32>}, {transform_indices = @transform_9, window_bounds = array<i64: 1, 1, 32>}, {transform_indices = @transform_10, window_bounds = array<i64: 1, 32, 32>}, {transform_indices = @transform_11, window_bounds = array<i64: 1, 32, 32>}, {transform_indices = @transform_12, window_bounds = array<i64: 1, 32, 32>}, {transform_indices = @transform_13, window_bounds = array<i64: 1, 32, 32>}, {transform_indices = @transform_14, window_bounds = array<i64: 1, 1, 32>}, {transform_indices = @transform_15, window_bounds = array<i64: 1, 1, 32>}, {transform_indices = @transform_16, window_bounds = array<i64: 1, 32, 64>}, {transform_indices = @transform_17, window_bounds = array<i64: 1, 1, 64>}, {transform_indices = @transform_18, window_bounds = array<i64: 1, 64, 32>}, {transform_indices = @transform_19, window_bounds = array<i64: 1, 1, 32>}, {transform_indices = @transform_20, window_bounds = array<i64: 1, 1, 32>}, {transform_indices = @transform_21, window_bounds = array<i64: 1, 1, 32>}, {transform_indices = @transform_22, window_bounds = array<i64: 1, 8, 32>}]} {
    %c0_i32 = arith.constant 0 : i32
    %0 = arith.cmpi eq, %arg1, %c0_i32 : i32
    %1 = arith.extui %0 : i1 to i32
    %c0_i32_0 = arith.constant 0 : i32
    %2 = arith.cmpi ne, %1, %c0_i32_0 : i32
    scf.if %2 {
      %c0_103 = arith.constant 0 : index
      %c0_104 = arith.constant 0 : index
      %c0_105 = arith.constant 0 : index
      %204 = vector.load %arg2[%c0_103, %c0_104, %c0_105] : memref<1x8x32xbf16, #tpu.memory_space<vmem>>, vector<1x8x32xbf16>
      %205 = vector.shape_cast %204 : vector<1x8x32xbf16> to vector<8x32xbf16>
      %206 = arith.extf %205 : vector<8x32xbf16> to vector<8x32xf32>
      %c0_106 = arith.constant 0 : index
      %c0_107 = arith.constant 0 : index
      %207 = vector.load %arg25[%c0_106, %c0_107] : memref<8x32xf32, #tpu.memory_space<vmem>>, vector<8x32xf32>
      tpu.vector_store %arg25[%c0_106, %c0_107], %206 {strides = array<i32>} : memref<8x32xf32, #tpu.memory_space<vmem>>, vector<8x32xf32>,
    } else {
    }
    %c0 = arith.constant 0 : index
    %c0_1 = arith.constant 0 : index
    %3 = vector.load %arg25[%c0, %c0_1] : memref<8x32xf32, #tpu.memory_space<vmem>>, vector<8x32xf32>
    %c0_2 = arith.constant 0 : index
    %c0_3 = arith.constant 0 : index
    %c0_4 = arith.constant 0 : index
    %4 = vector.load %arg3[%c0_2, %c0_3, %c0_4] : memref<1x8x32xbf16, #tpu.memory_space<vmem>>, vector<1x8x32xbf16>
    %5 = vector.shape_cast %4 : vector<1x8x32xbf16> to vector<8x32xbf16>
    %6 = arith.truncf %3 : vector<8x32xf32> to vector<8x32xbf16>
    %c0_5 = arith.constant 0 : index
    %c0_6 = arith.constant 0 : index
    %c0_7 = arith.constant 0 : index
    %7 = vector.load %arg4[%c0_5, %c0_6, %c0_7] : memref<1x1x8xf32, #tpu.memory_space<vmem>>, vector<1x1x8xf32>
    %8 = vector.shape_cast %7 : vector<1x1x8xf32> to vector<1x8xf32>
    %c0_8 = arith.constant 0 : index
    %c0_9 = arith.constant 0 : index
    %c0_10 = arith.constant 0 : index
    %9 = vector.load %arg6[%c0_8, %c0_9, %c0_10] : memref<1x32x32xbf16, #tpu.memory_space<vmem>>, vector<1x32x32xbf16>
    %10 = vector.shape_cast %9 : vector<1x32x32xbf16> to vector<32x32xbf16>
    %cst = arith.constant dense<0.000000e+00> : vector<8x32xf32>
    %11 = tpu.matmul %6, %10, %cst {dimension_numbers = #tpu.dot_dimension_numbers<[1], [0], [0], [1], [0, 0, 1, 1], [], []>} : vector<8x32xbf16>, vector<32x32xbf16>, vector<8x32xf32> -> vector<8x32xf32>
    %c0_11 = arith.constant 0 : index
    %c0_12 = arith.constant 0 : index
    %c0_13 = arith.constant 0 : index
    %12 = vector.load %arg7[%c0_11, %c0_12, %c0_13] : memref<1x32x32xbf16, #tpu.memory_space<vmem>>, vector<1x32x32xbf16>
    %13 = vector.shape_cast %12 : vector<1x32x32xbf16> to vector<32x32xbf16>
    %cst_14 = arith.constant dense<0.000000e+00> : vector<8x32xf32>
    %14 = tpu.matmul %6, %13, %cst_14 {dimension_numbers = #tpu.dot_dimension_numbers<[1], [0], [0], [1], [0, 0, 1, 1], [], []>} : vector<8x32xbf16>, vector<32x32xbf16>, vector<8x32xf32> -> vector<8x32xf32>
    %c0_15 = arith.constant 0 : index
    %c0_16 = arith.constant 0 : index
    %c0_17 = arith.constant 0 : index
    %15 = vector.load %arg8[%c0_15, %c0_16, %c0_17] : memref<1x32x32xbf16, #tpu.memory_space<vmem>>, vector<1x32x32xbf16>
    %16 = vector.shape_cast %15 : vector<1x32x32xbf16> to vector<32x32xbf16>
    %cst_18 = arith.constant dense<0.000000e+00> : vector<8x32xf32>
    %17 = tpu.matmul %6, %16, %cst_18 {dimension_numbers = #tpu.dot_dimension_numbers<[1], [0], [0], [1], [0, 0, 1, 1], [], []>} : vector<8x32xbf16>, vector<32x32xbf16>, vector<8x32xf32> -> vector<8x32xf32>
    %18 = vector.shape_cast %11 : vector<8x32xf32> to vector<8x4x8xf32>
    %19 = tpu.transpose %18, [1, 0, 2] : vector<8x4x8xf32> -> vector<4x8x8xf32>
    %20 = arith.truncf %19 : vector<4x8x8xf32> to vector<4x8x8xbf16>
    %21 = vector.shape_cast %14 : vector<8x32xf32> to vector<8x4x8xf32>
    %22 = tpu.transpose %21, [1, 0, 2] : vector<8x4x8xf32> -> vector<4x8x8xf32>
    %23 = arith.truncf %22 : vector<4x8x8xf32> to vector<4x8x8xbf16>
    %24 = vector.shape_cast %17 : vector<8x32xf32> to vector<8x4x8xf32>
    %25 = tpu.transpose %24, [1, 0, 2] : vector<8x4x8xf32> -> vector<4x8x8xf32>
    %26 = arith.truncf %25 : vector<4x8x8xf32> to vector<4x8x8xbf16>
    "tpu.trace_start"() <{level = 10 : i32, message = "hqk,hsk->hqs"}> : () -> ()
    %cst_19 = arith.constant dense<0.000000e+00> : vector<4x8x8xf32>
    %27 = tpu.matmul %20, %23, %cst_19 {dimension_numbers = #tpu.dot_dimension_numbers<[2], [2], [1], [1], [0, 0, 0, 1, 1, 1], [0], [0]>} : vector<4x8x8xbf16>, vector<4x8x8xbf16>, vector<4x8x8xf32> -> vector<4x8x8xf32>
    "tpu.trace_stop"() : () -> ()
    %28 = vector.shape_cast %8 : vector<1x8xf32> to vector<1x1x8xf32>
    %29 = vector.broadcast %28 : vector<1x1x8xf32> to vector<4x8x8xf32>
    %30 = arith.addf %27, %29 : vector<4x8x8xf32>
    %31 = tpu.iota {dimensions = array<i32: 0>} : vector<8x8xi32>
    %32 = tpu.iota {dimensions = array<i32: 1>} : vector<8x8xi32>
    %33 = arith.cmpi sgt, %32, %31 : vector<8x8xi32>
    %cst_20 = arith.constant -1.000000e+30 : f32
    %cst_21 = arith.constant 0.000000e+00 : f32
    %34 = vector.broadcast %cst_20 : f32 to vector<8x8xf32>
    %35 = vector.broadcast %cst_21 : f32 to vector<8x8xf32>
    %36 = arith.select %33, %34, %35 : vector<8x8xi1>, vector<8x8xf32>
    %37 = vector.shape_cast %36 : vector<8x8xf32> to vector<1x8x8xf32>
    %38 = vector.broadcast %37 : vector<1x8x8xf32> to vector<4x8x8xf32>
    %39 = arith.addf %30, %38 : vector<4x8x8xf32>
    %cst_22 = arith.constant dense<0xFF800000> : vector<4x8xf32>
    %40 = vector.multi_reduction <maximumf>, %39, %cst_22 [2] : vector<4x8x8xf32> to vector<4x8xf32>
    %41 = vector.shape_cast %40 : vector<4x8xf32> to vector<4x8x1xf32>
    %42 = vector.broadcast %41 : vector<4x8x1xf32> to vector<4x8x8xf32>
    %43 = arith.subf %39, %42 : vector<4x8x8xf32>
    %44 = math.exp %43 : vector<4x8x8xf32>
    %cst_23 = arith.constant dense<0.000000e+00> : vector<4x8xf32>
    %45 = vector.multi_reduction <add>, %44, %cst_23 [2] : vector<4x8x8xf32> to vector<4x8xf32>
    %46 = vector.shape_cast %45 : vector<4x8xf32> to vector<4x8x1xf32>
    %47 = tpu.reciprocal %46 {approx = true} : vector<4x8x1xf32> -> vector<4x8x1xf32>
    %48 = vector.broadcast %47 : vector<4x8x1xf32> to vector<4x8x8xf32>
    %49 = arith.mulf %44, %48 : vector<4x8x8xf32>
    %50 = arith.truncf %49 : vector<4x8x8xf32> to vector<4x8x8xbf16>
    "tpu.trace_start"() <{level = 10 : i32, message = "hqs,hsk->hqk"}> : () -> ()
    %cst_24 = arith.constant dense<0.000000e+00> : vector<4x8x8xf32>
    %51 = tpu.matmul %50, %26, %cst_24 {dimension_numbers = #tpu.dot_dimension_numbers<[2], [1], [1], [2], [0, 0, 0, 1, 1, 2], [0], [0]>} : vector<4x8x8xbf16>, vector<4x8x8xbf16>, vector<4x8x8xf32> -> vector<4x8x8xf32>
    "tpu.trace_stop"() : () -> ()
    %52 = tpu.transpose %51, [1, 0, 2] : vector<4x8x8xf32> -> vector<8x4x8xf32>
    %53 = vector.shape_cast %52 : vector<8x4x8xf32> to vector<8x32xf32>
    %54 = arith.truncf %53 : vector<8x32xf32> to vector<8x32xbf16>
    %c0_25 = arith.constant 0 : index
    %c0_26 = arith.constant 0 : index
    %c0_27 = arith.constant 0 : index
    %55 = vector.load %arg9[%c0_25, %c0_26, %c0_27] : memref<1x32x32xbf16, #tpu.memory_space<vmem>>, vector<1x32x32xbf16>
    %56 = vector.shape_cast %55 : vector<1x32x32xbf16> to vector<32x32xbf16>
    %cst_28 = arith.constant dense<0.000000e+00> : vector<8x32xf32>
    %57 = tpu.matmul %54, %56, %cst_28 {dimension_numbers = #tpu.dot_dimension_numbers<[1], [0], [0], [1], [0, 0, 1, 1], [], []>} : vector<8x32xbf16>, vector<32x32xbf16>, vector<8x32xf32> -> vector<8x32xf32>
    %58 = arith.addf %3, %57 : vector<8x32xf32>
    %c0_29 = arith.constant 0 : index
    %c0_30 = arith.constant 0 : index
    %c0_31 = arith.constant 0 : index
    %59 = vector.load %arg10[%c0_29, %c0_30, %c0_31] : memref<1x1x32xf32, #tpu.memory_space<vmem>>, vector<1x1x32xf32>
    %60 = vector.shape_cast %59 : vector<1x1x32xf32> to vector<1x32xf32>
    %c0_32 = arith.constant 0 : index
    %c0_33 = arith.constant 0 : index
    %c0_34 = arith.constant 0 : index
    %61 = vector.load %arg11[%c0_32, %c0_33, %c0_34] : memref<1x1x32xf32, #tpu.memory_space<vmem>>, vector<1x1x32xf32>
    %62 = vector.shape_cast %61 : vector<1x1x32xf32> to vector<1x32xf32>
    %cst_35 = arith.constant dense<0.000000e+00> : vector<8xf32>
    %63 = vector.multi_reduction <add>, %58, %cst_35 [1] : vector<8x32xf32> to vector<8xf32>
    %64 = vector.shape_cast %63 : vector<8xf32> to vector<8x1xf32>
    %cst_36 = arith.constant 3.200000e+01 : f32
    %65 = vector.broadcast %cst_36 : f32 to vector<8x1xf32>
    %66 = arith.divf %64, %65 : vector<8x1xf32>
    %67 = vector.broadcast %66 : vector<8x1xf32> to vector<8x32xf32>
    %68 = arith.subf %58, %67 : vector<8x32xf32>
    %69 = arith.mulf %68, %68 : vector<8x32xf32>
    %cst_37 = arith.constant dense<0.000000e+00> : vector<8xf32>
    %70 = vector.multi_reduction <add>, %69, %cst_37 [1] : vector<8x32xf32> to vector<8xf32>
    %71 = vector.shape_cast %70 : vector<8xf32> to vector<8x1xf32>
    %cst_38 = arith.constant 3.200000e+01 : f32
    %72 = vector.broadcast %cst_38 : f32 to vector<8x1xf32>
    %73 = arith.divf %71, %72 : vector<8x1xf32>
    %74 = vector.broadcast %66 : vector<8x1xf32> to vector<8x32xf32>
    %75 = arith.subf %58, %74 : vector<8x32xf32>
    %cst_39 = arith.constant 9.99999974E-6 : f32
    %76 = vector.broadcast %cst_39 : f32 to vector<8x1xf32>
    %77 = arith.addf %73, %76 : vector<8x1xf32>
    %78 = math.rsqrt %77 : vector<8x1xf32>
    %79 = vector.broadcast %78 : vector<8x1xf32> to vector<8x32xf32>
    %80 = arith.mulf %75, %79 : vector<8x32xf32>
    %81 = vector.broadcast %60 : vector<1x32xf32> to vector<8x32xf32>
    %82 = arith.mulf %80, %81 : vector<8x32xf32>
    %83 = vector.broadcast %62 : vector<1x32xf32> to vector<8x32xf32>
    %84 = arith.addf %82, %83 : vector<8x32xf32>
    %85 = arith.truncf %84 : vector<8x32xf32> to vector<8x32xbf16>
    %c0_40 = arith.constant 0 : index
    %c0_41 = arith.constant 0 : index
    %c0_42 = arith.constant 0 : index
    %86 = vector.load %arg5[%c0_40, %c0_41, %c0_42] : memref<1x1x8xf32, #tpu.memory_space<vmem>>, vector<1x1x8xf32>
    %87 = vector.shape_cast %86 : vector<1x1x8xf32> to vector<1x8xf32>
    %c0_43 = arith.constant 0 : index
    %c0_44 = arith.constant 0 : index
    %c0_45 = arith.constant 0 : index
    %88 = vector.load %arg12[%c0_43, %c0_44, %c0_45] : memref<1x32x32xbf16, #tpu.memory_space<vmem>>, vector<1x32x32xbf16>
    %89 = vector.shape_cast %88 : vector<1x32x32xbf16> to vector<32x32xbf16>
    %cst_46 = arith.constant dense<0.000000e+00> : vector<8x32xf32>
    %90 = tpu.matmul %85, %89, %cst_46 {dimension_numbers = #tpu.dot_dimension_numbers<[1], [0], [0], [1], [0, 0, 1, 1], [], []>} : vector<8x32xbf16>, vector<32x32xbf16>, vector<8x32xf32> -> vector<8x32xf32>
    %c0_47 = arith.constant 0 : index
    %c0_48 = arith.constant 0 : index
    %c0_49 = arith.constant 0 : index
    %91 = vector.load %arg13[%c0_47, %c0_48, %c0_49] : memref<1x32x32xbf16, #tpu.memory_space<vmem>>, vector<1x32x32xbf16>
    %92 = vector.shape_cast %91 : vector<1x32x32xbf16> to vector<32x32xbf16>
    %cst_50 = arith.constant dense<0.000000e+00> : vector<8x32xf32>
    %93 = tpu.matmul %5, %92, %cst_50 {dimension_numbers = #tpu.dot_dimension_numbers<[1], [0], [0], [1], [0, 0, 1, 1], [], []>} : vector<8x32xbf16>, vector<32x32xbf16>, vector<8x32xf32> -> vector<8x32xf32>
    %c0_51 = arith.constant 0 : index
    %c0_52 = arith.constant 0 : index
    %c0_53 = arith.constant 0 : index
    %94 = vector.load %arg14[%c0_51, %c0_52, %c0_53] : memref<1x32x32xbf16, #tpu.memory_space<vmem>>, vector<1x32x32xbf16>
    %95 = vector.shape_cast %94 : vector<1x32x32xbf16> to vector<32x32xbf16>
    %cst_54 = arith.constant dense<0.000000e+00> : vector<8x32xf32>
    %96 = tpu.matmul %5, %95, %cst_54 {dimension_numbers = #tpu.dot_dimension_numbers<[1], [0], [0], [1], [0, 0, 1, 1], [], []>} : vector<8x32xbf16>, vector<32x32xbf16>, vector<8x32xf32> -> vector<8x32xf32>
    %97 = vector.shape_cast %90 : vector<8x32xf32> to vector<8x4x8xf32>
    %98 = tpu.transpose %97, [1, 0, 2] : vector<8x4x8xf32> -> vector<4x8x8xf32>
    %99 = arith.truncf %98 : vector<4x8x8xf32> to vector<4x8x8xbf16>
    %100 = vector.shape_cast %93 : vector<8x32xf32> to vector<8x4x8xf32>
    %101 = tpu.transpose %100, [1, 0, 2] : vector<8x4x8xf32> -> vector<4x8x8xf32>
    %102 = arith.truncf %101 : vector<4x8x8xf32> to vector<4x8x8xbf16>
    %103 = vector.shape_cast %96 : vector<8x32xf32> to vector<8x4x8xf32>
    %104 = tpu.transpose %103, [1, 0, 2] : vector<8x4x8xf32> -> vector<4x8x8xf32>
    %105 = arith.truncf %104 : vector<4x8x8xf32> to vector<4x8x8xbf16>
    "tpu.trace_start"() <{level = 10 : i32, message = "hqk,hsk->hqs"}> : () -> ()
    %cst_55 = arith.constant dense<0.000000e+00> : vector<4x8x8xf32>
    %106 = tpu.matmul %99, %102, %cst_55 {dimension_numbers = #tpu.dot_dimension_numbers<[2], [2], [1], [1], [0, 0, 0, 1, 1, 1], [0], [0]>} : vector<4x8x8xbf16>, vector<4x8x8xbf16>, vector<4x8x8xf32> -> vector<4x8x8xf32>
    "tpu.trace_stop"() : () -> ()
    %107 = vector.shape_cast %87 : vector<1x8xf32> to vector<1x1x8xf32>
    %108 = vector.broadcast %107 : vector<1x1x8xf32> to vector<4x8x8xf32>
    %109 = arith.addf %106, %108 : vector<4x8x8xf32>
    %cst_56 = arith.constant dense<0xFF800000> : vector<4x8xf32>
    %110 = vector.multi_reduction <maximumf>, %109, %cst_56 [2] : vector<4x8x8xf32> to vector<4x8xf32>
    %111 = vector.shape_cast %110 : vector<4x8xf32> to vector<4x8x1xf32>
    %112 = vector.broadcast %111 : vector<4x8x1xf32> to vector<4x8x8xf32>
    %113 = arith.subf %109, %112 : vector<4x8x8xf32>
    %114 = math.exp %113 : vector<4x8x8xf32>
    %cst_57 = arith.constant dense<0.000000e+00> : vector<4x8xf32>
    %115 = vector.multi_reduction <add>, %114, %cst_57 [2] : vector<4x8x8xf32> to vector<4x8xf32>
    %116 = vector.shape_cast %115 : vector<4x8xf32> to vector<4x8x1xf32>
    %117 = tpu.reciprocal %116 {approx = true} : vector<4x8x1xf32> -> vector<4x8x1xf32>
    %118 = vector.broadcast %117 : vector<4x8x1xf32> to vector<4x8x8xf32>
    %119 = arith.mulf %114, %118 : vector<4x8x8xf32>
    %120 = arith.truncf %119 : vector<4x8x8xf32> to vector<4x8x8xbf16>
    "tpu.trace_start"() <{level = 10 : i32, message = "hqs,hsk->hqk"}> : () -> ()
    %cst_58 = arith.constant dense<0.000000e+00> : vector<4x8x8xf32>
    %121 = tpu.matmul %120, %105, %cst_58 {dimension_numbers = #tpu.dot_dimension_numbers<[2], [1], [1], [2], [0, 0, 0, 1, 1, 2], [0], [0]>} : vector<4x8x8xbf16>, vector<4x8x8xbf16>, vector<4x8x8xf32> -> vector<4x8x8xf32>
    "tpu.trace_stop"() : () -> ()
    %122 = tpu.transpose %121, [1, 0, 2] : vector<4x8x8xf32> -> vector<8x4x8xf32>
    %123 = vector.shape_cast %122 : vector<8x4x8xf32> to vector<8x32xf32>
    %124 = arith.truncf %123 : vector<8x32xf32> to vector<8x32xbf16>
    %c0_59 = arith.constant 0 : index
    %c0_60 = arith.constant 0 : index
    %c0_61 = arith.constant 0 : index
    %125 = vector.load %arg15[%c0_59, %c0_60, %c0_61] : memref<1x32x32xbf16, #tpu.memory_space<vmem>>, vector<1x32x32xbf16>
    %126 = vector.shape_cast %125 : vector<1x32x32xbf16> to vector<32x32xbf16>
    %cst_62 = arith.constant dense<0.000000e+00> : vector<8x32xf32>
    %127 = tpu.matmul %124, %126, %cst_62 {dimension_numbers = #tpu.dot_dimension_numbers<[1], [0], [0], [1], [0, 0, 1, 1], [], []>} : vector<8x32xbf16>, vector<32x32xbf16>, vector<8x32xf32> -> vector<8x32xf32>
    %128 = arith.addf %84, %127 : vector<8x32xf32>
    %c0_63 = arith.constant 0 : index
    %c0_64 = arith.constant 0 : index
    %c0_65 = arith.constant 0 : index
    %129 = vector.load %arg16[%c0_63, %c0_64, %c0_65] : memref<1x1x32xf32, #tpu.memory_space<vmem>>, vector<1x1x32xf32>
    %130 = vector.shape_cast %129 : vector<1x1x32xf32> to vector<1x32xf32>
    %c0_66 = arith.constant 0 : index
    %c0_67 = arith.constant 0 : index
    %c0_68 = arith.constant 0 : index
    %131 = vector.load %arg17[%c0_66, %c0_67, %c0_68] : memref<1x1x32xf32, #tpu.memory_space<vmem>>, vector<1x1x32xf32>
    %132 = vector.shape_cast %131 : vector<1x1x32xf32> to vector<1x32xf32>
    %cst_69 = arith.constant dense<0.000000e+00> : vector<8xf32>
    %133 = vector.multi_reduction <add>, %128, %cst_69 [1] : vector<8x32xf32> to vector<8xf32>
    %134 = vector.shape_cast %133 : vector<8xf32> to vector<8x1xf32>
    %cst_70 = arith.constant 3.200000e+01 : f32
    %135 = vector.broadcast %cst_70 : f32 to vector<8x1xf32>
    %136 = arith.divf %134, %135 : vector<8x1xf32>
    %137 = vector.broadcast %136 : vector<8x1xf32> to vector<8x32xf32>
    %138 = arith.subf %128, %137 : vector<8x32xf32>
    %139 = arith.mulf %138, %138 : vector<8x32xf32>
    %cst_71 = arith.constant dense<0.000000e+00> : vector<8xf32>
    %140 = vector.multi_reduction <add>, %139, %cst_71 [1] : vector<8x32xf32> to vector<8xf32>
    %141 = vector.shape_cast %140 : vector<8xf32> to vector<8x1xf32>
    %cst_72 = arith.constant 3.200000e+01 : f32
    %142 = vector.broadcast %cst_72 : f32 to vector<8x1xf32>
    %143 = arith.divf %141, %142 : vector<8x1xf32>
    %144 = vector.broadcast %136 : vector<8x1xf32> to vector<8x32xf32>
    %145 = arith.subf %128, %144 : vector<8x32xf32>
    %cst_73 = arith.constant 9.99999974E-6 : f32
    %146 = vector.broadcast %cst_73 : f32 to vector<8x1xf32>
    %147 = arith.addf %143, %146 : vector<8x1xf32>
    %148 = math.rsqrt %147 : vector<8x1xf32>
    %149 = vector.broadcast %148 : vector<8x1xf32> to vector<8x32xf32>
    %150 = arith.mulf %145, %149 : vector<8x32xf32>
    %151 = vector.broadcast %130 : vector<1x32xf32> to vector<8x32xf32>
    %152 = arith.mulf %150, %151 : vector<8x32xf32>
    %153 = vector.broadcast %132 : vector<1x32xf32> to vector<8x32xf32>
    %154 = arith.addf %152, %153 : vector<8x32xf32>
    %155 = arith.truncf %154 : vector<8x32xf32> to vector<8x32xbf16>
    %c0_74 = arith.constant 0 : index
    %c0_75 = arith.constant 0 : index
    %c0_76 = arith.constant 0 : index
    %156 = vector.load %arg18[%c0_74, %c0_75, %c0_76] : memref<1x32x64xbf16, #tpu.memory_space<vmem>>, vector<1x32x64xbf16>
    %157 = vector.shape_cast %156 : vector<1x32x64xbf16> to vector<32x64xbf16>
    %cst_77 = arith.constant dense<0.000000e+00> : vector<8x64xf32>
    %158 = tpu.matmul %155, %157, %cst_77 {dimension_numbers = #tpu.dot_dimension_numbers<[1], [0], [0], [1], [0, 0, 1, 1], [], []>} : vector<8x32xbf16>, vector<32x64xbf16>, vector<8x64xf32> -> vector<8x64xf32>
    %c0_78 = arith.constant 0 : index
    %c0_79 = arith.constant 0 : index
    %c0_80 = arith.constant 0 : index
    %159 = vector.load %arg19[%c0_78, %c0_79, %c0_80] : memref<1x1x64xf32, #tpu.memory_space<vmem>>, vector<1x1x64xf32>
    %160 = vector.shape_cast %159 : vector<1x1x64xf32> to vector<1x64xf32>
    %161 = vector.broadcast %160 : vector<1x64xf32> to vector<8x64xf32>
    %162 = arith.addf %158, %161 : vector<8x64xf32>
    %cst_81 = arith.constant 0.000000e+00 : f32
    %163 = vector.broadcast %cst_81 : f32 to vector<8x64xf32>
    %164 = arith.maximumf %162, %163 : vector<8x64xf32>
    %165 = arith.truncf %164 : vector<8x64xf32> to vector<8x64xbf16>
    %c0_82 = arith.constant 0 : index
    %c0_83 = arith.constant 0 : index
    %c0_84 = arith.constant 0 : index
    %166 = vector.load %arg20[%c0_82, %c0_83, %c0_84] : memref<1x64x32xbf16, #tpu.memory_space<vmem>>, vector<1x64x32xbf16>
    %167 = vector.shape_cast %166 : vector<1x64x32xbf16> to vector<64x32xbf16>
    %cst_85 = arith.constant dense<0.000000e+00> : vector<8x32xf32>
    %168 = tpu.matmul %165, %167, %cst_85 {dimension_numbers = #tpu.dot_dimension_numbers<[1], [0], [0], [1], [0, 0, 1, 1], [], []>} : vector<8x64xbf16>, vector<64x32xbf16>, vector<8x32xf32> -> vector<8x32xf32>
    %c0_86 = arith.constant 0 : index
    %c0_87 = arith.constant 0 : index
    %c0_88 = arith.constant 0 : index
    %169 = vector.load %arg21[%c0_86, %c0_87, %c0_88] : memref<1x1x32xf32, #tpu.memory_space<vmem>>, vector<1x1x32xf32>
    %170 = vector.shape_cast %169 : vector<1x1x32xf32> to vector<1x32xf32>
    %171 = vector.broadcast %170 : vector<1x32xf32> to vector<8x32xf32>
    %172 = arith.addf %168, %171 : vector<8x32xf32>
    %173 = arith.addf %154, %172 : vector<8x32xf32>
    %c0_89 = arith.constant 0 : index
    %c0_90 = arith.constant 0 : index
    %c0_91 = arith.constant 0 : index
    %174 = vector.load %arg22[%c0_89, %c0_90, %c0_91] : memref<1x1x32xf32, #tpu.memory_space<vmem>>, vector<1x1x32xf32>
    %175 = vector.shape_cast %174 : vector<1x1x32xf32> to vector<1x32xf32>
    %c0_92 = arith.constant 0 : index
    %c0_93 = arith.constant 0 : index
    %c0_94 = arith.constant 0 : index
    %176 = vector.load %arg23[%c0_92, %c0_93, %c0_94] : memref<1x1x32xf32, #tpu.memory_space<vmem>>, vector<1x1x32xf32>
    %177 = vector.shape_cast %176 : vector<1x1x32xf32> to vector<1x32xf32>
    %cst_95 = arith.constant dense<0.000000e+00> : vector<8xf32>
    %178 = vector.multi_reduction <add>, %173, %cst_95 [1] : vector<8x32xf32> to vector<8xf32>
    %179 = vector.shape_cast %178 : vector<8xf32> to vector<8x1xf32>
    %cst_96 = arith.constant 3.200000e+01 : f32
    %180 = vector.broadcast %cst_96 : f32 to vector<8x1xf32>
    %181 = arith.divf %179, %180 : vector<8x1xf32>
    %182 = vector.broadcast %181 : vector<8x1xf32> to vector<8x32xf32>
    %183 = arith.subf %173, %182 : vector<8x32xf32>
    %184 = arith.mulf %183, %183 : vector<8x32xf32>
    %cst_97 = arith.constant dense<0.000000e+00> : vector<8xf32>
    %185 = vector.multi_reduction <add>, %184, %cst_97 [1] : vector<8x32xf32> to vector<8xf32>
    %186 = vector.shape_cast %185 : vector<8xf32> to vector<8x1xf32>
    %cst_98 = arith.constant 3.200000e+01 : f32
    %187 = vector.broadcast %cst_98 : f32 to vector<8x1xf32>
    %188 = arith.divf %186, %187 : vector<8x1xf32>
    %189 = vector.broadcast %181 : vector<8x1xf32> to vector<8x32xf32>
    %190 = arith.subf %173, %189 : vector<8x32xf32>
    %cst_99 = arith.constant 9.99999974E-6 : f32
    %191 = vector.broadcast %cst_99 : f32 to vector<8x1xf32>
    %192 = arith.addf %188, %191 : vector<8x1xf32>
    %193 = math.rsqrt %192 : vector<8x1xf32>
    %194 = vector.broadcast %193 : vector<8x1xf32> to vector<8x32xf32>
    %195 = arith.mulf %190, %194 : vector<8x32xf32>
    %196 = vector.broadcast %175 : vector<1x32xf32> to vector<8x32xf32>
    %197 = arith.mulf %195, %196 : vector<8x32xf32>
    %198 = vector.broadcast %177 : vector<1x32xf32> to vector<8x32xf32>
    %199 = arith.addf %197, %198 : vector<8x32xf32>
    %c0_100 = arith.constant 0 : index
    %c0_101 = arith.constant 0 : index
    %200 = vector.load %arg25[%c0_100, %c0_101] : memref<8x32xf32, #tpu.memory_space<vmem>>, vector<8x32xf32>
    tpu.vector_store %arg25[%c0_100, %c0_101], %199 {strides = array<i32>} : memref<8x32xf32, #tpu.memory_space<vmem>>, vector<8x32xf32>,
    %c1_i32 = arith.constant 1 : i32
    %201 = arith.cmpi eq, %arg1, %c1_i32 : i32
    %202 = arith.extui %201 : i1 to i32
    %c0_i32_102 = arith.constant 0 : i32
    %203 = arith.cmpi ne, %202, %c0_i32_102 : i32
    scf.if %203 {
      %204 = arith.truncf %199 : vector<8x32xf32> to vector<8x32xbf16>
      %c0_103 = arith.constant 0 : index
      %c0_104 = arith.constant 0 : index
      %c0_105 = arith.constant 0 : index
      %205 = vector.load %arg24[%c0_103, %c0_104, %c0_105] : memref<1x8x32xbf16, #tpu.memory_space<vmem>>, vector<1x8x32xbf16>
      %206 = vector.shape_cast %205 : vector<1x8x32xbf16> to vector<8x32xbf16>
      %207 = vector.shape_cast %204 : vector<8x32xbf16> to vector<1x8x32xbf16>
      tpu.vector_store %arg24[%c0_103, %c0_104, %c0_105], %207 {strides = array<i32>} : memref<1x8x32xbf16, #tpu.memory_space<vmem>>, vector<1x8x32xbf16>,
    } else {
    }
    return
  }
  func.func @transform_0(%arg0: i32, %arg1: i32) -> (i32, i32, i32) {
    %c0_i32 = arith.constant 0 : i32
    %c0_i32_0 = arith.constant 0 : i32
    %c0_i32_1 = arith.constant 0 : i32
    return %arg0, %c0_i32, %c0_i32_0 : i32, i32, i32
  }
  func.func @transform_1(%arg0: i32, %arg1: i32) -> (i32, i32, i32) {
    %c0_i32 = arith.constant 0 : i32
    %c0_i32_0 = arith.constant 0 : i32
    %c0_i32_1 = arith.constant 0 : i32
    return %arg0, %c0_i32, %c0_i32_0 : i32, i32, i32
  }
  func.func @transform_2(%arg0: i32, %arg1: i32) -> (i32, i32, i32) {
    %c0_i32 = arith.constant 0 : i32
    %c0_i32_0 = arith.constant 0 : i32
    %c0_i32_1 = arith.constant 0 : i32
    return %arg0, %c0_i32, %c0_i32_0 : i32, i32, i32
  }
  func.func @transform_3(%arg0: i32, %arg1: i32) -> (i32, i32, i32) {
    %c0_i32 = arith.constant 0 : i32
    %c0_i32_0 = arith.constant 0 : i32
    %c0_i32_1 = arith.constant 0 : i32
    return %arg0, %c0_i32, %c0_i32_0 : i32, i32, i32
  }
  func.func @transform_4(%arg0: i32, %arg1: i32) -> (i32, i32, i32) {
    %c0_i32 = arith.constant 0 : i32
    %c0_i32_0 = arith.constant 0 : i32
    %c0_i32_1 = arith.constant 0 : i32
    return %arg1, %c0_i32, %c0_i32_0 : i32, i32, i32
  }
  func.func @transform_5(%arg0: i32, %arg1: i32) -> (i32, i32, i32) {
    %c0_i32 = arith.constant 0 : i32
    %c0_i32_0 = arith.constant 0 : i32
    %c0_i32_1 = arith.constant 0 : i32
    return %arg1, %c0_i32, %c0_i32_0 : i32, i32, i32
  }
  func.func @transform_6(%arg0: i32, %arg1: i32) -> (i32, i32, i32) {
    %c0_i32 = arith.constant 0 : i32
    %c0_i32_0 = arith.constant 0 : i32
    %c0_i32_1 = arith.constant 0 : i32
    return %arg1, %c0_i32, %c0_i32_0 : i32, i32, i32
  }
  func.func @transform_7(%arg0: i32, %arg1: i32) -> (i32, i32, i32) {
    %c0_i32 = arith.constant 0 : i32
    %c0_i32_0 = arith.constant 0 : i32
    %c0_i32_1 = arith.constant 0 : i32
    return %arg1, %c0_i32, %c0_i32_0 : i32, i32, i32
  }
  func.func @transform_8(%arg0: i32, %arg1: i32) -> (i32, i32, i32) {
    %c0_i32 = arith.constant 0 : i32
    %c0_i32_0 = arith.constant 0 : i32
    %c0_i32_1 = arith.constant 0 : i32
    return %arg1, %c0_i32, %c0_i32_0 : i32, i32, i32
  }
  func.func @transform_9(%arg0: i32, %arg1: i32) -> (i32, i32, i32) {
    %c0_i32 = arith.constant 0 : i32
    %c0_i32_0 = arith.constant 0 : i32
    %c0_i32_1 = arith.constant 0 : i32
    return %arg1, %c0_i32, %c0_i32_0 : i32, i32, i32
  }
  func.func @transform_10(%arg0: i32, %arg1: i32) -> (i32, i32, i32) {
    %c0_i32 = arith.constant 0 : i32
    %c0_i32_0 = arith.constant 0 : i32
    %c0_i32_1 = arith.constant 0 : i32
    return %arg1, %c0_i32, %c0_i32_0 : i32, i32, i32
  }
  func.func @transform_11(%arg0: i32, %arg1: i32) -> (i32, i32, i32) {
    %c0_i32 = arith.constant 0 : i32
    %c0_i32_0 = arith.constant 0 : i32
    %c0_i32_1 = arith.constant 0 : i32
    return %arg1, %c0_i32, %c0_i32_0 : i32, i32, i32
  }
  func.func @transform_12(%arg0: i32, %arg1: i32) -> (i32, i32, i32) {
    %c0_i32 = arith.constant 0 : i32
    %c0_i32_0 = arith.constant 0 : i32
    %c0_i32_1 = arith.constant 0 : i32
    return %arg1, %c0_i32, %c0_i32_0 : i32, i32, i32
  }
  func.func @transform_13(%arg0: i32, %arg1: i32) -> (i32, i32, i32) {
    %c0_i32 = arith.constant 0 : i32
    %c0_i32_0 = arith.constant 0 : i32
    %c0_i32_1 = arith.constant 0 : i32
    return %arg1, %c0_i32, %c0_i32_0 : i32, i32, i32
  }
  func.func @transform_14(%arg0: i32, %arg1: i32) -> (i32, i32, i32) {
    %c0_i32 = arith.constant 0 : i32
    %c0_i32_0 = arith.constant 0 : i32
    %c0_i32_1 = arith.constant 0 : i32
    return %arg1, %c0_i32, %c0_i32_0 : i32, i32, i32
  }
  func.func @transform_15(%arg0: i32, %arg1: i32) -> (i32, i32, i32) {
    %c0_i32 = arith.constant 0 : i32
    %c0_i32_0 = arith.constant 0 : i32
    %c0_i32_1 = arith.constant 0 : i32
    return %arg1, %c0_i32, %c0_i32_0 : i32, i32, i32
  }
  func.func @transform_16(%arg0: i32, %arg1: i32) -> (i32, i32, i32) {
    %c0_i32 = arith.constant 0 : i32
    %c0_i32_0 = arith.constant 0 : i32
    %c0_i32_1 = arith.constant 0 : i32
    return %arg1, %c0_i32, %c0_i32_0 : i32, i32, i32
  }
  func.func @transform_17(%arg0: i32, %arg1: i32) -> (i32, i32, i32) {
    %c0_i32 = arith.constant 0 : i32
    %c0_i32_0 = arith.constant 0 : i32
    %c0_i32_1 = arith.constant 0 : i32
    return %arg1, %c0_i32, %c0_i32_0 : i32, i32, i32
  }
  func.func @transform_18(%arg0: i32, %arg1: i32) -> (i32, i32, i32) {
    %c0_i32 = arith.constant 0 : i32
    %c0_i32_0 = arith.constant 0 : i32
    %c0_i32_1 = arith.constant 0 : i32
    return %arg1, %c0_i32, %c0_i32_0 : i32, i32, i32
  }
  func.func @transform_19(%arg0: i32, %arg1: i32) -> (i32, i32, i32) {
    %c0_i32 = arith.constant 0 : i32
    %c0_i32_0 = arith.constant 0 : i32
    %c0_i32_1 = arith.constant 0 : i32
    return %arg1, %c0_i32, %c0_i32_0 : i32, i32, i32
  }
  func.func @transform_20(%arg0: i32, %arg1: i32) -> (i32, i32, i32) {
    %c0_i32 = arith.constant 0 : i32
    %c0_i32_0 = arith.constant 0 : i32
    %c0_i32_1 = arith.constant 0 : i32
    return %arg1, %c0_i32, %c0_i32_0 : i32, i32, i32
  }
  func.func @transform_21(%arg0: i32, %arg1: i32) -> (i32, i32, i32) {
    %c0_i32 = arith.constant 0 : i32
    %c0_i32_0 = arith.constant 0 : i32
    %c0_i32_1 = arith.constant 0 : i32
    return %arg1, %c0_i32, %c0_i32_0 : i32, i32, i32
  }
  func.func @transform_22(%arg0: i32, %arg1: i32) -> (i32, i32, i32) {
    %c0_i32 = arith.constant 0 : i32
    %c0_i32_0 = arith.constant 0 : i32
    %c0_i32_1 = arith.constant 0 : i32
    return %arg0, %c0_i32, %c0_i32_0 : i32, i32, i32
  }
}

</mosaic_0001>

<bundles_post_ra>
// kernel: transformer_forward.5
= control target key start
LH: loop header
LB: loop body
LE: loop exit
PB: predicated region body
PF: predicated region fallthrough
CT: control target
= control target key end

     0   :  { %v145_v1 = vmov 0.0   ;;  %vm146_vm0 = vmmov 0   ;;  %s177_s0 = inlined_call_operand.vmem [shape: bf16[16,32], index: 0, kind: input, shape index: {}]   ;;  %s178_s1 = inlined_call_operand.vmem [shape: bf16[32,61], index: 1, kind: input, shape index: {}]   ;;  %s179_s2 = inlined_call_operand.hbm [shape: f32[16,61], index: 2, kind: output, shape index: {}]  }
   0x1   :  { %v120_v0 = vld [vmem:[%s178_s1 + $0x8] sm:$0xff]   ;;  %107 = vmatprep.subr.bf16.mxu0 %v145_v1  ;;  %v121_v2 = vld [vmem:[%s178_s1] sm:$0xff]   ;;  %111 = vmatprep.mubr.msk.bf16.mxu0 %vm146_vm0, %v145_v1 }
   0x2   :  { %108 = vmatpush3.bf16.msra.mxu0 %v120_v0 }
   0x3   :  { %109 = vmatprep.subr.bf16.mxu0 %v145_v1 }
   0x4   :  { %7 = vsyncpa [#allocation3], 0  ;;  %v122_v3 = vld [vmem:[%s177_s0] sm:$0xff]   ;;  %vm36_vm1 = vcmask 261120   ;;  %vm81_vm2 = vcmask 498688   ;;  %s147_s15 = smov [#allocation2]  }
   0x5   :  { %s89_s16 = sshll.u32 %s147_s15, 4  ;;  %s90_s16 = int_to_ptr.vmem [resolvable:$true] %s89_s16 }
   0x6   :  { %110 = vmatpush3.bf16.msra.mxu0 %v121_v2  ;;  %s123_s1 = scalar_lea.vmem %s90_s16, 256  ;;  %p128_p1 = scmp.lt.s32.totalorder %s90_s16, %s90_s16 }
   0x7   :  { %p124_p0 = scmp.ne.s32.totalorder %s90_s16, %s123_s1  ;;  %p129_p2 = scmp.lt.s32.totalorder %s123_s1, %s123_s1 }
   0x9   :  { %112 = vmatmul.mubr.msk.bf16.vlgmr.msra.gmra.mxu0 %vm36_vm1, %v122_v3  ;;  %p130_p3 = por %p129_p2, %p128_p1 }
   0xb   :  { %p131_p4 = pnand %p130_p3, %p124_p0 }
  0xc9   :  { %v74_v4 = vpop.f32.mrf.mxu0 }
  0xca   :  { %82 = vst.msk [vmem:[#allocation2] sm:$0xff] %vm81_vm2, %v74_v4 }
  0xcb   :  { %v113_v5 = vpop.f32.mrf.mxu0 }
  0xcd   :  { %v77_v6 = vpop.f32.mrf.mxu0 }
  0xce   :  { %83 = vst.msk [vmem:[#allocation2 + $0x8] sm:$0xff] %vm81_vm2, %v77_v6 }
  0xcf   :  { %v114_v7 = vpop.f32.mrf.mxu0 }
  0xd0   :  { %134 = shalt.err (!%p131_p4)
}
  0xd1   :  { %s148_s0 = smov 128   ;;  %s149_s17 = smov 8  }
  0xd2   :  { %95 = dma.vmem_to_hbm [thread:$0]  %s90_s16, 256, %s179_s2, [#allocation3], %s148_s0, %s148_s0, %s149_s17  }
  0xd3   :  { %143 = dma.done.wait [#allocation3], 256  }
  0xd4   :  { %144 = vsyncadd [#allocation3], 4294967040 }
  0xd5   :  { %99 = vsyncpa [#allocation3], 1 }

// kernel: transformer_forward.3
= control target key start
LH: loop header
LB: loop body
LE: loop exit
PB: predicated region body
PF: predicated region fallthrough
CT: control target
= control target key end

     0   :  { %s2801_s29 = smov 0   ;;  %s2803_s30 = smov 0   ;;  %s3161_s0 = inlined_call_operand.vmem [shape: bf16[2,8,32], index: 0, kind: input, shape index: {}]   ;;  %s3162_s1 = inlined_call_operand.vmem [shape: f32[2,1,8], index: 1, kind: input, shape index: {}]   ;;  %s3163_s2 = inlined_call_operand.vmem [shape: bf16[2,32,32], index: 2, kind: input, shape index: {}]   ;;  %s3164_s3 = inlined_call_operand.vmem [shape: bf16[2,32,32], index: 3, kind: input, shape index: {}]   ;;  %s3165_s4 = inlined_call_operand.vmem [shape: bf16[2,32,32], index: 4, kind: input, shape index: {}]   ;;  %s3166_s5 = inlined_call_operand.vmem [shape: bf16[2,32,32], index: 5, kind: input, shape index: {}]   ;;  %s3167_s6 = inlined_call_operand.vmem [shape: f32[2,1,32], index: 6, kind: input, shape index: {}]   ;;  %s3168_s7 = inlined_call_operand.vmem [shape: f32[2,1,32], index: 7, kind: input, shape index: {}]   ;;  %s3169_s8 = inlined_call_operand.vmem [shape: bf16[2,32,64], index: 8, kind: input, shape index: {}]   ;;  %s3170_s9 = inlined_call_operand.vmem [shape: f32[2,1,64], index: 9, kind: input, shape index: {}]   ;;  %s3171_s10 = inlined_call_operand.vmem [shape: bf16[2,64,32], index: 10, kind: input, shape index: {}]   ;;  %s3172_s11 = inlined_call_operand.vmem [shape: f32[2,1,32], index: 11, kind: input, shape index: {}]   ;;  %s3173_s12 = inlined_call_operand.vmem [shape: f32[2,1,32], index: 12, kind: input, shape index: {}]   ;;  %s3174_s13 = inlined_call_operand.vmem [shape: f32[2,1,32], index: 13, kind: input, shape index: {}]   ;;  %s3175_s14 = inlined_call_operand.vmem [shape: bf16[2,8,32], index: 14, kind: output, shape index: {}]  }
   0x1   :  { %3181 = sst [smem:[#allocation10_spill]] %s3161_s0  ;;  %s2805_s15 = smov 0  }
   0x2   :  { %3182 = sst [smem:[#allocation11_spill]] %s3162_s1  ;;  %s2807_s16 = smov 0  }
   0x3   :  { %3183 = sst [smem:[#allocation12_spill]] %s3163_s2  ;;  %s2809_s17 = smov 0  }
   0x4   :  { %3184 = sst [smem:[#allocation13_spill]] %s3164_s3 }
   0x5   :  { %3185 = sst [smem:[#allocation14_spill]] %s3165_s4 }
   0x6   :  { %3186 = sst [smem:[#allocation15_spill]] %s3166_s5 }
   0x7   :  { %3187 = sst [smem:[#allocation16_spill]] %s3169_s8 }
   0x8   :  { %3188 = sst [smem:[#allocation17_spill]] %s3170_s9 }
   0x9   :  { %3189 = sst [smem:[#allocation18_spill]] %s3174_s13 }
   0xa   :  { %3190 = sst [smem:[#allocation19_spill]] %s3175_s14 }
   0xb LB: > { %3191 = sst [smem:[#allocation3_spill]] %s2698_s29  ;;  %s33_s18 = sadd.s32 1, %s2706_s15  ;;  %s2714_s17 = sphi %s2809_s17, %s24_s17   ;;  %s2710_s16 = sphi %s2807_s16, %s3222_s16   ;;  %s2706_s15 = sphi %s2805_s15, %s3221_s15   ;;  %s2702_s30 = sphi %s2803_s30, %s3220_s30   ;;  %s2698_s29 = sphi %s2801_s29, %s3219_s29  }
   0xc   : > { %3192 = sst [smem:[#allocation4_spill]] %s2706_s15  ;;  %s36_s19 = sadd.s32 1, %s2710_s16 }
   0xd   : > { %3193 = sst [smem:[#allocation5_spill]] %s2710_s16  ;;  %p34_p0 = scmp.ge.s32.totalorder %s33_s18, 2 }
   0xe   : > { %3194 = sst [smem:[#allocation6_spill]] %s2714_s17  ;;  %p2388_p1 = scmp.ge.s32.totalorder %s2714_s17, 1 }
   0xf   : > { %p539_p2 = scmp.lt.s32.totalorder %s2714_s17, 5  ;;  %s3224_s18 = smov (%p34_p0, %s33_s18), 0 }
  0x10   : > { %3195 = sst [smem:[#allocation7_spill]] %s3224_s18  ;;  %s3226_s19 = smov (!%p34_p0, %s36_s19), %s2710_s16 }
  0x11   : > { %p540_p3 = pnand %p2388_p1, %p539_p2  ;;  %p38_p4 = scmp.ge.s32.totalorder %s3226_s19, 2 }
  0x13   : > { %s3228_s19 = smov (%p38_p4, %s3226_s19), 0  ;;  %543 = sbr.rel (%p540_p3) target bundleno = 2511 (0x9cf), region = 76 }
  0x14   : > { %3196 = sst [smem:[#allocation8_spill]] %s3228_s19 }
  0x18   : > { %p634_p5 = scmp.lt.s32.totalorder %s2702_s30, 1  ;;  %p641_p6 = scmp.lt.s32.totalorder %s2698_s29, 1 }
  0x19   : > { %s3198_s0 = sld [smem:[#allocation10_spill]] }
  0x1a   : > { %s3230_s30 = smov (!%p634_p5, %s2702_s30), 1  ;;  %s3199_s2 = sld [smem:[#allocation12_spill]] }
  0x1b   : > { %s2837_s20 = scalar_select %p641_p6, %s2698_s29, 1 }
  0x1c   : > { %s2389_s21 = sshll.u32 %s3230_s30, 2  ;;  %s3200_s3 = sld [smem:[#allocation13_spill]] }
  0x1d   : > { %s2450_s28 = sshll.u32 %s2837_s20, 4  ;;  %s3201_s4 = sld [smem:[#allocation14_spill]] }
  0x1e   : > { %s3202_s5 = sld [smem:[#allocation15_spill]]  ;;  %s2455_s24 = sshll.u32 %s2837_s20, 5 }
  0x1f   : > { %s637_s27 = scalar_lea.vmem %s3198_s0, %s2389_s21  ;;  %s3204_s8 = sld [smem:[#allocation16_spill]] }
  0x20   : > { %s2851_s16 = scalar_lea.vmem %s3199_s2, %s2450_s28  ;;  %s2891_s18 = scalar_lea.vmem %s3171_s10, %s2455_s24 }
  0x21   : > { %s685_s15 = scalar_lea.vmem %s3173_s12, %s2837_s20  ;;  %s3206_s1 = sld [smem:[#allocation18_spill]] }
  0x22   : > { %s650_s29 = scalar_lea.vmem %s3200_s3, %s2450_s28 }
  0x23   : > { %s2859_s22 = scalar_lea.vmem %s3201_s4, %s2450_s28  ;;  %s3207_s4 = sld [smem:[#allocation19_spill]] }
  0x24   : > { %s2864_s25 = scalar_lea.vmem %s3202_s5, %s2450_s28  ;;  %s3208_s5 = sld [smem:[#allocation3_spill]] }
  0x25   : > { %3203 = sst [smem:[#allocation9_spill]] %s2864_s25  ;;  %s2877_s3 = scalar_lea.vmem %s3204_s8, %s2450_s28 }
  0x26   : > { %s682_s25 = scalar_lea.vmem %s3172_s11, %s2837_s20 }
  0x27   : > { %s688_s8 = scalar_lea.vmem %s3206_s1, %s2837_s20 }
  0x29   : > { %s2904_s9 = scalar_lea.vmem %s3207_s4, %s2389_s21 }
  0x2a   : > { %p2403_p7 = scmp.ne.s32.totalorder %s3208_s5, 0 }
  0x2c   : > { %697 = sbr.rel (%p2403_p7) target bundleno = 53 (0x35), region = 80 }
  0x31   : > { %v698_v0 = vld [vmem:[%s637_s27] sm:$0xf]  ;;  %vm700_vm0 = vcmask 261120  }
  0x32   : > { %v699_v1 = vunpack.c.l.bf16 %v698_v0 }
  0x34   : > { %701 = vst.msk [vmem:[#allocation2] sm:$0xff] %vm700_vm0, %v699_v1 }
  0x35 PF: > { %v2642_v2 = vld [vmem:[%s650_s29 + $0x8] sm:$0xff]   ;;  %v2716_v3 = vmov 0.0   ;;  %v2644_v5 = vld [vmem:[%s650_s29] sm:$0xff]   ;;  %vm2717_vm1 = vmmov 0   ;;  %vm721_vm2 = vcmask 261120   ;;  %s2718_s1 = smov 104   ;;  %v892_v21 = vlaneseq  ;;  %s3212_s2 = scalar_lea.vmem %s3167_s6, %s2837_s20 }
  0x36   : > { %2500 = vmatprep.subr.bf16.mxu1 %v2716_v3  ;;  %2492 = vmatprep.subr.bf16.mxu0 %v2716_v3  ;;  %v2643_v4 = vld [vmem:[%s2851_s16 + $0x8] sm:$0xff]   ;;  %v2645_v6 = vld [vmem:[%s2851_s16] sm:$0xff]   ;;  %s2719_s4 = smov 120   ;;  %s2720_s29 = smov 112   ;;  %v2721_v19 = vmov 1983009808  }
  0x37   : > { %2501 = vmatpush3.bf16.msra.mxu1 %v2642_v2  ;;  %2504 = vmatprep.mubr.msk.bf16.mxu1 %vm2717_vm1, %v2716_v3  ;;  %v2646_v9 = vld [vmem:[%s2859_s22 + $0x8] sm:$0xff]   ;;  %v2647_v13 = vld [vmem:[%s2859_s22] sm:$0xff]   ;;  %v890_v20 = vunpack.c.l.s4 %v2721_v19  ;;  %v2722_v22 = vmov 1934713408   ;;  %v893_v25 = vshrl.u32 %v892_v21, 7  ;;  %vm1333_vm3 = vcmask 64512   ;;  %s3213_s17 = scalar_lea.vmem %s3168_s7, %s2837_s20 }
  0x38   : > { %2493 = vmatpush3.bf16.msra.mxu0 %v2643_v4  ;;  %2502 = vmatprep.subr.bf16.mxu1 %v2716_v3  ;;  %v922_v23 = vunpack.c.l.s4 %v2722_v22  ;;  %s3209_s27 = sld [smem:[#allocation11_spill]]  ;;  %vm1569_vm4 = vcmask 1043456   ;;  %s2723_s24 = smov 16   ;;  %vm1900_vm5 = vcmask 130048   ;;  %vm1902_vm6 = vcmask 195584  }
  0x39   : > { %2494 = vmatprep.subr.bf16.mxu0 %v2716_v3  ;;  %2496 = vmatprep.mubr.msk.bf16.mxu0 %vm2717_vm1, %v2716_v3  ;;  %v891_v24 = vunpack.c.0.s8 %v890_v20  ;;  %s2724_s23 = smov 8   ;;  %s2725_s0 = smov 24   ;;  %vm2103_vm7 = vcmask 523264  }
  0x3a   : > { %v923_v28 = vunpack.c.0.s8 %v922_v23  ;;  %s3214_s5 = sld [smem:[#allocation17_spill]] }
  0x3b   : > { %v2915_v7 = vld [vmem:[#allocation2] sm:$0xff]  ;;  %2503 = vmatpush3.bf16.msra.mxu1 %v2644_v5  ;;  %v2942_v29 = vsub.s32 %v891_v24, %v893_v25 }
  0x3c   : > { %v703_v8 = vpack.c.bf16 %v2915_v7, %v2915_v7  ;;  %2495 = vmatpush3.bf16.msra.mxu0 %v2645_v6  ;;  %2516 = vmatprep.subr.bf16.mxu1 %v2716_v3  ;;  %v2944_v36 = vsub.s32 %v923_v28, %v893_v25 }
  0x3d   : > { %2508 = vmatprep.subr.bf16.mxu0 %v2716_v3 }
  0x3e   : > { %2505 = vmatmul.mubr.msk.bf16.vlgmr.msra.gmra.mxu1 %vm721_vm2, %v703_v8  ;;  %s3210_s22 = scalar_lea.vmem %s3209_s27, %s3230_s30  ;;  %s3211_s30 = sld [smem:[#allocation9_spill]] }
  0x3f   : > { %2497 = vmatmul.mubr.msk.bf16.vlgmr.msra.gmra.mxu0 %vm721_vm2, %v703_v8  ;;  %2518 = vmatprep.mubr.msk.bf16.mxu1 %vm2717_vm1, %v2716_v3 }
  0x40   : > { %2512 = vmatprep.mubr.msk.bf16.mxu0 %vm2717_vm1, %v2716_v3  ;;  %2509 = vmatpush3.bf16.msra.mxu0 %v2646_v9 }
  0x41   : > { %2510 = vmatprep.subr.bf16.mxu0 %v2716_v3 }
  0x44   : > { %2511 = vmatpush3.bf16.msra.mxu0 %v2647_v13 }
  0x45   : > { %2522 = vmatprep.subr.bf16.mxu0 %v2716_v3 }
  0x47   : > { %2513 = vmatmul.mubr.msk.bf16.vlgmr.msra.gmra.mxu0 %vm721_vm2, %v703_v8 }
  0x48   : > { %2524 = vmatprep.mubr.msk.bf16.mxu0 %vm2717_vm1, %v2716_v3 }
  0xfe   : > { %v815_v10 = vpop.f32.mrf.mxu1 }
  0xff   : > { %1034 = vrot.lane.b32.xlu1 %v815_v10, %s2718_s1  ;;  %1028 = vrot.lane.b32.xlu0 %v815_v10, %s2719_s4  ;;  %v759_v11 = vpop.f32.mrf.mxu0 }
 0x100   : > { %v2506_v12 = vpop.f32.mrf.mxu1 }
 0x101   : > { %v2498_v14 = vpop.f32.mrf.mxu0 }
 0x102   : > { %v818_v15 = vpop.f32.mrf.mxu1 }
 0x103   : > { %1031 = vrot.lane.b32.xlu0 %v815_v10, %s2720_s29  ;;  %878 = vrot.lane.b32.xlu1 %v759_v11, %s2719_s4  ;;  %v762_v16 = vpop.f32.mrf.mxu0 }
 0x104   : > { %v2507_v17 = vpop.f32.mrf.mxu1 }
 0x105   : > { %v2499_v18 = vpop.f32.mrf.mxu0 }
 0x107   : > { %881 = vrot.lane.b32.xlu0 %v759_v11, %s2720_s29  ;;  %884 = vrot.lane.b32.xlu1 %v759_v11, %s2718_s1 }
 0x171   : > { %v1035_v26 = vpop.permute.xlu1 %1034  ;;  %v1029_v27 = vpop.permute.xlu0 %1028 }
 0x172   : > { %v1053_v30 = vcombine.low %v1029_v27, %v1035_v26  ;;  %v1054_v31 = vcombine.high %v1029_v27, %v1035_v26 }
 0x174   : > { %v1061_v37 = vrot.slane %v1053_v30, %v2942_v29  ;;  %v1068_v38 = vrot.slane %v1054_v31, %v2942_v29 }
 0x175   : > { %v1032_v32 = vpop.permute.xlu0 %1031  ;;  %v879_v33 = vpop.permute.xlu1 %878 }
 0x176   : > { %v1037_v34 = vcombine.low %v815_v10, %v1032_v32  ;;  %v1038_v35 = vcombine.high %v815_v10, %v1032_v32 }
 0x178   : > { %v1045_v39 = vrot.slane %v1037_v34, %v2942_v29  ;;  %v1052_v40 = vrot.slane %v1038_v35, %v2942_v29 }
 0x179   : > { %v882_v41 = vpop.permute.xlu0 %881  ;;  %v885_v42 = vpop.permute.xlu1 %884 }
 0x17a   : > { %v1069_v43 = vcombine.low %v1045_v39, %v1061_v37  ;;  %v1070_v44 = vcombine.high %v1045_v39, %v1061_v37  ;;  %v1085_v45 = vcombine.low %v1052_v40, %v1068_v38  ;;  %v1086_v46 = vcombine.high %v1052_v40, %v1068_v38 }
 0x17b   : > { %v887_v47 = vcombine.low %v759_v11, %v882_v41  ;;  %v888_v48 = vcombine.high %v759_v11, %v882_v41  ;;  %v903_v49 = vcombine.low %v879_v33, %v885_v42  ;;  %v904_v50 = vcombine.high %v879_v33, %v885_v42 }
 0x17c   : > { %v1077_v51 = vrot.slane %v1069_v43, %v2944_v36  ;;  %v1084_v52 = vrot.slane %v1070_v44, %v2944_v36  ;;  %v1093_v53 = vrot.slane %v1085_v45, %v2944_v36  ;;  %v1100_v54 = vrot.slane %v1086_v46, %v2944_v36 }
 0x17d   : > { %v895_v55 = vrot.slane %v887_v47, %v2942_v29  ;;  %v902_v56 = vrot.slane %v888_v48, %v2942_v29  ;;  %v911_v57 = vrot.slane %v903_v49, %v2942_v29  ;;  %v918_v58 = vrot.slane %v904_v50, %v2942_v29 }
 0x17e   : > { %v1105_v59 = vcombine.low %v1077_v51, %v1084_v52  ;;  %v2415_v60 = vcombine.high %v1077_v51, %v1084_v52  ;;  %v1121_v61 = vcombine.low %v1093_v53, %v1100_v54  ;;  %v2416_v62 = vcombine.high %v1093_v53, %v1100_v54 }
 0x17f   : > { %v919_v63 = vcombine.low %v895_v55, %v911_v57  ;;  %v920_v0 = vcombine.high %v895_v55, %v911_v57  ;;  %v935_v1 = vcombine.low %v902_v56, %v918_v58  ;;  %v936_v2 = vcombine.high %v902_v56, %v918_v58 }
 0x180   : > { %v1112_v4 = vrot.slane %v1105_v59, %v2942_v29  ;;  %v1120_v5 = vrot.slane %v2415_v60, %v2942_v29  ;;  %v1128_v6 = vrot.slane %v1121_v61, %v2942_v29  ;;  %v1136_v8 = vrot.slane %v2416_v62, %v2942_v29  ;;  %v2998_v59 = vpop.f32.mrf.mxu0 }
 0x181   : > { %v927_v9 = vrot.slane %v919_v63, %v2944_v36  ;;  %v934_v10 = vrot.slane %v920_v0, %v2944_v36  ;;  %v943_v11 = vrot.slane %v935_v1, %v2944_v36  ;;  %v950_v12 = vrot.slane %v936_v2, %v2944_v36  ;;  %v2419_v63 = vld [vmem:[%s3210_s22] ss:$0 sm:$0xff]  ;;  %s3217_s22 = sld [smem:[#allocation3_spill]] }
 0x182   : > { %v1137_v13 = vcombine.low %v1112_v4, %v1120_v5  ;;  %v1153_v14 = vcombine.low %v1128_v6, %v1136_v8  ;;  %v1138_v15 = vcombine.high %v1112_v4, %v1120_v5  ;;  %v1154_v16 = vcombine.high %v1128_v6, %v1136_v8  ;;  %v2514_v60 = vpop.f32.mrf.mxu0 }
 0x183   : > { %v955_v17 = vcombine.low %v927_v9, %v934_v10  ;;  %v2413_v18 = vcombine.high %v927_v9, %v934_v10  ;;  %v971_v19 = vcombine.low %v943_v11, %v950_v12  ;;  %v2414_v20 = vcombine.high %v943_v11, %v950_v12 }
 0x184   : > { %v1145_v21 = vrot.slane %v1137_v13, %v2944_v36  ;;  %v1161_v22 = vrot.slane %v1153_v14, %v2944_v36  ;;  %v1152_v30 = vrot.slane %v1138_v15, %v2944_v36  ;;  %v1168_v31 = vrot.slane %v1154_v16, %v2944_v36  ;;  %v874_v61 = vpop.f32.mrf.mxu0 }
 0x185   : > { %v962_v23 = vrot.slane %v955_v17, %v2942_v29  ;;  %v970_v24 = vrot.slane %v2413_v18, %v2942_v29  ;;  %v978_v25 = vrot.slane %v971_v19, %v2942_v29  ;;  %v986_v26 = vrot.slane %v2414_v20, %v2942_v29 }
 0x186   : > { %v1169_v27 = vcombine.low %v1145_v21, %v1161_v22  ;;  %v1170_v28 = vcombine.high %v1145_v21, %v1161_v22  ;;  %v1171_v41 = vcombine.low %v1152_v30, %v1168_v31  ;;  %v1172_v42 = vcombine.high %v1152_v30, %v1168_v31  ;;  %v2515_v62 = vpop.f32.mrf.mxu0 }
 0x187   : > { %v987_v32 = vcombine.low %v962_v23, %v970_v24  ;;  %v1003_v33 = vcombine.low %v978_v25, %v986_v26  ;;  %v988_v43 = vcombine.high %v962_v23, %v970_v24  ;;  %v1004_v44 = vcombine.high %v978_v25, %v986_v26  ;;  %p2447_p8 = scmp.ne.s32.totalorder %s3217_s22, 1 }
 0x188   : > { %v1173_v34 = vpack.c.bf16 %v1169_v27, %v1169_v27  ;;  %v1174_v35 = vpack.c.bf16 %v1170_v28, %v1170_v28  ;;  %v1175_v47 = vpack.c.bf16 %v1171_v41, %v1171_v41  ;;  %v1176_v48 = vpack.c.bf16 %v1172_v42, %v1172_v42 }
 0x189   : > { %v995_v37 = vrot.slane %v987_v32, %v2944_v36  ;;  %v1011_v38 = vrot.slane %v1003_v33, %v2944_v36  ;;  %v1002_v51 = vrot.slane %v988_v43, %v2944_v36  ;;  %v1018_v52 = vrot.slane %v1004_v44, %v2944_v36 }
 0x18a   : > { %v1338_v39 = vsel %vm1333_vm3, %v1173_v34, 0  ;;  %v1384_v40 = vsel %vm1333_vm3, %v1174_v35, 0  ;;  %v1430_v53 = vsel %vm1333_vm3, %v1175_v47, 0  ;;  %v1476_v54 = vsel %vm1333_vm3, %v1176_v48, 0 }
 0x18b   : > { %2517 = vmatpush3.bf16.xpose.msra.mxu1 %v1338_v39  ;;  %2523 = vmatpush3.bf16.xpose.msra.mxu0 %v1384_v40  ;;  %v1019_v45 = vcombine.low %v995_v37, %v1011_v38  ;;  %v1020_v46 = vcombine.high %v995_v37, %v1011_v38  ;;  %v1021_v55 = vcombine.low %v1002_v51, %v1018_v52 }
 0x18c   : > { %2528 = vmatprep.subr.bf16.mxu1 %v2716_v3  ;;  %2534 = vmatprep.subr.bf16.mxu0 %v2716_v3  ;;  %v1022_v56 = vcombine.high %v1002_v51, %v1018_v52 }
 0x18d   : > { %v1023_v49 = vpack.c.bf16 %v1019_v45, %v1019_v45  ;;  %v1024_v50 = vpack.c.bf16 %v1020_v46, %v1020_v46  ;;  %v1025_v57 = vpack.c.bf16 %v1021_v55, %v1021_v55 }
 0x18e   : > { %v1026_v58 = vpack.c.bf16 %v1022_v56, %v1022_v56 }
 0x192   : > { %2519 = vmatmul.mubr.msk.bf16.vlgmr.msra.gmra.mxu1 %vm1333_vm3, %v1023_v49  ;;  %2525 = vmatmul.mubr.msk.bf16.vlgmr.msra.gmra.mxu0 %vm1333_vm3, %v1024_v50 }
 0x193   : > { %2529 = vmatpush3.bf16.xpose.msra.mxu1 %v1430_v53  ;;  %2535 = vmatpush3.bf16.xpose.msra.mxu0 %v1476_v54 }
 0x194   : > { %2530 = vmatprep.mubr.msk.bf16.mxu1 %vm2717_vm1, %v2716_v3  ;;  %2536 = vmatprep.mubr.msk.bf16.mxu0 %vm2717_vm1, %v2716_v3 }
 0x195   : > { %2540 = vmatprep.subr.bf16.mxu1 %v2716_v3  ;;  %2546 = vmatprep.subr.bf16.mxu0 %v2716_v3 }
 0x19a   : > { %2531 = vmatmul.mubr.msk.bf16.vlgmr.msra.gmra.mxu1 %vm1333_vm3, %v1025_v57  ;;  %2537 = vmatmul.mubr.msk.bf16.vlgmr.msra.gmra.mxu0 %vm1333_vm3, %v1026_v58 }
 0x19b   : > { %2542 = vmatprep.mubr.msk.bf16.mxu1 %vm2717_vm1, %v2716_v3  ;;  %2548 = vmatprep.mubr.msk.bf16.mxu0 %vm2717_vm1, %v2716_v3 }
 0x252   : > { %v1374_v0 = vpop.f32.mrf.mxu1  ;;  %v1420_v1 = vpop.f32.mrf.mxu0 }
 0x253   : > { %v1375_v2 = vadd.f32 %v2419_v63, %v1374_v0  ;;  %v1421_v4 = vadd.f32 %v2419_v63, %v1420_v1 }
 0x254   : > { %v2520_v5 = vpop.f32.mrf.mxu1  ;;  %v2526_v6 = vpop.f32.mrf.mxu0 }
 0x255   : > { %v1518_v8 = vsel %vm1333_vm3, %v1375_v2, -inf  ;;  %v1521_v9 = vsel %vm1333_vm3, %v1421_v4, -inf }
 0x256   : > { %1519 = vmax.xlane.f32.xlu0 %v1518_v8  ;;  %v1377_v10 = vpop.f32.mrf.mxu1  ;;  %1522 = vmax.xlane.f32.xlu1 %v1521_v9  ;;  %v1423_v11 = vpop.f32.mrf.mxu0 }
 0x258   : > { %v2521_v12 = vpop.f32.mrf.mxu1  ;;  %v2527_v13 = vpop.f32.mrf.mxu0 }
 0x25a   : > { %v1466_v14 = vpop.f32.mrf.mxu1  ;;  %v1512_v15 = vpop.f32.mrf.mxu0 }
 0x25b   : > { %v1467_v16 = vadd.f32 %v2419_v63, %v1466_v14  ;;  %v1513_v19 = vadd.f32 %v2419_v63, %v1512_v15 }
 0x25c   : > { %v2532_v17 = vpop.f32.mrf.mxu1  ;;  %v2538_v18 = vpop.f32.mrf.mxu0 }
 0x25d   : > { %v1524_v20 = vsel %vm1333_vm3, %v1467_v16, -inf  ;;  %v1527_v25 = vsel %vm1333_vm3, %v1513_v19, -inf }
 0x25e   : > { %1525 = vmax.xlane.f32.xlu0 %v1524_v20  ;;  %v1469_v21 = vpop.f32.mrf.mxu1  ;;  %v1515_v22 = vpop.f32.mrf.mxu0 }
 0x260   : > { %v2533_v23 = vpop.f32.mrf.mxu1  ;;  %v2539_v24 = vpop.f32.mrf.mxu0 }
 0x262   : > { %1528 = vmax.xlane.f32.xlu0 %v1527_v25 }
 0x267   : > { %1178 = vrot.lane.b32.xlu1 %v2998_v59, %s2719_s4 }
 0x2df   : > { %v1520_v26 = vpop.xlane.xlu0 %1519  ;;  %v1523_v27 = vpop.xlane.xlu1 %1522 }
 0x2e0   : > { %v1530_v28 = vsub.f32 %v1375_v2, %v1520_v26  ;;  %v1531_v30 = vsub.f32 %v1421_v4, %v1523_v27 }
 0x2e2   : > { %v1534_v31 = vmul.f32 1.442695, %v1530_v28  ;;  %v1536_v32 = vmul.f32 1.442695, %v1531_v30 }
 0x2e3   : > { %v1179_v48 = vpop.permute.xlu1 %1178 }
 0x2e4   : > { %2656 = vpow2.f32 %v1534_v31 }
 0x2e5   : > { %2658 = vpow2.f32 %v1536_v32 }
 0x2e7   : > { %v1526_v38 = vpop.xlane.xlu0 %1525 }
 0x2e8   : > { %v1532_v40 = vsub.f32 %v1467_v16, %v1526_v38 }
 0x2ea   : > { %v1538_v42 = vmul.f32 1.442695, %v1532_v40 }
 0x2eb   : > { %v1529_v39 = vpop.xlane.xlu0 %1528 }
 0x2ec   : > { %v1533_v41 = vsub.f32 %v1513_v19, %v1529_v39  ;;  %2660 = vpow2.f32 %v1538_v42 }
 0x2ee   : > { %v1540_v43 = vmul.f32 1.442695, %v1533_v41 }
 0x2f0   : > { %2662 = vpow2.f32 %v1540_v43 }
 0x2f1   : > { %v3011_v33 = vpop.eup %2656 }
 0x2f2   : > { %v3013_v34 = vpop.eup %2658  ;;  %v1542_v35 = vsel %vm1333_vm3, %v3011_v33, 0.0 }
 0x2f3   : > { %1543 = vadd.xlane.f32.xlu1 %v1542_v35  ;;  %v1545_v37 = vsel %vm1333_vm3, %v3013_v34, 0.0 }
 0x2f4   : > { %1546 = vadd.xlane.f32.xlu0 %v1545_v37 }
 0x2f9   : > { %v3023_v44 = vpop.eup %2660 }
 0x2fa   : > { %v1548_v46 = vsel %vm1333_vm3, %v3023_v44, 0.0 }
 0x2fd   : > { %v3025_v45 = vpop.eup %2662 }
 0x2fe   : > { %v1551_v47 = vsel %vm1333_vm3, %v3025_v45, 0.0 }
 0x304   : > { %1184 = vrot.lane.b32.xlu1 %v2998_v59, %s2718_s1  ;;  %s3215_s1 = scalar_lea.vmem %s3214_s5, %s2837_s20 }
 0x30a   : > { %1181 = vrot.lane.b32.xlu0 %v2998_v59, %s2720_s29 }
 0x328   : > { %1549 = vadd.xlane.f32.xlu1 %v1548_v46 }
 0x329   : > { %1552 = vadd.xlane.f32.xlu0 %v1551_v47 }
 0x37c   : > { %v1544_v49 = vpop.xlane.xlu1 %1543 }
 0x37d   : > { %v1547_v50 = vpop.xlane.xlu0 %1546  ;;  %2664 = vrcp.f32 %v1544_v49 }
 0x37e   : > { %2666 = vrcp.f32 %v1547_v50 }
 0x380   : > { %v1185_v51 = vpop.permute.xlu1 %1184 }
 0x381   : > { %v1203_v52 = vcombine.low %v1179_v48, %v1185_v51  ;;  %v1204_v53 = vcombine.high %v1179_v48, %v1185_v51  ;;  %v1182_v54 = vpop.permute.xlu0 %1181 }
 0x382   : > { %v1187_v55 = vcombine.low %v2998_v59, %v1182_v54  ;;  %v1188_v56 = vcombine.high %v2998_v59, %v1182_v54 }
 0x383   : > { %v1211_v57 = vrot.slane %v1203_v52, %v2942_v29  ;;  %v1218_v58 = vrot.slane %v1204_v53, %v2942_v29 }
 0x384   : > { %v1195_v60 = vrot.slane %v1187_v55, %v2942_v29  ;;  %v1202_v61 = vrot.slane %v1188_v56, %v2942_v29 }
 0x386   : > { %v1219_v62 = vcombine.low %v1195_v60, %v1211_v57  ;;  %v1220_v63 = vcombine.high %v1195_v60, %v1211_v57  ;;  %v1235_v0 = vcombine.low %v1202_v61, %v1218_v58  ;;  %v1236_v1 = vcombine.high %v1202_v61, %v1218_v58 }
 0x388   : > { %v1227_v2 = vrot.slane %v1219_v62, %v2944_v36  ;;  %v1234_v4 = vrot.slane %v1220_v63, %v2944_v36  ;;  %v1243_v59 = vrot.slane %v1235_v0, %v2944_v36  ;;  %v1250_v5 = vrot.slane %v1236_v1, %v2944_v36 }
 0x38a   : > { %v1255_v6 = vcombine.low %v1227_v2, %v1234_v4  ;;  %v2417_v8 = vcombine.high %v1227_v2, %v1234_v4  ;;  %v1271_v9 = vcombine.low %v1243_v59, %v1250_v5  ;;  %v2418_v10 = vcombine.high %v1243_v59, %v1250_v5  ;;  %v2665_v19 = vpop.eup %2664 }
 0x38b   : > { %v2667_v24 = vpop.eup %2666  ;;  %v1558_v32 = vmul.f32 %v2665_v19, %v3011_v33 }
 0x38c   : > { %v1262_v11 = vrot.slane %v1255_v6, %v2942_v29  ;;  %v1270_v12 = vrot.slane %v2417_v8, %v2942_v29  ;;  %v1278_v13 = vrot.slane %v1271_v9, %v2942_v29  ;;  %v1286_v14 = vrot.slane %v2418_v10, %v2942_v29 }
 0x38d   : > { %v1559_v35 = vmul.f32 %v2667_v24, %v3013_v34  ;;  %v1562_v41 = vpack.c.bf16 %v1558_v32, %v1558_v32 }
 0x38e   : > { %v1287_v15 = vcombine.low %v1262_v11, %v1270_v12  ;;  %v1303_v16 = vcombine.low %v1278_v13, %v1286_v14  ;;  %v1288_v17 = vcombine.high %v1262_v11, %v1270_v12  ;;  %v1304_v18 = vcombine.high %v1278_v13, %v1286_v14 }
 0x38f   : > { %v1563_v42 = vpack.c.bf16 %v1559_v35, %v1559_v35 }
 0x390   : > { %v1295_v20 = vrot.slane %v1287_v15, %v2944_v36  ;;  %v1311_v21 = vrot.slane %v1303_v16, %v2944_v36  ;;  %v1302_v22 = vrot.slane %v1288_v17, %v2944_v36  ;;  %v1318_v23 = vrot.slane %v1304_v18, %v2944_v36  ;;  %v2648_v16 = vld [vmem:[%s3211_s30 + $0x8] sm:$0xff]  }
 0x392   : > { %v1319_v25 = vcombine.low %v1295_v20, %v1311_v21  ;;  %v1320_v26 = vcombine.high %v1295_v20, %v1311_v21  ;;  %v1321_v27 = vcombine.low %v1302_v22, %v1318_v23  ;;  %v1322_v28 = vcombine.high %v1302_v22, %v1318_v23 }
 0x394   : > { %v1323_v30 = vpack.c.bf16 %v1319_v25, %v1319_v25  ;;  %v1324_v31 = vpack.c.bf16 %v1320_v26, %v1320_v26  ;;  %v1325_v39 = vpack.c.bf16 %v1321_v27, %v1321_v27  ;;  %v1326_v40 = vpack.c.bf16 %v1322_v28, %v1322_v28  ;;  %v2649_v26 = vld [vmem:[%s3211_s30] sm:$0xff]  }
 0x396   : > { %v1571_v37 = vsel %vm1569_vm4, %v1323_v30, 0  ;;  %v1617_v38 = vsel %vm1569_vm4, %v1324_v31, 0  ;;  %v1663_v33 = vsel %vm1569_vm4, %v1325_v39, 0  ;;  %v1709_v34 = vsel %vm1569_vm4, %v1326_v40, 0 }
 0x397   : > { %2541 = vmatpush3.bf16.msra.mxu1 %v1571_v37  ;;  %2547 = vmatpush3.bf16.msra.mxu0 %v1617_v38 }
 0x398   : > { %2552 = vmatprep.subr.bf16.mxu1 %v2716_v3  ;;  %2558 = vmatprep.subr.bf16.mxu0 %v2716_v3 }
 0x39a   : > { %2543 = vmatmul.mubr.msk.bf16.vlgmr.msra.gmra.mxu1 %vm1333_vm3, %v1562_v41  ;;  %2549 = vmatmul.mubr.msk.bf16.vlgmr.msra.gmra.mxu0 %vm1333_vm3, %v1563_v42 }
 0x39b   : > { %2553 = vmatpush3.bf16.msra.mxu1 %v1663_v33  ;;  %2559 = vmatpush3.bf16.msra.mxu0 %v1709_v34 }
 0x39c   : > { %2554 = vmatprep.mubr.msk.bf16.mxu1 %vm2717_vm1, %v2716_v3  ;;  %2560 = vmatprep.mubr.msk.bf16.mxu0 %vm2717_vm1, %v2716_v3 }
 0x39d   : > { %2564 = vmatprep.subr.bf16.mxu1 %v2716_v3  ;;  %2572 = vmatprep.subr.bf16.mxu0 %v2716_v3 }
 0x3b1   : > { %v1550_v43 = vpop.xlane.xlu1 %1549 }
 0x3b2   : > { %2668 = vrcp.f32 %v1550_v43  ;;  %v1553_v46 = vpop.xlane.xlu0 %1552 }
 0x3b3   : > { %2670 = vrcp.f32 %v1553_v46 }
 0x3bf   : > { %v2669_v47 = vpop.eup %2668 }
 0x3c0   : > { %v2671_v48 = vpop.eup %2670  ;;  %v1560_v49 = vmul.f32 %v2669_v47, %v3023_v44 }
 0x3c1   : > { %v1561_v50 = vmul.f32 %v2671_v48, %v3025_v45 }
 0x3c2   : > { %v1564_v51 = vpack.c.bf16 %v1560_v49, %v1560_v49 }
 0x3c3   : > { %v1565_v52 = vpack.c.bf16 %v1561_v50, %v1561_v50 }
 0x3c4   : > { %2555 = vmatmul.mubr.msk.bf16.vlgmr.msra.gmra.mxu1 %vm1333_vm3, %v1564_v51 }
 0x3c5   : > { %2561 = vmatmul.mubr.msk.bf16.vlgmr.msra.gmra.mxu0 %vm1333_vm3, %v1565_v52  ;;  %2568 = vmatprep.mubr.msk.bf16.mxu1 %vm2717_vm1, %v2716_v3 }
 0x3c6   : > { %2576 = vmatprep.mubr.msk.bf16.mxu0 %vm2717_vm1, %v2716_v3  ;;  %2565 = vmatpush3.bf16.msra.mxu1 %v2648_v16 }
 0x3c7   : > { %2566 = vmatprep.subr.bf16.mxu1 %v2716_v3 }
 0x3ca   : > { %2567 = vmatpush3.bf16.msra.mxu1 %v2649_v26 }
 0x3cb   : > { %2580 = vmatprep.subr.bf16.mxu1 %v2716_v3 }
 0x45a   : > { %v1607_v53 = vpop.f32.mrf.mxu1  ;;  %v1653_v54 = vpop.f32.mrf.mxu0 }
 0x45c   : > { %v2544_v55 = vpop.f32.mrf.mxu1  ;;  %v2550_v56 = vpop.f32.mrf.mxu0 }
 0x45e   : > { %v1610_v57 = vpop.f32.mrf.mxu1  ;;  %v1656_v44 = vpop.f32.mrf.mxu0 }
 0x460   : > { %v2545_v58 = vpop.f32.mrf.mxu1  ;;  %v2551_v45 = vpop.f32.mrf.mxu0 }
 0x484   : > { %v1699_v60 = vpop.f32.mrf.mxu1 }
 0x485   : > { %v1751_v61 = vcombine.low %v1607_v53, %v1699_v60  ;;  %v1752_v62 = vcombine.high %v1607_v53, %v1699_v60  ;;  %v1745_v63 = vpop.f32.mrf.mxu0 }
 0x486   : > { %v1767_v0 = vcombine.low %v1653_v54, %v1745_v63  ;;  %v1768_v1 = vcombine.high %v1653_v54, %v1745_v63  ;;  %v2556_v2 = vpop.f32.mrf.mxu1  ;;  %v2651_v63 = vld [vmem:[%s2877_s3] sm:$0xff]  }
 0x487   : > { %v1759_v4 = vrot.slane %v1751_v61, %v2942_v29  ;;  %v1766_v59 = vrot.slane %v1752_v62, %v2942_v29  ;;  %v2562_v5 = vpop.f32.mrf.mxu0  ;;  %v2650_v62 = vld [vmem:[%s2877_s3 + $0x8] sm:$0xff]  }
 0x488   : > { %v1775_v6 = vrot.slane %v1767_v0, %v2942_v29  ;;  %v1782_v8 = vrot.slane %v1768_v1, %v2942_v29  ;;  %v1702_v9 = vpop.f32.mrf.mxu1  ;;  %2573 = vmatpush3.bf16.msra.mxu0 %v2650_v62  ;;  %v2653_v0 = vld [vmem:[%s2891_s18 + $0x10] sm:$0xff]   ;;  %v2433_v5 = vld [vmem:[%s3212_s2] ss:$0 sm:$0xff] }
 0x489   : > { %v1748_v10 = vpop.f32.mrf.mxu0  ;;  %2574 = vmatprep.subr.bf16.mxu0 %v2716_v3 }
 0x48a   : > { %v1783_v11 = vcombine.low %v1759_v4, %v1775_v6  ;;  %v1784_v12 = vcombine.high %v1759_v4, %v1775_v6  ;;  %v1799_v13 = vcombine.low %v1766_v59, %v1782_v8  ;;  %v1800_v14 = vcombine.high %v1766_v59, %v1782_v8  ;;  %v2557_v15 = vpop.f32.mrf.mxu1  ;;  %v2434_v8 = vld [vmem:[%s3213_s17] ss:$0 sm:$0xff] }
 0x48b   : > { %v2563_v17 = vpop.f32.mrf.mxu0 }
 0x48c   : > { %v1791_v18 = vrot.slane %v1783_v11, %v2944_v36  ;;  %v1798_v19 = vrot.slane %v1784_v12, %v2944_v36  ;;  %v1807_v20 = vrot.slane %v1799_v13, %v2944_v36  ;;  %v1814_v21 = vrot.slane %v1800_v14, %v2944_v36  ;;  %2575 = vmatpush3.bf16.msra.mxu0 %v2651_v63  ;;  %v2654_v12 = vld [vmem:[%s2891_s18 + $0x8] sm:$0xff]   ;;  %v2655_v13 = vld [vmem:[%s2891_s18] sm:$0xff]  }
 0x48d   : > { %v2435_v14 = vld [vmem:[%s3215_s1] ss:$0 sm:$0xff] }
 0x48e   : > { %v1819_v22 = vcombine.low %v1791_v18, %v1798_v19  ;;  %v2428_v23 = vcombine.high %v1791_v18, %v1798_v19  ;;  %v1835_v24 = vcombine.low %v1807_v20, %v1814_v21  ;;  %v2429_v25 = vcombine.high %v1807_v20, %v1814_v21 }
 0x490   : > { %v1826_v27 = vrot.slane %v1819_v22, %v2942_v29  ;;  %v1834_v28 = vrot.slane %v2428_v23, %v2942_v29  ;;  %v1842_v30 = vrot.slane %v1835_v24, %v2942_v29  ;;  %v1850_v31 = vrot.slane %v2429_v25, %v2942_v29 }
 0x492   : > { %v1852_v32 = vcombine.high %v1826_v27, %v1834_v28  ;;  %v1868_v35 = vcombine.high %v1842_v30, %v1850_v31  ;;  %v1851_v37 = vcombine.low %v1826_v27, %v1834_v28  ;;  %v1867_v38 = vcombine.low %v1842_v30, %v1850_v31 }
 0x494   : > { %v1866_v39 = vrot.slane %v1852_v32, %v2944_v36  ;;  %v1882_v40 = vrot.slane %v1868_v35, %v2944_v36  ;;  %v1859_v41 = vrot.slane %v1851_v37, %v2944_v36  ;;  %v1875_v42 = vrot.slane %v1867_v38, %v2944_v36 }
 0x496   : > { %v1885_v33 = vcombine.low %v1866_v39, %v1882_v40  ;;  %v1884_v34 = vcombine.high %v1859_v41, %v1875_v42  ;;  %v1883_v43 = vcombine.low %v1859_v41, %v1875_v42  ;;  %v1886_v29 = vcombine.high %v1866_v39, %v1882_v40  ;;  %v2445_v42 = vld [vmem:[%s685_s15] ss:$0 sm:$0xff] }
 0x498   : > { %1892 = vrot.lane.b32.xlu1 %v1885_v33, %s2723_s24  ;;  %1888 = vrot.lane.b32.xlu0 %v1884_v34, %s2724_s23  ;;  %v2446_v34 = vld [vmem:[%s688_s8] ss:$0 sm:$0xff] }
 0x49c   : > { %1896 = vrot.lane.b32.xlu1 %v1886_v29, %s2725_s0 }
 0x50a   : > { %v1893_v46 = vpop.permute.xlu1 %1892  ;;  %v1889_v47 = vpop.permute.xlu0 %1888 }
 0x50b   : > { %v1899_v48 = vsel %vm1333_vm3, %v1883_v43, %v1889_v47 }
 0x50c   : > { %v1901_v50 = vsel %vm1900_vm5, %v1899_v48, %v1893_v46 }
 0x50e   : > { %v1897_v49 = vpop.permute.xlu1 %1896 }
 0x50f   : > { %v1903_v51 = vsel %vm1902_vm6, %v1901_v50, %v1897_v49 }
 0x510   : > { %v1904_v36 = vpack.c.bf16 %v1903_v51, %v1903_v51 }
 0x512   : > { %2569 = vmatmul.mubr.msk.bf16.vlgmr.msra.gmra.mxu1 %vm721_vm2, %v1904_v36 }
 0x513   : > { %2588 = vmatprep.mubr.msk.bf16.mxu1 %vm2717_vm1, %v2716_v3 }
 0x5d2   : > { %v1958_v52 = vpop.f32.mrf.mxu1 }
 0x5d3   : > { %v1964_v53 = vadd.f32 %v1958_v52, %v2915_v7  ;;  %v2652_v7 = vld [vmem:[%s2891_s18 + $0x18] sm:$0xff]  }
 0x5d4   : > { %v2570_v54 = vpop.f32.mrf.mxu1  ;;  %2581 = vmatpush3.bf16.msra.mxu1 %v2652_v7 }
 0x5d5   : > { %v1967_v55 = vsel %vm721_vm2, %v1964_v53, 0.0  ;;  %2582 = vmatprep.subr.bf16.mxu1 %v2716_v3 }
 0x5d6   : > { %1968 = vadd.xlane.f32.xlu0 %v1967_v55  ;;  %v1961_v56 = vpop.f32.mrf.mxu1 }
 0x5d8   : > { %v2571_v57 = vpop.f32.mrf.mxu1  ;;  %2583 = vmatpush3.bf16.msra.mxu1 %v2653_v0 }
 0x5d9   : > { %2584 = vmatprep.subr.bf16.mxu1 %v2716_v3 }
 0x5dc   : > { %2585 = vmatpush3.bf16.msra.mxu1 %v2654_v12 }
 0x5dd   : > { %2586 = vmatprep.subr.bf16.mxu1 %v2716_v3  ;;  %v2439_v3 = vld [vmem:[%s682_s25] ss:$0 sm:$0xff] }
 0x5e0   : > { %2587 = vmatpush3.bf16.msra.mxu1 %v2655_v13 }
 0x65f   : > { %v1969_v44 = vpop.xlane.xlu0 %1968 }
 0x660   : > { %v1971_v58 = vmul.f32 0.03125, %v1969_v44 }
 0x662   : > { %v1972_v45 = vsub.f32 %v1964_v53, %v1971_v58 }
 0x664   : > { %v1973_v60 = vmul.f32 %v1972_v45, %v1972_v45 }
 0x666   : > { %v1974_v61 = vsel %vm721_vm2, %v1973_v60, 0.0 }
 0x667   : > { %1975 = vadd.xlane.f32.xlu1 %v1974_v61 }
 0x6f0   : > { %v1976_v1 = vpop.xlane.xlu1 %1975 }
 0x6f1   : > { %v1977_v2 = vmul.f32 0.03125, %v1976_v1 }
 0x6f3   : > { %v1978_v4 = vadd.f32 1e-05, %v1977_v2 }
 0x6f5   : > { %2672 = vrsqrt.f32 %v1978_v4 }
 0x702   : > { %v2673_v59 = vpop.eup %2672 }
 0x703   : > { %v1980_v6 = vmul.f32 %v2673_v59, %v1972_v45 }
 0x705   : > { %v1987_v9 = vmul.f32 %v2433_v5, %v1980_v6 }
 0x707   : > { %v1994_v10 = vadd.f32 %v2434_v8, %v1987_v9 }
 0x709   : > { %v1995_v11 = vpack.c.bf16 %v1994_v10, %v1994_v10 }
 0x70b   : > { %2577 = vmatmul.mubr.msk.bf16.vlgmr.msra.gmra.mxu0 %vm721_vm2, %v1995_v11 }
 0x7cb   : > { %v2056_v15 = vpop.f32.mrf.mxu0 }
 0x7cc   : > { %v2057_v16 = vadd.f32 %v2435_v14, %v2056_v15 }
 0x7cd   : > { %v2578_v17 = vpop.f32.mrf.mxu0 }
 0x7ce   : > { %v2062_v18 = vmax.f32 %v2057_v16, 0.0 }
 0x7cf   : > { %v2059_v19 = vpop.f32.mrf.mxu0 }
 0x7d0   : > { %v2063_v20 = vpack.c.bf16 %v2062_v18, %v2062_v18 }
 0x7d1   : > { %v2579_v21 = vpop.f32.mrf.mxu0 }
 0x7d2   : > { %2589 = vmatmul.mubr.msk.bf16.vlgmr.msra.gmra.mxu1 %vm2103_vm7, %v2063_v20 }
 0x892   : > { %v2141_v22 = vpop.f32.mrf.mxu1 }
 0x893   : > { %v2142_v23 = vadd.f32 %v2439_v3, %v2141_v22 }
 0x894   : > { %v2590_v24 = vpop.f32.mrf.mxu1 }
 0x895   : > { %v2147_v25 = vadd.f32 %v2142_v23, %v1994_v10 }
 0x896   : > { %v2144_v26 = vpop.f32.mrf.mxu1 }
 0x897   : > { %v2150_v27 = vsel %vm721_vm2, %v2147_v25, 0.0 }
 0x898   : > { %2151 = vadd.xlane.f32.xlu0 %v2150_v27  ;;  %v2591_v28 = vpop.f32.mrf.mxu1 }
 0x921   : > { %v2152_v30 = vpop.xlane.xlu0 %2151 }
 0x922   : > { %v2153_v31 = vmul.f32 0.03125, %v2152_v30 }
 0x924   : > { %v2154_v32 = vsub.f32 %v2147_v25, %v2153_v31 }
 0x926   : > { %v2155_v35 = vmul.f32 %v2154_v32, %v2154_v32 }
 0x928   : > { %v2156_v37 = vsel %vm721_vm2, %v2155_v35, 0.0 }
 0x929   : > { %2157 = vadd.xlane.f32.xlu0 %v2156_v37 }
 0x9b2   : > { %v2158_v38 = vpop.xlane.xlu0 %2157 }
 0x9b3   : > { %v2159_v39 = vmul.f32 0.03125, %v2158_v38 }
 0x9b5   : > { %v2160_v40 = vadd.f32 1e-05, %v2159_v39 }
 0x9b7   : > { %2674 = vrsqrt.f32 %v2160_v40 }
 0x9c4   : > { %v2675_v41 = vpop.eup %2674 }
 0x9c5   : > { %v2162_v33 = vmul.f32 %v2675_v41, %v2154_v32 }
 0x9c7   : > { %v2169_v43 = vmul.f32 %v2445_v42, %v2162_v33  ;;  %2181 = sbr.rel (%p2447_p8) target bundleno = 2511 (0x9cf), region = 84 }
 0x9c9   : > { %v2176_v29 = vadd.f32 %v2446_v34, %v2169_v43 }
 0x9cb   : > { %2177 = vst.msk [vmem:[#allocation2] sm:$0xff] %vm721_vm2, %v2176_v29 }
 0x9cc   : > { %v2182_v46 = vpack.c.bf16 %v2176_v29, %v2176_v29  ;;  %vm2183_vm8 = vcmask 257024  }
 0x9ce   : > { %2184 = vst.msk [vmem:[%s2904_s9] sm:$0xf] %vm2183_vm8, %v2182_v46 }
 0x9cf PF: > { %s3218_s15 = sld [smem:[#allocation6_spill]] }
 0x9d0   : > { %s3219_s29 = sld [smem:[#allocation4_spill]] }
 0x9d1   : > { %s3220_s30 = sld [smem:[#allocation5_spill]] }
 0x9d2   : > { %s3222_s16 = sld [smem:[#allocation8_spill]] }
 0x9d5   : > { %s24_s17 = sadd.s32 1, %s3218_s15   ;;  %s3221_s15 = sld [smem:[#allocation7_spill]] }
 0x9d6   : > { %p21_p9 = scmp.ge.s32.totalorder %s24_s17, 6  }
 0x9d8   :  { %23 = sbr.rel (!%p21_p9) target bundleno = 11 (0xb), region = 153 }

// kernel: transformer_forward.4
= control target key start
LH: loop header
LB: loop body
LE: loop exit
PB: predicated region body
PF: predicated region fallthrough
CT: control target
= control target key end

     0   :  { %s4763_s28 = smov 0   ;;  %s4765_s29 = smov 0   ;;  %s5397_s0 = inlined_call_operand.vmem [shape: bf16[2,8,32], index: 0, kind: input, shape index: {}]   ;;  %s5398_s1 = inlined_call_operand.vmem [shape: bf16[2,8,32], index: 1, kind: input, shape index: {}]   ;;  %s5399_s2 = inlined_call_operand.vmem [shape: f32[2,1,8], index: 2, kind: input, shape index: {}]   ;;  %s5400_s3 = inlined_call_operand.vmem [shape: f32[2,1,8], index: 3, kind: input, shape index: {}]   ;;  %s5401_s4 = inlined_call_operand.vmem [shape: bf16[2,32,32], index: 4, kind: input, shape index: {}]   ;;  %s5402_s5 = inlined_call_operand.vmem [shape: bf16[2,32,32], index: 5, kind: input, shape index: {}]   ;;  %s5403_s6 = inlined_call_operand.vmem [shape: bf16[2,32,32], index: 6, kind: input, shape index: {}]   ;;  %s5404_s7 = inlined_call_operand.vmem [shape: bf16[2,32,32], index: 7, kind: input, shape index: {}]   ;;  %s5405_s8 = inlined_call_operand.vmem [shape: f32[2,1,32], index: 8, kind: input, shape index: {}]   ;;  %s5406_s9 = inlined_call_operand.vmem [shape: f32[2,1,32], index: 9, kind: input, shape index: {}]   ;;  %s5407_s10 = inlined_call_operand.vmem [shape: bf16[2,32,32], index: 10, kind: input, shape index: {}]   ;;  %s5408_s11 = inlined_call_operand.vmem [shape: bf16[2,32,32], index: 11, kind: input, shape index: {}]   ;;  %s5409_s12 = inlined_call_operand.vmem [shape: bf16[2,32,32], index: 12, kind: input, shape index: {}]   ;;  %s5410_s13 = inlined_call_operand.vmem [shape: bf16[2,32,32], index: 13, kind: input, shape index: {}]   ;;  %s5411_s14 = inlined_call_operand.vmem [shape: f32[2,1,32], index: 14, kind: input, shape index: {}]   ;;  %s5412_s15 = inlined_call_operand.vmem [shape: f32[2,1,32], index: 15, kind: input, shape index: {}]   ;;  %s5413_s16 = inlined_call_operand.vmem [shape: bf16[2,32,64], index: 16, kind: input, shape index: {}]   ;;  %s5414_s17 = inlined_call_operand.vmem [shape: f32[2,1,64], index: 17, kind: input, shape index: {}]   ;;  %s5415_s18 = inlined_call_operand.vmem [shape: bf16[2,64,32], index: 18, kind: input, shape index: {}]   ;;  %s5416_s19 = inlined_call_operand.vmem [shape: f32[2,1,32], index: 19, kind: input, shape index: {}]   ;;  %s5417_s20 = inlined_call_operand.vmem [shape: f32[2,1,32], index: 20, kind: input, shape index: {}]   ;;  %s5418_s21 = inlined_call_operand.vmem [shape: f32[2,1,32], index: 21, kind: input, shape index: {}]   ;;  %s5419_s22 = inlined_call_operand.vmem [shape: bf16[2,8,32], index: 22, kind: output, shape index: {}]  }
   0x1   :  { %5429 = sst [smem:[#allocation13_spill]] %s5397_s0  ;;  %s4767_s30 = smov 0  }
   0x2   :  { %5430 = sst [smem:[#allocation14_spill]] %s5398_s1 }
   0x3   :  { %5431 = sst [smem:[#allocation15_spill]] %s5399_s2 }
   0x4   :  { %5432 = sst [smem:[#allocation16_spill]] %s5400_s3  ;;  %s4761_s3 = smov 0  }
   0x5   :  { %5433 = sst [smem:[#allocation17_spill]] %s5401_s4  ;;  %s4769_s4 = smov 0  }
   0x6   :  { %5434 = sst [smem:[#allocation18_spill]] %s5402_s5 }
   0x7   :  { %5435 = sst [smem:[#allocation19_spill]] %s5403_s6 }
   0x8   :  { %5436 = sst [smem:[#allocation20_spill]] %s5404_s7 }
   0x9   :  { %5437 = sst [smem:[#allocation21_spill]] %s5405_s8 }
   0xa   :  { %5438 = sst [smem:[#allocation22_spill]] %s5406_s9 }
   0xb   :  { %5439 = sst [smem:[#allocation23_spill]] %s5407_s10 }
   0xc   :  { %5440 = sst [smem:[#allocation24_spill]] %s5408_s11 }
   0xd   :  { %5441 = sst [smem:[#allocation25_spill]] %s5409_s12 }
   0xe   :  { %5442 = sst [smem:[#allocation26_spill]] %s5410_s13 }
   0xf   :  { %5443 = sst [smem:[#allocation27_spill]] %s5411_s14 }
  0x10   :  { %5444 = sst [smem:[#allocation28_spill]] %s5412_s15 }
  0x11   :  { %5445 = sst [smem:[#allocation29_spill]] %s5413_s16 }
  0x12   :  { %5446 = sst [smem:[#allocation30_spill]] %s5414_s17 }
  0x13   :  { %5447 = sst [smem:[#allocation31_spill]] %s5415_s18 }
  0x14   :  { %5448 = sst [smem:[#allocation32_spill]] %s5416_s19 }
  0x15   :  { %5449 = sst [smem:[#allocation33_spill]] %s5417_s20 }
  0x16   :  { %5450 = sst [smem:[#allocation34_spill]] %s5418_s21 }
  0x17   :  { %5451 = sst [smem:[#allocation35_spill]] %s5419_s22 }
  0x18 LB: > { %5452 = sst [smem:[#allocation3_spill]] %s4618_s3  ;;  %s41_s0 = sadd.s32 1, %s4626_s29  ;;  %s4634_s4 = sphi %s4769_s4, %s32_s4   ;;  %s4630_s30 = sphi %s4767_s30, %s5515_s30   ;;  %s4626_s29 = sphi %s4765_s29, %s5514_s29   ;;  %s4622_s28 = sphi %s4763_s28, %s5513_s28   ;;  %s4618_s3 = sphi %s4761_s3, %s5512_s3  }
  0x19   : > { %5453 = sst [smem:[#allocation4_spill]] %s4626_s29  ;;  %s44_s23 = sadd.s32 1, %s4630_s30 }
  0x1a   : > { %5454 = sst [smem:[#allocation5_spill]] %s4630_s30  ;;  %p42_p0 = scmp.ge.s32.totalorder %s41_s0, 2 }
  0x1b   : > { %5455 = sst [smem:[#allocation6_spill]] %s4634_s4  ;;  %p4130_p1 = scmp.ge.s32.totalorder %s4634_s4, 1 }
  0x1c   : > { %p812_p2 = scmp.lt.s32.totalorder %s4634_s4, 5  ;;  %s5517_s0 = smov (%p42_p0, %s41_s0), 0 }
  0x1d   : > { %5456 = sst [smem:[#allocation7_spill]] %s5517_s0  ;;  %s5519_s23 = smov (!%p42_p0, %s44_s23), %s4630_s30 }
  0x1e   : > { %p813_p3 = pnand %p4130_p1, %p812_p2  ;;  %p46_p4 = scmp.ge.s32.totalorder %s5519_s23, 2 }
  0x20   : > { %s5521_s23 = smov (%p46_p4, %s5519_s23), 0  ;;  %816 = sbr.rel (%p813_p3) target bundleno = 4269 (0x10ad), region = 108 }
  0x21   : > { %5457 = sst [smem:[#allocation8_spill]] %s5521_s23 }
  0x25   : > { %p956_p5 = scmp.lt.s32.totalorder %s4622_s28, 1  ;;  %p970_p6 = scmp.lt.s32.totalorder %s4618_s3, 1 }
  0x26   : > { %s5460_s23 = sld [smem:[#allocation13_spill]] }
  0x27   : > { %s5523_s28 = smov (!%p956_p5, %s4622_s28), 1  ;;  %s5463_s17 = sld [smem:[#allocation17_spill]] }
  0x28   : > { %5458 = sst [smem:[#allocation9_spill]] %s5523_s28  ;;  %s4800_s5 = sshll.u32 %s5523_s28, 2 }
  0x29   : > { %s4797_s1 = scalar_select %p970_p6, %s4618_s3, 1 }
  0x2a   : > { %s5465_s4 = sld [smem:[#allocation19_spill]] }
  0x2b   : > { %s4232_s24 = sshll.u32 %s4797_s1, 4  ;;  %s5466_s7 = sld [smem:[#allocation20_spill]] }
  0x2c   : > { %s959_s0 = scalar_lea.vmem %s5460_s23, %s4800_s5  ;;  %s5464_s23 = sld [smem:[#allocation18_spill]] }
  0x2d   : > { %s4822_s25 = scalar_lea.vmem %s5463_s17, %s4232_s24  ;;  %s5469_s10 = sld [smem:[#allocation23_spill]] }
  0x2e   : > { %s5470_s11 = sld [smem:[#allocation24_spill]]  ;;  %s4241_s6 = sshll.u32 %s4797_s1, 5 }
  0x2f   : > { %s5471_s12 = sld [smem:[#allocation25_spill]] }
  0x30   : > { %s4832_s21 = scalar_lea.vmem %s5465_s4, %s4232_s24  ;;  %s5473_s13 = sld [smem:[#allocation26_spill]] }
  0x31   : > { %s4837_s18 = scalar_lea.vmem %s5466_s7, %s4232_s24  ;;  %s5477_s16 = sld [smem:[#allocation29_spill]] }
  0x32   : > { %s4827_s26 = scalar_lea.vmem %s5464_s23, %s4232_s24  ;;  %s5481_s3 = sld [smem:[#allocation31_spill]] }
  0x33   : > { %s4850_s30 = scalar_lea.vmem %s5469_s10, %s4232_s24  ;;  %s5482_s28 = sld [smem:[#allocation33_spill]] }
  0x34   : > { %s4855_s20 = scalar_lea.vmem %s5470_s11, %s4232_s24  ;;  %s5484_s22 = sld [smem:[#allocation35_spill]] }
  0x35   : > { %s4860_s19 = scalar_lea.vmem %s5471_s12, %s4232_s24 }
  0x36   : > { %5472 = sst [smem:[#allocation10_spill]] %s4860_s19  ;;  %s4865_s2 = scalar_lea.vmem %s5473_s13, %s4232_s24 }
  0x37   : > { %5474 = sst [smem:[#allocation11_spill]] %s4865_s2  ;;  %s4878_s9 = scalar_lea.vmem %s5477_s16, %s4232_s24 }
  0x38   : > { %5478 = sst [smem:[#allocation12_spill]] %s4878_s9  ;;  %s4892_s14 = scalar_lea.vmem %s5481_s3, %s4241_s6 }
  0x39   : > { %s5480_s2 = sld [smem:[#allocation32_spill]]  ;;  %s1040_s11 = scalar_lea.vmem %s5482_s28, %s4797_s1 }
  0x3a   : > { %s5483_s16 = sld [smem:[#allocation34_spill]]  ;;  %s1047_s19 = scalar_lea.vmem %s5484_s22, %s4800_s5 }
  0x3b   : > { %s5485_s9 = sld [smem:[#allocation3_spill]] }
  0x3f   : > { %s1037_s8 = scalar_lea.vmem %s5480_s2, %s4797_s1 }
  0x40   : > { %s1043_s15 = scalar_lea.vmem %s5483_s16, %s4797_s1 }
  0x41   : > { %p4154_p7 = scmp.ne.s32.totalorder %s5485_s9, 0 }
  0x43   : > { %1052 = sbr.rel (%p4154_p7) target bundleno = 76 (0x4c), region = 112 }
  0x48   : > { %v1053_v0 = vld [vmem:[%s959_s0] sm:$0xf]  ;;  %vm1055_vm0 = vcmask 261120  }
  0x49   : > { %v1054_v1 = vunpack.c.l.bf16 %v1053_v0 }
  0x4b   : > { %1056 = vst.msk [vmem:[#allocation2] sm:$0xff] %vm1055_vm0, %v1054_v1 }
  0x4c PF: > { %v4536_v2 = vld [vmem:[%s4827_s26 + $0x8] sm:$0xff]   ;;  %v4636_v3 = vmov 0.0   ;;  %v4538_v5 = vld [vmem:[%s4827_s26] sm:$0xff]   ;;  %vm4637_vm1 = vmmov 0   ;;  %vm1077_vm2 = vcmask 261120   ;;  %s4638_s9 = smov 104   ;;  %v1248_v21 = vlaneseq }
  0x4d   : > { %4314 = vmatprep.subr.bf16.mxu1 %v4636_v3  ;;  %4306 = vmatprep.subr.bf16.mxu0 %v4636_v3  ;;  %v4537_v4 = vld [vmem:[%s4822_s25 + $0x8] sm:$0xff]   ;;  %v4539_v6 = vld [vmem:[%s4822_s25] sm:$0xff]   ;;  %s4639_s13 = smov 120   ;;  %s4640_s16 = smov 112   ;;  %v4641_v19 = vmov 1983009808  }
  0x4e   : > { %4315 = vmatpush3.bf16.msra.mxu1 %v4536_v2  ;;  %4318 = vmatprep.mubr.msk.bf16.mxu1 %vm4637_vm1, %v4636_v3  ;;  %v4540_v9 = vld [vmem:[%s4832_s21 + $0x8] sm:$0xff]   ;;  %v4541_v13 = vld [vmem:[%s4832_s21] sm:$0xff]   ;;  %v1246_v20 = vunpack.c.l.s4 %v4641_v19  ;;  %v4642_v22 = vmov 1934713408   ;;  %v4945_v25 = vshrl.u32 %v1248_v21, 7  ;;  %vm1689_vm3 = vcmask 64512  }
  0x4f   : > { %4307 = vmatpush3.bf16.msra.mxu0 %v4537_v4  ;;  %4316 = vmatprep.subr.bf16.mxu1 %v4636_v3  ;;  %v1278_v23 = vunpack.c.l.s4 %v4642_v22  ;;  %s5486_s0 = sld [smem:[#allocation9_spill]]  ;;  %vm1935_vm5 = vcmask 1043456   ;;  %s4644_s3 = smov 8   ;;  %vm2266_vm6 = vcmask 130048   ;;  %vm2268_vm7 = vcmask 195584  }
  0x50   : > { %4308 = vmatprep.subr.bf16.mxu0 %v4636_v3  ;;  %4310 = vmatprep.mubr.msk.bf16.mxu0 %vm4637_vm1, %v4636_v3  ;;  %v1247_v24 = vunpack.c.0.s8 %v1246_v20  ;;  %s5487_s21 = sld [smem:[#allocation15_spill]]  ;;  %s4645_s28 = smov 24   ;;  %vm3758_vm8 = vcmask 523264  }
  0x51   : > { %v1279_v28 = vunpack.c.0.s8 %v1278_v23  ;;  %s5489_s23 = sld [smem:[#allocation14_spill]] }
  0x52   : > { %v4917_v7 = vld [vmem:[#allocation2] sm:$0xff]  ;;  %4317 = vmatpush3.bf16.msra.mxu1 %v4538_v5  ;;  %v4948_v29 = vsub.s32 %v1247_v24, %v4945_v25  ;;  %s5491_s10 = sld [smem:[#allocation21_spill]] }
  0x53   : > { %v1059_v8 = vpack.c.bf16 %v4917_v7, %v4917_v7  ;;  %4309 = vmatpush3.bf16.msra.mxu0 %v4539_v6  ;;  %4330 = vmatprep.subr.bf16.mxu1 %v4636_v3  ;;  %v4951_v36 = vsub.s32 %v1279_v28, %v4945_v25  ;;  %s5493_s7 = sld [smem:[#allocation22_spill]] }
  0x54   : > { %4322 = vmatprep.subr.bf16.mxu0 %v4636_v3  ;;  %s5495_s22 = sld [smem:[#allocation10_spill]] }
  0x55   : > { %4319 = vmatmul.mubr.msk.bf16.vlgmr.msra.gmra.mxu1 %vm1077_vm2, %v1059_v8  ;;  %s5502_s17 = sld [smem:[#allocation28_spill]] }
  0x56   : > { %4311 = vmatmul.mubr.msk.bf16.vlgmr.msra.gmra.mxu0 %vm1077_vm2, %v1059_v8  ;;  %4332 = vmatprep.mubr.msk.bf16.mxu1 %vm4637_vm1, %v4636_v3  ;;  %s5488_s2 = scalar_lea.vmem %s5487_s21, %s5486_s0  ;;  %s5496_s21 = sld [smem:[#allocation16_spill]] }
  0x57   : > { %4326 = vmatprep.mubr.msk.bf16.mxu0 %vm4637_vm1, %v4636_v3  ;;  %4323 = vmatpush3.bf16.msra.mxu0 %v4540_v9  ;;  %s5490_s27 = scalar_lea.vmem %s5489_s23, %s4800_s5  ;;  %s5509_s25 = sld [smem:[#allocation3_spill]] }
  0x58   : > { %4324 = vmatprep.subr.bf16.mxu0 %v4636_v3  ;;  %s5492_s29 = scalar_lea.vmem %s5491_s10, %s4797_s1 }
  0x59   : > { %s5494_s12 = scalar_lea.vmem %s5493_s7, %s4797_s1 }
  0x5b   : > { %4325 = vmatpush3.bf16.msra.mxu0 %v4541_v13  ;;  %s5503_s23 = scalar_lea.vmem %s5502_s17, %s4797_s1 }
  0x5c   : > { %4336 = vmatprep.subr.bf16.mxu0 %v4636_v3 }
  0x5d   : > { %p4229_p8 = scmp.ne.s32.totalorder %s5509_s25, 1 }
  0x5e   : > { %4327 = vmatmul.mubr.msk.bf16.vlgmr.msra.gmra.mxu0 %vm1077_vm2, %v1059_v8 }
  0x5f   : > { %4338 = vmatprep.mubr.msk.bf16.mxu0 %vm4637_vm1, %v4636_v3 }
 0x115   : > { %v1171_v10 = vpop.f32.mrf.mxu1 }
 0x116   : > { %1390 = vrot.lane.b32.xlu1 %v1171_v10, %s4638_s9  ;;  %1384 = vrot.lane.b32.xlu0 %v1171_v10, %s4639_s13  ;;  %v1115_v11 = vpop.f32.mrf.mxu0 }
 0x117   : > { %v4320_v12 = vpop.f32.mrf.mxu1 }
 0x118   : > { %v4312_v14 = vpop.f32.mrf.mxu0 }
 0x119   : > { %v1174_v15 = vpop.f32.mrf.mxu1 }
 0x11a   : > { %1387 = vrot.lane.b32.xlu0 %v1171_v10, %s4640_s16  ;;  %1234 = vrot.lane.b32.xlu1 %v1115_v11, %s4639_s13  ;;  %v1118_v16 = vpop.f32.mrf.mxu0 }
 0x11b   : > { %v4321_v17 = vpop.f32.mrf.mxu1 }
 0x11c   : > { %v4313_v18 = vpop.f32.mrf.mxu0 }
 0x11e   : > { %1237 = vrot.lane.b32.xlu0 %v1115_v11, %s4640_s16  ;;  %1240 = vrot.lane.b32.xlu1 %v1115_v11, %s4638_s9 }
 0x188   : > { %v1391_v26 = vpop.permute.xlu1 %1390  ;;  %v1385_v27 = vpop.permute.xlu0 %1384 }
 0x189   : > { %v1409_v30 = vcombine.low %v1385_v27, %v1391_v26  ;;  %v1410_v31 = vcombine.high %v1385_v27, %v1391_v26 }
 0x18b   : > { %v1417_v37 = vrot.slane %v1409_v30, %v4948_v29  ;;  %v1424_v38 = vrot.slane %v1410_v31, %v4948_v29 }
 0x18c   : > { %v1388_v32 = vpop.permute.xlu0 %1387  ;;  %v1235_v33 = vpop.permute.xlu1 %1234 }
 0x18d   : > { %v1393_v34 = vcombine.low %v1171_v10, %v1388_v32  ;;  %v1394_v35 = vcombine.high %v1171_v10, %v1388_v32 }
 0x18f   : > { %v1401_v39 = vrot.slane %v1393_v34, %v4948_v29  ;;  %v1408_v40 = vrot.slane %v1394_v35, %v4948_v29 }
 0x190   : > { %v1238_v41 = vpop.permute.xlu0 %1237  ;;  %v1241_v42 = vpop.permute.xlu1 %1240 }
 0x191   : > { %v1425_v43 = vcombine.low %v1401_v39, %v1417_v37  ;;  %v1426_v44 = vcombine.high %v1401_v39, %v1417_v37  ;;  %v1441_v45 = vcombine.low %v1408_v40, %v1424_v38  ;;  %v1442_v46 = vcombine.high %v1408_v40, %v1424_v38 }
 0x192   : > { %v1243_v47 = vcombine.low %v1115_v11, %v1238_v41  ;;  %v1244_v48 = vcombine.high %v1115_v11, %v1238_v41  ;;  %v1259_v49 = vcombine.low %v1235_v33, %v1241_v42  ;;  %v1260_v50 = vcombine.high %v1235_v33, %v1241_v42 }
 0x193   : > { %v1433_v51 = vrot.slane %v1425_v43, %v4951_v36  ;;  %v1440_v52 = vrot.slane %v1426_v44, %v4951_v36  ;;  %v1449_v53 = vrot.slane %v1441_v45, %v4951_v36  ;;  %v1456_v54 = vrot.slane %v1442_v46, %v4951_v36 }
 0x194   : > { %v1251_v55 = vrot.slane %v1243_v47, %v4948_v29  ;;  %v1258_v56 = vrot.slane %v1244_v48, %v4948_v29  ;;  %v1267_v57 = vrot.slane %v1259_v49, %v4948_v29  ;;  %v1274_v58 = vrot.slane %v1260_v50, %v4948_v29 }
 0x195   : > { %v1461_v59 = vcombine.low %v1433_v51, %v1440_v52  ;;  %v4166_v60 = vcombine.high %v1433_v51, %v1440_v52  ;;  %v1477_v61 = vcombine.low %v1449_v53, %v1456_v54  ;;  %v4167_v62 = vcombine.high %v1449_v53, %v1456_v54 }
 0x196   : > { %v1275_v63 = vcombine.low %v1251_v55, %v1267_v57  ;;  %v1276_v0 = vcombine.high %v1251_v55, %v1267_v57  ;;  %v1291_v1 = vcombine.low %v1258_v56, %v1274_v58  ;;  %v1292_v2 = vcombine.high %v1258_v56, %v1274_v58 }
 0x197   : > { %v1468_v4 = vrot.slane %v1461_v59, %v4948_v29  ;;  %v1476_v5 = vrot.slane %v4166_v60, %v4948_v29  ;;  %v1484_v6 = vrot.slane %v1477_v61, %v4948_v29  ;;  %v1492_v8 = vrot.slane %v4167_v62, %v4948_v29  ;;  %v5005_v61 = vpop.f32.mrf.mxu0 }
 0x198   : > { %v1283_v9 = vrot.slane %v1275_v63, %v4951_v36  ;;  %v1290_v10 = vrot.slane %v1276_v0, %v4951_v36  ;;  %v1299_v11 = vrot.slane %v1291_v1, %v4951_v36  ;;  %v1306_v12 = vrot.slane %v1292_v2, %v4951_v36  ;;  %v4170_v2 = vld [vmem:[%s5488_s2] ss:$0 sm:$0xff]  ;;  %s5497_s2 = scalar_lea.vmem %s5496_s21, %s5486_s0 }
 0x199   : > { %v1493_v13 = vcombine.low %v1468_v4, %v1476_v5  ;;  %v1509_v14 = vcombine.low %v1484_v6, %v1492_v8  ;;  %v1494_v15 = vcombine.high %v1468_v4, %v1476_v5  ;;  %v1510_v16 = vcombine.high %v1484_v6, %v1492_v8  ;;  %v4328_v62 = vpop.f32.mrf.mxu0 }
 0x19a   : > { %v1311_v17 = vcombine.low %v1283_v9, %v1290_v10  ;;  %v4164_v18 = vcombine.high %v1283_v9, %v1290_v10  ;;  %v1327_v19 = vcombine.low %v1299_v11, %v1306_v12  ;;  %v4165_v20 = vcombine.high %v1299_v11, %v1306_v12 }
 0x19b   : > { %v1501_v22 = vrot.slane %v1493_v13, %v4951_v36  ;;  %v1517_v23 = vrot.slane %v1509_v14, %v4951_v36  ;;  %v1508_v32 = vrot.slane %v1494_v15, %v4951_v36  ;;  %v1524_v33 = vrot.slane %v1510_v16, %v4951_v36  ;;  %v1230_v63 = vpop.f32.mrf.mxu0 }
 0x19c   : > { %v1318_v24 = vrot.slane %v1311_v17, %v4948_v29  ;;  %v1326_v26 = vrot.slane %v4164_v18, %v4948_v29  ;;  %v1334_v27 = vrot.slane %v1327_v19, %v4948_v29  ;;  %v1342_v28 = vrot.slane %v4165_v20, %v4948_v29 }
 0x19d   : > { %v1525_v30 = vcombine.low %v1501_v22, %v1517_v23  ;;  %v1526_v31 = vcombine.high %v1501_v22, %v1517_v23  ;;  %v1527_v43 = vcombine.low %v1508_v32, %v1524_v33  ;;  %v1528_v44 = vcombine.high %v1508_v32, %v1524_v33  ;;  %v4329_v0 = vpop.f32.mrf.mxu0 }
 0x19e   : > { %v1343_v34 = vcombine.low %v1318_v24, %v1326_v26  ;;  %v1359_v35 = vcombine.low %v1334_v27, %v1342_v28  ;;  %v1344_v45 = vcombine.high %v1318_v24, %v1326_v26  ;;  %v1360_v46 = vcombine.high %v1334_v27, %v1342_v28 }
 0x19f   : > { %v1529_v37 = vpack.c.bf16 %v1525_v30, %v1525_v30  ;;  %v1530_v38 = vpack.c.bf16 %v1526_v31, %v1526_v31  ;;  %v1531_v49 = vpack.c.bf16 %v1527_v43, %v1527_v43  ;;  %v1532_v50 = vpack.c.bf16 %v1528_v44, %v1528_v44 }
 0x1a0   : > { %v1351_v39 = vrot.slane %v1343_v34, %v4951_v36  ;;  %v1367_v40 = vrot.slane %v1359_v35, %v4951_v36  ;;  %v1358_v53 = vrot.slane %v1344_v45, %v4951_v36  ;;  %v1374_v54 = vrot.slane %v1360_v46, %v4951_v36 }
 0x1a1   : > { %v1694_v41 = vsel %vm1689_vm3, %v1529_v37, 0  ;;  %v1740_v42 = vsel %vm1689_vm3, %v1530_v38, 0  ;;  %v1786_v55 = vsel %vm1689_vm3, %v1531_v49, 0  ;;  %v1832_v56 = vsel %vm1689_vm3, %v1532_v50, 0 }
 0x1a2   : > { %4331 = vmatpush3.bf16.xpose.msra.mxu1 %v1694_v41  ;;  %4337 = vmatpush3.bf16.xpose.msra.mxu0 %v1740_v42  ;;  %v1375_v47 = vcombine.low %v1351_v39, %v1367_v40  ;;  %v1376_v48 = vcombine.high %v1351_v39, %v1367_v40  ;;  %v1377_v57 = vcombine.low %v1358_v53, %v1374_v54  ;;  %v1877_v1 = vand.u32 127, %v1248_v21 }
 0x1a3   : > { %4342 = vmatprep.subr.bf16.mxu1 %v4636_v3  ;;  %4348 = vmatprep.subr.bf16.mxu0 %v4636_v3  ;;  %v1378_v58 = vcombine.high %v1358_v53, %v1374_v54 }
 0x1a4   : > { %v1379_v51 = vpack.c.bf16 %v1375_v47, %v1375_v47  ;;  %v1380_v52 = vpack.c.bf16 %v1376_v48, %v1376_v48  ;;  %v1381_v59 = vpack.c.bf16 %v1377_v57, %v1377_v57  ;;  %vm1878_vm4 = vcmp.gt.s32.totalorder %v1877_v1, %v4945_v25 }
 0x1a5   : > { %v1382_v60 = vpack.c.bf16 %v1378_v58, %v1378_v58  ;;  %v1879_v6 = vsel %vm1878_vm4, -1e+30, %v4636_v3 }
 0x1a9   : > { %4333 = vmatmul.mubr.msk.bf16.vlgmr.msra.gmra.mxu1 %vm1689_vm3, %v1379_v51  ;;  %4339 = vmatmul.mubr.msk.bf16.vlgmr.msra.gmra.mxu0 %vm1689_vm3, %v1380_v52 }
 0x1aa   : > { %4343 = vmatpush3.bf16.xpose.msra.mxu1 %v1786_v55  ;;  %4349 = vmatpush3.bf16.xpose.msra.mxu0 %v1832_v56 }
 0x1ab   : > { %4344 = vmatprep.mubr.msk.bf16.mxu1 %vm4637_vm1, %v4636_v3  ;;  %4350 = vmatprep.mubr.msk.bf16.mxu0 %vm4637_vm1, %v4636_v3 }
 0x1ac   : > { %4354 = vmatprep.subr.bf16.mxu1 %v4636_v3  ;;  %4360 = vmatprep.subr.bf16.mxu0 %v4636_v3 }
 0x1b1   : > { %4345 = vmatmul.mubr.msk.bf16.vlgmr.msra.gmra.mxu1 %vm1689_vm3, %v1381_v59  ;;  %4351 = vmatmul.mubr.msk.bf16.vlgmr.msra.gmra.mxu0 %vm1689_vm3, %v1382_v60 }
 0x1b2   : > { %4356 = vmatprep.mubr.msk.bf16.mxu1 %vm4637_vm1, %v4636_v3  ;;  %4362 = vmatprep.mubr.msk.bf16.mxu0 %vm4637_vm1, %v4636_v3 }
 0x269   : > { %v1730_v4 = vpop.f32.mrf.mxu1  ;;  %v1776_v5 = vpop.f32.mrf.mxu0 }
 0x26a   : > { %v1731_v8 = vadd.f32 %v4170_v2, %v1730_v4  ;;  %v1777_v9 = vadd.f32 %v4170_v2, %v1776_v5 }
 0x26b   : > { %v4334_v10 = vpop.f32.mrf.mxu1  ;;  %v4340_v11 = vpop.f32.mrf.mxu0 }
 0x26c   : > { %v1880_v12 = vadd.f32 %v1879_v6, %v1731_v8  ;;  %v1881_v13 = vadd.f32 %v1879_v6, %v1777_v9 }
 0x26d   : > { %v1733_v14 = vpop.f32.mrf.mxu1  ;;  %v1779_v15 = vpop.f32.mrf.mxu0 }
 0x26e   : > { %v1884_v21 = vsel %vm1689_vm3, %v1880_v12, -inf  ;;  %v1887_v25 = vsel %vm1689_vm3, %v1881_v13, -inf }
 0x26f   : > { %1885 = vmax.xlane.f32.xlu0 %v1884_v21  ;;  %v4335_v16 = vpop.f32.mrf.mxu1  ;;  %1888 = vmax.xlane.f32.xlu1 %v1887_v25  ;;  %v4341_v17 = vpop.f32.mrf.mxu0 }
 0x271   : > { %v1822_v18 = vpop.f32.mrf.mxu1  ;;  %v1868_v19 = vpop.f32.mrf.mxu0 }
 0x272   : > { %v1823_v20 = vadd.f32 %v4170_v2, %v1822_v18  ;;  %v1869_v22 = vadd.f32 %v4170_v2, %v1868_v19 }
 0x273   : > { %v4346_v23 = vpop.f32.mrf.mxu1  ;;  %v4352_v24 = vpop.f32.mrf.mxu0 }
 0x274   : > { %v1882_v26 = vadd.f32 %v1879_v6, %v1823_v20  ;;  %v1883_v31 = vadd.f32 %v1879_v6, %v1869_v22 }
 0x275   : > { %v1825_v27 = vpop.f32.mrf.mxu1  ;;  %v1871_v28 = vpop.f32.mrf.mxu0 }
 0x276   : > { %v1890_v30 = vsel %vm1689_vm3, %v1882_v26, -inf  ;;  %v1893_v34 = vsel %vm1689_vm3, %v1883_v31, -inf }
 0x277   : > { %1891 = vmax.xlane.f32.xlu0 %v1890_v30  ;;  %v4347_v32 = vpop.f32.mrf.mxu1  ;;  %v4353_v33 = vpop.f32.mrf.mxu0 }
 0x27b   : > { %1894 = vmax.xlane.f32.xlu0 %v1893_v34 }
 0x280   : > { %1534 = vrot.lane.b32.xlu1 %v5005_v61, %s4639_s13 }
 0x2f8   : > { %v1886_v35 = vpop.xlane.xlu0 %1885  ;;  %v1889_v37 = vpop.xlane.xlu1 %1888 }
 0x2f9   : > { %v1896_v38 = vsub.f32 %v1880_v12, %v1886_v35  ;;  %v1897_v39 = vsub.f32 %v1881_v13, %v1889_v37 }
 0x2fb   : > { %v1900_v40 = vmul.f32 1.442695, %v1896_v38  ;;  %v1902_v41 = vmul.f32 1.442695, %v1897_v39 }
 0x2fc   : > { %v1535_v56 = vpop.permute.xlu1 %1534 }
 0x2fd   : > { %4558 = vpow2.f32 %v1900_v40 }
 0x2fe   : > { %4560 = vpow2.f32 %v1902_v41 }
 0x300   : > { %v1892_v46 = vpop.xlane.xlu0 %1891 }
 0x301   : > { %v1898_v48 = vsub.f32 %v1882_v26, %v1892_v46 }
 0x303   : > { %v1904_v50 = vmul.f32 1.442695, %v1898_v48 }
 0x304   : > { %v1895_v47 = vpop.xlane.xlu0 %1894 }
 0x305   : > { %v1899_v49 = vsub.f32 %v1883_v31, %v1895_v47  ;;  %4562 = vpow2.f32 %v1904_v50 }
 0x307   : > { %v1906_v51 = vmul.f32 1.442695, %v1899_v49 }
 0x309   : > { %4564 = vpow2.f32 %v1906_v51 }
 0x30a   : > { %v5021_v42 = vpop.eup %4558 }
 0x30b   : > { %v5023_v43 = vpop.eup %4560  ;;  %v1908_v44 = vsel %vm1689_vm3, %v5021_v42, 0.0 }
 0x30c   : > { %1909 = vadd.xlane.f32.xlu1 %v1908_v44  ;;  %v1911_v45 = vsel %vm1689_vm3, %v5023_v43, 0.0 }
 0x30d   : > { %1912 = vadd.xlane.f32.xlu0 %v1911_v45 }
 0x312   : > { %v5033_v52 = vpop.eup %4562 }
 0x313   : > { %v1914_v54 = vsel %vm1689_vm3, %v5033_v52, 0.0 }
 0x316   : > { %v5035_v53 = vpop.eup %4564 }
 0x317   : > { %v1917_v55 = vsel %vm1689_vm3, %v5035_v53, 0.0 }
 0x31d   : > { %1540 = vrot.lane.b32.xlu1 %v5005_v61, %s4638_s9 }
 0x323   : > { %1537 = vrot.lane.b32.xlu0 %v5005_v61, %s4640_s16 }
 0x341   : > { %1915 = vadd.xlane.f32.xlu1 %v1914_v54 }
 0x342   : > { %1918 = vadd.xlane.f32.xlu0 %v1917_v55 }
 0x395   : > { %v1910_v57 = vpop.xlane.xlu1 %1909 }
 0x396   : > { %v1913_v58 = vpop.xlane.xlu0 %1912  ;;  %4566 = vrcp.f32 %v1910_v57 }
 0x397   : > { %4568 = vrcp.f32 %v1913_v58 }
 0x399   : > { %v1541_v59 = vpop.permute.xlu1 %1540 }
 0x39a   : > { %v1559_v60 = vcombine.low %v1535_v56, %v1541_v59  ;;  %v1560_v62 = vcombine.high %v1535_v56, %v1541_v59  ;;  %v1538_v63 = vpop.permute.xlu0 %1537 }
 0x39b   : > { %v1543_v0 = vcombine.low %v5005_v61, %v1538_v63  ;;  %v1544_v1 = vcombine.high %v5005_v61, %v1538_v63 }
 0x39c   : > { %v1567_v2 = vrot.slane %v1559_v60, %v4948_v29  ;;  %v1574_v4 = vrot.slane %v1560_v62, %v4948_v29 }
 0x39d   : > { %v1551_v5 = vrot.slane %v1543_v0, %v4948_v29  ;;  %v1558_v6 = vrot.slane %v1544_v1, %v4948_v29 }
 0x39f   : > { %v1575_v8 = vcombine.low %v1551_v5, %v1567_v2  ;;  %v1576_v9 = vcombine.high %v1551_v5, %v1567_v2  ;;  %v1591_v10 = vcombine.low %v1558_v6, %v1574_v4  ;;  %v1592_v11 = vcombine.high %v1558_v6, %v1574_v4 }
 0x3a1   : > { %v1583_v12 = vrot.slane %v1575_v8, %v4951_v36  ;;  %v1590_v13 = vrot.slane %v1576_v9, %v4951_v36  ;;  %v1599_v61 = vrot.slane %v1591_v10, %v4951_v36  ;;  %v1606_v14 = vrot.slane %v1592_v11, %v4951_v36 }
 0x3a3   : > { %v1611_v15 = vcombine.low %v1583_v12, %v1590_v13  ;;  %v4168_v21 = vcombine.high %v1583_v12, %v1590_v13  ;;  %v1627_v25 = vcombine.low %v1599_v61, %v1606_v14  ;;  %v4169_v16 = vcombine.high %v1599_v61, %v1606_v14  ;;  %v4567_v27 = vpop.eup %4566 }
 0x3a4   : > { %v4569_v33 = vpop.eup %4568  ;;  %v1924_v41 = vmul.f32 %v4567_v27, %v5021_v42 }
 0x3a5   : > { %v1618_v17 = vrot.slane %v1611_v15, %v4948_v29  ;;  %v1626_v18 = vrot.slane %v4168_v21, %v4948_v29  ;;  %v1634_v19 = vrot.slane %v1627_v25, %v4948_v29  ;;  %v1642_v20 = vrot.slane %v4169_v16, %v4948_v29 }
 0x3a6   : > { %v1925_v44 = vmul.f32 %v4569_v33, %v5023_v43  ;;  %v1928_v49 = vpack.c.bf16 %v1924_v41, %v1924_v41 }
 0x3a7   : > { %v1643_v22 = vcombine.low %v1618_v17, %v1626_v18  ;;  %v1659_v23 = vcombine.low %v1634_v19, %v1642_v20  ;;  %v1644_v24 = vcombine.high %v1618_v17, %v1626_v18  ;;  %v1660_v26 = vcombine.high %v1634_v19, %v1642_v20 }
 0x3a8   : > { %v1929_v50 = vpack.c.bf16 %v1925_v44, %v1925_v44 }
 0x3a9   : > { %v1651_v28 = vrot.slane %v1643_v22, %v4951_v36  ;;  %v1667_v30 = vrot.slane %v1659_v23, %v4951_v36  ;;  %v1658_v31 = vrot.slane %v1644_v24, %v4951_v36  ;;  %v1674_v32 = vrot.slane %v1660_v26, %v4951_v36  ;;  %v4542_v23 = vld [vmem:[%s4837_s18 + $0x8] sm:$0xff]  }
 0x3ab   : > { %v1675_v34 = vcombine.low %v1651_v28, %v1667_v30  ;;  %v1676_v35 = vcombine.high %v1651_v28, %v1667_v30  ;;  %v1677_v37 = vcombine.low %v1658_v31, %v1674_v32  ;;  %v1678_v38 = vcombine.high %v1658_v31, %v1674_v32 }
 0x3ad   : > { %v1679_v39 = vpack.c.bf16 %v1675_v34, %v1675_v34  ;;  %v1680_v40 = vpack.c.bf16 %v1676_v35, %v1676_v35  ;;  %v1681_v47 = vpack.c.bf16 %v1677_v37, %v1677_v37  ;;  %v1682_v48 = vpack.c.bf16 %v1678_v38, %v1678_v38  ;;  %v4543_v35 = vld [vmem:[%s4837_s18] sm:$0xff]   ;;  %s4643_s18 = smov 16  }
 0x3af   : > { %v1937_v45 = vsel %vm1935_vm5, %v1679_v39, 0  ;;  %v1983_v46 = vsel %vm1935_vm5, %v1680_v40, 0  ;;  %v2029_v42 = vsel %vm1935_vm5, %v1681_v47, 0  ;;  %v2075_v43 = vsel %vm1935_vm5, %v1682_v48, 0 }
 0x3b0   : > { %4355 = vmatpush3.bf16.msra.mxu1 %v1937_v45  ;;  %4361 = vmatpush3.bf16.msra.mxu0 %v1983_v46 }
 0x3b1   : > { %4366 = vmatprep.subr.bf16.mxu1 %v4636_v3  ;;  %4372 = vmatprep.subr.bf16.mxu0 %v4636_v3 }
 0x3b3   : > { %4357 = vmatmul.mubr.msk.bf16.vlgmr.msra.gmra.mxu1 %vm1689_vm3, %v1928_v49  ;;  %4363 = vmatmul.mubr.msk.bf16.vlgmr.msra.gmra.mxu0 %vm1689_vm3, %v1929_v50 }
 0x3b4   : > { %4367 = vmatpush3.bf16.msra.mxu1 %v2029_v42  ;;  %4373 = vmatpush3.bf16.msra.mxu0 %v2075_v43 }
 0x3b5   : > { %4368 = vmatprep.mubr.msk.bf16.mxu1 %vm4637_vm1, %v4636_v3  ;;  %4374 = vmatprep.mubr.msk.bf16.mxu0 %vm4637_vm1, %v4636_v3 }
 0x3b6   : > { %4378 = vmatprep.subr.bf16.mxu1 %v4636_v3  ;;  %4386 = vmatprep.subr.bf16.mxu0 %v4636_v3 }
 0x3ca   : > { %v1916_v51 = vpop.xlane.xlu1 %1915 }
 0x3cb   : > { %4570 = vrcp.f32 %v1916_v51  ;;  %v1919_v54 = vpop.xlane.xlu0 %1918 }
 0x3cc   : > { %4572 = vrcp.f32 %v1919_v54 }
 0x3d8   : > { %v4571_v55 = vpop.eup %4570 }
 0x3d9   : > { %v4573_v56 = vpop.eup %4572  ;;  %v1926_v57 = vmul.f32 %v4571_v55, %v5033_v52 }
 0x3da   : > { %v1927_v58 = vmul.f32 %v4573_v56, %v5035_v53 }
 0x3db   : > { %v1930_v59 = vpack.c.bf16 %v1926_v57, %v1926_v57 }
 0x3dc   : > { %v1931_v60 = vpack.c.bf16 %v1927_v58, %v1927_v58 }
 0x3dd   : > { %4369 = vmatmul.mubr.msk.bf16.vlgmr.msra.gmra.mxu1 %vm1689_vm3, %v1930_v59 }
 0x3de   : > { %4375 = vmatmul.mubr.msk.bf16.vlgmr.msra.gmra.mxu0 %vm1689_vm3, %v1931_v60  ;;  %4382 = vmatprep.mubr.msk.bf16.mxu1 %vm4637_vm1, %v4636_v3 }
 0x3df   : > { %4390 = vmatprep.mubr.msk.bf16.mxu0 %vm4637_vm1, %v4636_v3  ;;  %4379 = vmatpush3.bf16.msra.mxu1 %v4542_v23 }
 0x3e0   : > { %4380 = vmatprep.subr.bf16.mxu1 %v4636_v3 }
 0x3e3   : > { %4381 = vmatpush3.bf16.msra.mxu1 %v4543_v35 }
 0x3e4   : > { %4394 = vmatprep.subr.bf16.mxu1 %v4636_v3 }
 0x473   : > { %v1973_v62 = vpop.f32.mrf.mxu1  ;;  %v2019_v63 = vpop.f32.mrf.mxu0 }
 0x475   : > { %v4358_v0 = vpop.f32.mrf.mxu1  ;;  %v4364_v1 = vpop.f32.mrf.mxu0 }
 0x477   : > { %v1976_v2 = vpop.f32.mrf.mxu1  ;;  %v2022_v52 = vpop.f32.mrf.mxu0 }
 0x479   : > { %v4359_v4 = vpop.f32.mrf.mxu1  ;;  %v4365_v53 = vpop.f32.mrf.mxu0 }
 0x47a   : > { %v4544_v53 = vld [vmem:[%s4855_s20 + $0x8] sm:$0xff]  }
 0x49d   : > { %v2065_v5 = vpop.f32.mrf.mxu1 }
 0x49e   : > { %v2117_v6 = vcombine.low %v1973_v62, %v2065_v5  ;;  %v2118_v8 = vcombine.high %v1973_v62, %v2065_v5  ;;  %v2111_v9 = vpop.f32.mrf.mxu0  ;;  %v4545_v5 = vld [vmem:[%s4855_s20] sm:$0xff]   ;;  %s5504_s20 = sld [smem:[#allocation30_spill]] }
 0x49f   : > { %v2133_v10 = vcombine.low %v2019_v63, %v2111_v9  ;;  %v2134_v11 = vcombine.high %v2019_v63, %v2111_v9  ;;  %v4370_v12 = vpop.f32.mrf.mxu1 }
 0x4a0   : > { %v2125_v13 = vrot.slane %v2117_v6, %v4948_v29  ;;  %v2132_v61 = vrot.slane %v2118_v8, %v4948_v29  ;;  %v4376_v14 = vpop.f32.mrf.mxu0  ;;  %v5122_v6 = vld [vmem:[%s5490_s27] sm:$0xf]  ;;  %v4546_v12 = vld [vmem:[%s4850_s30 + $0x8] sm:$0xff]  }
 0x4a1   : > { %v2141_v15 = vrot.slane %v2133_v10, %v4948_v29  ;;  %v2148_v21 = vrot.slane %v2134_v11, %v4948_v29  ;;  %v2068_v25 = vpop.f32.mrf.mxu1  ;;  %4387 = vmatpush3.bf16.msra.mxu0 %v4546_v12 }
 0x4a2   : > { %v2114_v16 = vpop.f32.mrf.mxu0  ;;  %4388 = vmatprep.subr.bf16.mxu0 %v4636_v3 }
 0x4a3   : > { %v2149_v17 = vcombine.low %v2125_v13, %v2141_v15  ;;  %v2150_v18 = vcombine.high %v2125_v13, %v2141_v15  ;;  %v2165_v19 = vcombine.low %v2132_v61, %v2148_v21  ;;  %v2166_v20 = vcombine.high %v2132_v61, %v2148_v21  ;;  %v4371_v22 = vpop.f32.mrf.mxu1  ;;  %v4547_v13 = vld [vmem:[%s4850_s30] sm:$0xff]  }
 0x4a4   : > { %v4377_v24 = vpop.f32.mrf.mxu0  ;;  %v4185_v22 = vld [vmem:[%s5494_s12] ss:$0 sm:$0xff]  ;;  %s5505_s10 = scalar_lea.vmem %s5504_s20, %s4797_s1 }
 0x4a5   : > { %v2157_v26 = vrot.slane %v2149_v17, %v4951_v36  ;;  %v2164_v27 = vrot.slane %v2150_v18, %v4951_v36  ;;  %v2173_v28 = vrot.slane %v2165_v19, %v4951_v36  ;;  %v2180_v30 = vrot.slane %v2166_v20, %v4951_v36  ;;  %4389 = vmatpush3.bf16.msra.mxu0 %v4547_v13  ;;  %v4184_v19 = vld [vmem:[%s5492_s29] ss:$0 sm:$0xff] }
 0x4a6   : > { %4402 = vmatprep.subr.bf16.mxu0 %v4636_v3 }
 0x4a7   : > { %v2185_v31 = vcombine.low %v2157_v26, %v2164_v27  ;;  %v4179_v32 = vcombine.high %v2157_v26, %v2164_v27  ;;  %v2201_v33 = vcombine.low %v2173_v28, %v2180_v30  ;;  %v4180_v34 = vcombine.high %v2173_v28, %v2180_v30 }
 0x4a9   : > { %v2192_v37 = vrot.slane %v2185_v31, %v4948_v29  ;;  %v2200_v38 = vrot.slane %v4179_v32, %v4948_v29  ;;  %v2208_v39 = vrot.slane %v2201_v33, %v4948_v29  ;;  %v2216_v40 = vrot.slane %v4180_v34, %v4948_v29 }
 0x4ab   : > { %v2218_v41 = vcombine.high %v2192_v37, %v2200_v38  ;;  %v2234_v44 = vcombine.high %v2208_v39, %v2216_v40  ;;  %v2217_v45 = vcombine.low %v2192_v37, %v2200_v38  ;;  %v2233_v46 = vcombine.low %v2208_v39, %v2216_v40 }
 0x4ad   : > { %v2232_v47 = vrot.slane %v2218_v41, %v4951_v36  ;;  %v2248_v48 = vrot.slane %v2234_v44, %v4951_v36  ;;  %v2225_v49 = vrot.slane %v2217_v45, %v4951_v36  ;;  %v2241_v50 = vrot.slane %v2233_v46, %v4951_v36 }
 0x4af   : > { %v2251_v42 = vcombine.low %v2232_v47, %v2248_v48  ;;  %v2250_v43 = vcombine.high %v2225_v49, %v2241_v50  ;;  %v2249_v51 = vcombine.low %v2225_v49, %v2241_v50  ;;  %v2252_v54 = vcombine.high %v2232_v47, %v2248_v48 }
 0x4b1   : > { %2258 = vrot.lane.b32.xlu1 %v2251_v42, %s4643_s18  ;;  %2254 = vrot.lane.b32.xlu0 %v2250_v43, %s4644_s3 }
 0x4b5   : > { %2262 = vrot.lane.b32.xlu1 %v2252_v54, %s4645_s28 }
 0x523   : > { %v2259_v55 = vpop.permute.xlu1 %2258  ;;  %v2255_v56 = vpop.permute.xlu0 %2254 }
 0x524   : > { %v2265_v57 = vsel %vm1689_vm3, %v2249_v51, %v2255_v56 }
 0x525   : > { %v2267_v59 = vsel %vm2266_vm6, %v2265_v57, %v2259_v55 }
 0x527   : > { %v2263_v58 = vpop.permute.xlu1 %2262 }
 0x528   : > { %v2269_v60 = vsel %vm2268_vm7, %v2267_v59, %v2263_v58  ;;  %v4548_v58 = vld [vmem:[%s5495_s22 + $0x8] sm:$0xff]  }
 0x529   : > { %v2270_v62 = vpack.c.bf16 %v2269_v60, %v2269_v60 }
 0x52b   : > { %4383 = vmatmul.mubr.msk.bf16.vlgmr.msra.gmra.mxu1 %vm1077_vm2, %v2270_v62 }
 0x52c   : > { %4398 = vmatprep.mubr.msk.bf16.mxu1 %vm4637_vm1, %v4636_v3  ;;  %4395 = vmatpush3.bf16.msra.mxu1 %v4544_v53 }
 0x52d   : > { %4396 = vmatprep.subr.bf16.mxu1 %v4636_v3 }
 0x530   : > { %4397 = vmatpush3.bf16.msra.mxu1 %v4545_v5 }
 0x531   : > { %4410 = vmatprep.subr.bf16.mxu1 %v4636_v3 }
 0x533   : > { %4399 = vmatmul.mubr.msk.bf16.vlgmr.msra.gmra.mxu1 %vm1077_vm2, %v5122_v6 }
 0x534   : > { %4412 = vmatprep.mubr.msk.bf16.mxu1 %vm4637_vm1, %v4636_v3 }
 0x5eb   : > { %v2324_v63 = vpop.f32.mrf.mxu1 }
 0x5ec   : > { %v2330_v0 = vadd.f32 %v2324_v63, %v4917_v7 }
 0x5ed   : > { %v4384_v1 = vpop.f32.mrf.mxu1 }
 0x5ee   : > { %v2333_v2 = vsel %vm1077_vm2, %v2330_v0, 0.0 }
 0x5ef   : > { %2334 = vadd.xlane.f32.xlu0 %v2333_v2  ;;  %v2327_v52 = vpop.f32.mrf.mxu1 }
 0x5f1   : > { %v4385_v4 = vpop.f32.mrf.mxu1 }
 0x5f3   : > { %v2475_v61 = vpop.f32.mrf.mxu1 }
 0x5f5   : > { %v4400_v14 = vpop.f32.mrf.mxu1 }
 0x5f7   : > { %v2478_v15 = vpop.f32.mrf.mxu1 }
 0x5f9   : > { %v4401_v21 = vpop.f32.mrf.mxu1 }
 0x605   : > { %2688 = vrot.lane.b32.xlu0 %v2475_v61, %s4639_s13 }
 0x609   : > { %2694 = vrot.lane.b32.xlu0 %v2475_v61, %s4638_s9 }
 0x678   : > { %v2335_v7 = vpop.xlane.xlu0 %2334 }
 0x679   : > { %v2337_v8 = vmul.f32 0.03125, %v2335_v7 }
 0x67b   : > { %v2338_v9 = vsub.f32 %v2330_v0, %v2337_v8  ;;  %v4549_v0 = vld [vmem:[%s5495_s22] sm:$0xff]  }
 0x67c   : > { %v2689_v27 = vpop.permute.xlu0 %2688 }
 0x67d   : > { %v2339_v10 = vmul.f32 %v2338_v9, %v2338_v9 }
 0x67f   : > { %v2340_v11 = vsel %vm1077_vm2, %v2339_v10, 0.0 }
 0x680   : > { %2341 = vadd.xlane.f32.xlu1 %v2340_v11  ;;  %v2695_v30 = vpop.permute.xlu0 %2694 }
 0x681   : > { %v2713_v33 = vcombine.low %v2689_v27, %v2695_v30  ;;  %v2714_v34 = vcombine.high %v2689_v27, %v2695_v30 }
 0x683   : > { %v2721_v38 = vrot.slane %v2713_v33, %v4948_v29  ;;  %v2728_v39 = vrot.slane %v2714_v34, %v4948_v29 }
 0x691   : > { %2691 = vrot.lane.b32.xlu1 %v2475_v61, %s4640_s16 }
 0x709   : > { %v2342_v25 = vpop.xlane.xlu1 %2341 }
 0x70a   : > { %v2343_v16 = vmul.f32 0.03125, %v2342_v25 }
 0x70c   : > { %v2344_v17 = vadd.f32 1e-05, %v2343_v16 }
 0x70d   : > { %v2692_v28 = vpop.permute.xlu1 %2691 }
 0x70e   : > { %4574 = vrsqrt.f32 %v2344_v17  ;;  %v2697_v31 = vcombine.low %v2475_v61, %v2692_v28  ;;  %v2698_v32 = vcombine.high %v2475_v61, %v2692_v28 }
 0x710   : > { %v2705_v35 = vrot.slane %v2697_v31, %v4948_v29  ;;  %v2712_v37 = vrot.slane %v2698_v32, %v4948_v29 }
 0x712   : > { %v2729_v40 = vcombine.low %v2705_v35, %v2721_v38  ;;  %v2730_v41 = vcombine.high %v2705_v35, %v2721_v38  ;;  %v2745_v44 = vcombine.low %v2712_v37, %v2728_v39  ;;  %v2746_v45 = vcombine.high %v2712_v37, %v2728_v39 }
 0x714   : > { %v2737_v46 = vrot.slane %v2729_v40, %v4951_v36  ;;  %v2744_v47 = vrot.slane %v2730_v41, %v4951_v36  ;;  %v2753_v48 = vrot.slane %v2745_v44, %v4951_v36  ;;  %v2760_v49 = vrot.slane %v2746_v45, %v4951_v36 }
 0x716   : > { %v2765_v50 = vcombine.low %v2737_v46, %v2744_v47  ;;  %v4197_v42 = vcombine.high %v2737_v46, %v2744_v47  ;;  %v2781_v43 = vcombine.low %v2753_v48, %v2760_v49  ;;  %v4198_v51 = vcombine.high %v2753_v48, %v2760_v49 }
 0x718   : > { %v2772_v54 = vrot.slane %v2765_v50, %v4948_v29  ;;  %v2780_v55 = vrot.slane %v4197_v42, %v4948_v29  ;;  %v2788_v56 = vrot.slane %v2781_v43, %v4948_v29  ;;  %v2796_v57 = vrot.slane %v4198_v51, %v4948_v29 }
 0x71a   : > { %v2797_v59 = vcombine.low %v2772_v54, %v2780_v55  ;;  %v2813_v60 = vcombine.low %v2788_v56, %v2796_v57  ;;  %v2798_v62 = vcombine.high %v2772_v54, %v2780_v55  ;;  %v2814_v63 = vcombine.high %v2788_v56, %v2796_v57 }
 0x71b   : > { %v4575_v18 = vpop.eup %4574 }
 0x71c   : > { %v2346_v20 = vmul.f32 %v4575_v18, %v2338_v9  ;;  %v2805_v1 = vrot.slane %v2797_v59, %v4951_v36  ;;  %v2821_v2 = vrot.slane %v2813_v60, %v4951_v36  ;;  %v2812_v52 = vrot.slane %v2798_v62, %v4951_v36 }
 0x71d   : > { %v2828_v4 = vrot.slane %v2814_v63, %v4951_v36 }
 0x71e   : > { %v2353_v23 = vmul.f32 %v4184_v19, %v2346_v20  ;;  %v2829_v53 = vcombine.low %v2805_v1, %v2821_v2  ;;  %v2830_v5 = vcombine.high %v2805_v1, %v2821_v2 }
 0x71f   : > { %v5173_v7 = vcombine.low %v2812_v52, %v2828_v4  ;;  %v5175_v8 = vcombine.high %v2812_v52, %v2828_v4 }
 0x720   : > { %v5147_v24 = vadd.f32 %v4185_v22, %v2353_v23  ;;  %v2833_v9 = vpack.c.bf16 %v2829_v53, %v2829_v53  ;;  %v2834_v10 = vpack.c.bf16 %v2830_v5, %v2830_v5 }
 0x721   : > { %v2835_v59 = vpack.c.bf16 %v5173_v7, %v5173_v7  ;;  %v2836_v60 = vpack.c.bf16 %v5175_v8, %v5175_v8  ;;  %v4201_v8 = vld [vmem:[%s5497_s2] ss:$0 sm:$0xff] }
 0x722   : > { %v2361_v26 = vpack.c.bf16 %v5147_v24, %v5147_v24  ;;  %v2997_v11 = vsel %vm1689_vm3, %v2833_v9, 0  ;;  %v3043_v12 = vsel %vm1689_vm3, %v2834_v10, 0 }
 0x723   : > { %4411 = vmatpush3.bf16.xpose.msra.mxu1 %v2997_v11  ;;  %v3089_v2 = vsel %vm1689_vm3, %v2835_v59, 0  ;;  %v3135_v52 = vsel %vm1689_vm3, %v2836_v60, 0 }
 0x724   : > { %4391 = vmatmul.mubr.msk.bf16.vlgmr.msra.gmra.mxu0 %vm1077_vm2, %v2361_v26  ;;  %4422 = vmatprep.subr.bf16.mxu1 %v4636_v3 }
 0x725   : > { %4406 = vmatprep.mubr.msk.bf16.mxu0 %vm4637_vm1, %v4636_v3  ;;  %4403 = vmatpush3.bf16.msra.mxu0 %v4548_v58 }
 0x726   : > { %4404 = vmatprep.subr.bf16.mxu0 %v4636_v3 }
 0x729   : > { %4405 = vmatpush3.bf16.msra.mxu0 %v4549_v0 }
 0x72a   : > { %4416 = vmatprep.subr.bf16.mxu0 %v4636_v3 }
 0x72c   : > { %4407 = vmatmul.mubr.msk.bf16.vlgmr.msra.gmra.mxu0 %vm1077_vm2, %v5122_v6 }
 0x72d   : > { %4417 = vmatpush3.bf16.xpose.msra.mxu0 %v3043_v12  ;;  %4418 = vmatprep.mubr.msk.bf16.mxu0 %vm4637_vm1, %v4636_v3 }
 0x72e   : > { %4428 = vmatprep.subr.bf16.mxu0 %v4636_v3 }
 0x7e4   : > { %v2416_v13 = vpop.f32.mrf.mxu0 }
 0x7e5   : > { %2541 = vrot.lane.b32.xlu0 %v2416_v13, %s4640_s16  ;;  %2538 = vrot.lane.b32.xlu1 %v2416_v13, %s4639_s13 }
 0x7e6   : > { %v4392_v61 = vpop.f32.mrf.mxu0 }
 0x7e8   : > { %v2419_v6 = vpop.f32.mrf.mxu0 }
 0x7e9   : > { %2544 = vrot.lane.b32.xlu1 %v2416_v13, %s4638_s9 }
 0x7ea   : > { %v4393_v14 = vpop.f32.mrf.mxu0 }
 0x7ec   : > { %v5189_v15 = vpop.f32.mrf.mxu0 }
 0x7ee   : > { %v4408_v21 = vpop.f32.mrf.mxu0 }
 0x7f0   : > { %v2534_v25 = vpop.f32.mrf.mxu0 }
 0x7f2   : > { %v4409_v16 = vpop.f32.mrf.mxu0 }
 0x857   : > { %v2542_v17 = vpop.permute.xlu0 %2541  ;;  %v2539_v18 = vpop.permute.xlu1 %2538 }
 0x858   : > { %v2547_v19 = vcombine.low %v2416_v13, %v2542_v17  ;;  %v2548_v20 = vcombine.high %v2416_v13, %v2542_v17 }
 0x85a   : > { %v2555_v27 = vrot.slane %v2547_v19, %v4948_v29  ;;  %v2562_v28 = vrot.slane %v2548_v20, %v4948_v29 }
 0x85b   : > { %v2545_v22 = vpop.permute.xlu1 %2544 }
 0x85c   : > { %v2563_v23 = vcombine.low %v2539_v18, %v2545_v22  ;;  %v2564_v26 = vcombine.high %v2539_v18, %v2545_v22 }
 0x85e   : > { %v2571_v30 = vrot.slane %v2563_v23, %v4948_v29  ;;  %v2578_v31 = vrot.slane %v2564_v26, %v4948_v29 }
 0x860   : > { %v2579_v32 = vcombine.low %v2555_v27, %v2571_v30  ;;  %v2580_v33 = vcombine.high %v2555_v27, %v2571_v30  ;;  %v2595_v34 = vcombine.low %v2562_v28, %v2578_v31  ;;  %v2596_v35 = vcombine.high %v2562_v28, %v2578_v31 }
 0x862   : > { %v2587_v37 = vrot.slane %v2579_v32, %v4951_v36  ;;  %v2594_v38 = vrot.slane %v2580_v33, %v4951_v36  ;;  %v2603_v39 = vrot.slane %v2595_v34, %v4951_v36  ;;  %v2610_v40 = vrot.slane %v2596_v35, %v4951_v36 }
 0x864   : > { %v2615_v41 = vcombine.low %v2587_v37, %v2594_v38  ;;  %v4195_v44 = vcombine.high %v2587_v37, %v2594_v38  ;;  %v2631_v45 = vcombine.low %v2603_v39, %v2610_v40  ;;  %v4196_v46 = vcombine.high %v2603_v39, %v2610_v40 }
 0x866   : > { %v2622_v47 = vrot.slane %v2615_v41, %v4948_v29  ;;  %v2630_v48 = vrot.slane %v4195_v44, %v4948_v29  ;;  %v2638_v49 = vrot.slane %v2631_v45, %v4948_v29  ;;  %v2646_v50 = vrot.slane %v4196_v46, %v4948_v29 }
 0x868   : > { %v2647_v42 = vcombine.low %v2622_v47, %v2630_v48  ;;  %v2663_v43 = vcombine.low %v2638_v49, %v2646_v50  ;;  %v2648_v51 = vcombine.high %v2622_v47, %v2630_v48  ;;  %v2664_v54 = vcombine.high %v2638_v49, %v2646_v50 }
 0x86a   : > { %v2655_v55 = vrot.slane %v2647_v42, %v4951_v36  ;;  %v2671_v56 = vrot.slane %v2663_v43, %v4951_v36  ;;  %v2662_v0 = vrot.slane %v2648_v51, %v4951_v36  ;;  %v2678_v1 = vrot.slane %v2664_v54, %v4951_v36 }
 0x86c   : > { %v2679_v57 = vcombine.low %v2655_v55, %v2671_v56  ;;  %v2680_v58 = vcombine.high %v2655_v55, %v2671_v56  ;;  %v2681_v4 = vcombine.low %v2662_v0, %v2678_v1  ;;  %v2682_v53 = vcombine.high %v2662_v0, %v2678_v1 }
 0x86e   : > { %v2683_v62 = vpack.c.bf16 %v2679_v57, %v2679_v57  ;;  %v2684_v63 = vpack.c.bf16 %v2680_v58, %v2680_v58  ;;  %v2685_v5 = vpack.c.bf16 %v2681_v4, %v2681_v4  ;;  %v2686_v7 = vpack.c.bf16 %v2682_v53, %v2682_v53 }
 0x870   : > { %4413 = vmatmul.mubr.msk.bf16.vlgmr.msra.gmra.mxu1 %vm1689_vm3, %v2683_v62  ;;  %4419 = vmatmul.mubr.msk.bf16.vlgmr.msra.gmra.mxu0 %vm1689_vm3, %v2684_v63 }
 0x871   : > { %4423 = vmatpush3.bf16.xpose.msra.mxu1 %v3089_v2  ;;  %4429 = vmatpush3.bf16.xpose.msra.mxu0 %v3135_v52 }
 0x872   : > { %4424 = vmatprep.mubr.msk.bf16.mxu1 %vm4637_vm1, %v4636_v3  ;;  %4430 = vmatprep.mubr.msk.bf16.mxu0 %vm4637_vm1, %v4636_v3 }
 0x873   : > { %4434 = vmatprep.subr.bf16.mxu1 %v4636_v3  ;;  %4440 = vmatprep.subr.bf16.mxu0 %v4636_v3 }
 0x878   : > { %4425 = vmatmul.mubr.msk.bf16.vlgmr.msra.gmra.mxu1 %vm1689_vm3, %v2685_v5  ;;  %4431 = vmatmul.mubr.msk.bf16.vlgmr.msra.gmra.mxu0 %vm1689_vm3, %v2686_v7 }
 0x879   : > { %4436 = vmatprep.mubr.msk.bf16.mxu1 %vm4637_vm1, %v4636_v3  ;;  %4442 = vmatprep.mubr.msk.bf16.mxu0 %vm4637_vm1, %v4636_v3 }
 0x930   : > { %v3033_v9 = vpop.f32.mrf.mxu1  ;;  %v3079_v10 = vpop.f32.mrf.mxu0 }
 0x931   : > { %v3034_v11 = vadd.f32 %v4201_v8, %v3033_v9  ;;  %v3080_v12 = vadd.f32 %v4201_v8, %v3079_v10 }
 0x932   : > { %v4414_v13 = vpop.f32.mrf.mxu1  ;;  %v4420_v61 = vpop.f32.mrf.mxu0 }
 0x933   : > { %v3177_v6 = vsel %vm1689_vm3, %v3034_v11, -inf  ;;  %v3180_v14 = vsel %vm1689_vm3, %v3080_v12, -inf }
 0x934   : > { %3178 = vmax.xlane.f32.xlu0 %v3177_v6  ;;  %v3036_v21 = vpop.f32.mrf.mxu1  ;;  %3181 = vmax.xlane.f32.xlu1 %v3180_v14  ;;  %v3082_v25 = vpop.f32.mrf.mxu0 }
 0x936   : > { %v4415_v16 = vpop.f32.mrf.mxu1  ;;  %v4421_v17 = vpop.f32.mrf.mxu0 }
 0x938   : > { %v3125_v18 = vpop.f32.mrf.mxu1  ;;  %v3171_v19 = vpop.f32.mrf.mxu0 }
 0x939   : > { %v3126_v20 = vadd.f32 %v4201_v8, %v3125_v18  ;;  %v3172_v26 = vadd.f32 %v4201_v8, %v3171_v19 }
 0x93a   : > { %v4426_v22 = vpop.f32.mrf.mxu1  ;;  %v4432_v23 = vpop.f32.mrf.mxu0 }
 0x93b   : > { %v3183_v27 = vsel %vm1689_vm3, %v3126_v20, -inf  ;;  %v3186_v33 = vsel %vm1689_vm3, %v3172_v26, -inf }
 0x93c   : > { %3184 = vmax.xlane.f32.xlu0 %v3183_v27  ;;  %v3128_v28 = vpop.f32.mrf.mxu1  ;;  %v3174_v30 = vpop.f32.mrf.mxu0 }
 0x93e   : > { %v4427_v31 = vpop.f32.mrf.mxu1  ;;  %v4433_v32 = vpop.f32.mrf.mxu0 }
 0x940   : > { %3187 = vmax.xlane.f32.xlu0 %v3186_v33 }
 0x945   : > { %2838 = vrot.lane.b32.xlu1 %v5189_v15, %s4639_s13  ;;  %s5499_s13 = sld [smem:[#allocation12_spill]] }
 0x9bd   : > { %v3179_v34 = vpop.xlane.xlu0 %3178  ;;  %v3182_v35 = vpop.xlane.xlu1 %3181 }
 0x9be   : > { %v3189_v37 = vsub.f32 %v3034_v11, %v3179_v34  ;;  %v3190_v38 = vsub.f32 %v3080_v12, %v3182_v35 }
 0x9c0   : > { %v3193_v39 = vmul.f32 1.442695, %v3189_v37  ;;  %v3195_v40 = vmul.f32 1.442695, %v3190_v38 }
 0x9c1   : > { %v2839_v57 = vpop.permute.xlu1 %2838 }
 0x9c2   : > { %4576 = vpow2.f32 %v3193_v39 }
 0x9c3   : > { %4578 = vpow2.f32 %v3195_v40 }
 0x9c5   : > { %v3185_v47 = vpop.xlane.xlu0 %3184 }
 0x9c6   : > { %v3191_v49 = vsub.f32 %v3126_v20, %v3185_v47 }
 0x9c8   : > { %v3197_v42 = vmul.f32 1.442695, %v3191_v49 }
 0x9c9   : > { %v3188_v48 = vpop.xlane.xlu0 %3187 }
 0x9ca   : > { %v3192_v50 = vsub.f32 %v3172_v26, %v3188_v48  ;;  %4580 = vpow2.f32 %v3197_v42 }
 0x9cc   : > { %v3199_v43 = vmul.f32 1.442695, %v3192_v50 }
 0x9ce   : > { %4582 = vpow2.f32 %v3199_v43 }
 0x9cf   : > { %v5238_v41 = vpop.eup %4576 }
 0x9d0   : > { %v5240_v44 = vpop.eup %4578  ;;  %v3201_v45 = vsel %vm1689_vm3, %v5238_v41, 0.0 }
 0x9d1   : > { %3202 = vadd.xlane.f32.xlu1 %v3201_v45  ;;  %v3204_v46 = vsel %vm1689_vm3, %v5240_v44, 0.0 }
 0x9d2   : > { %3205 = vadd.xlane.f32.xlu0 %v3204_v46 }
 0x9d7   : > { %v5250_v51 = vpop.eup %4580 }
 0x9d8   : > { %v3207_v55 = vsel %vm1689_vm3, %v5250_v51, 0.0 }
 0x9db   : > { %v5252_v54 = vpop.eup %4582 }
 0x9dc   : > { %v3210_v56 = vsel %vm1689_vm3, %v5252_v54, 0.0 }
 0x9e2   : > { %2844 = vrot.lane.b32.xlu1 %v5189_v15, %s4638_s9  ;;  %s5498_s9 = sld [smem:[#allocation11_spill]] }
 0x9e8   : > { %2841 = vrot.lane.b32.xlu0 %v5189_v15, %s4640_s16 }
 0xa06   : > { %3208 = vadd.xlane.f32.xlu1 %v3207_v55 }
 0xa07   : > { %3211 = vadd.xlane.f32.xlu0 %v3210_v56 }
 0xa5a   : > { %v3203_v58 = vpop.xlane.xlu1 %3202 }
 0xa5b   : > { %v3206_v59 = vpop.xlane.xlu0 %3205  ;;  %4584 = vrcp.f32 %v3203_v58 }
 0xa5c   : > { %4586 = vrcp.f32 %v3206_v59 }
 0xa5e   : > { %v2845_v60 = vpop.permute.xlu1 %2844 }
 0xa5f   : > { %v2863_v62 = vcombine.low %v2839_v57, %v2845_v60  ;;  %v2864_v63 = vcombine.high %v2839_v57, %v2845_v60  ;;  %v2842_v0 = vpop.permute.xlu0 %2841 }
 0xa60   : > { %v2847_v1 = vcombine.low %v5189_v15, %v2842_v0  ;;  %v2848_v2 = vcombine.high %v5189_v15, %v2842_v0 }
 0xa61   : > { %v2871_v52 = vrot.slane %v2863_v62, %v4948_v29  ;;  %v2878_v4 = vrot.slane %v2864_v63, %v4948_v29 }
 0xa62   : > { %v2855_v53 = vrot.slane %v2847_v1, %v4948_v29  ;;  %v2862_v5 = vrot.slane %v2848_v2, %v4948_v29 }
 0xa64   : > { %v2879_v7 = vcombine.low %v2855_v53, %v2871_v52  ;;  %v2880_v8 = vcombine.high %v2855_v53, %v2871_v52  ;;  %v2895_v9 = vcombine.low %v2862_v5, %v2878_v4  ;;  %v2896_v10 = vcombine.high %v2862_v5, %v2878_v4 }
 0xa66   : > { %v2887_v11 = vrot.slane %v2879_v7, %v4951_v36  ;;  %v2894_v12 = vrot.slane %v2880_v8, %v4951_v36  ;;  %v2903_v15 = vrot.slane %v2895_v9, %v4951_v36  ;;  %v2910_v13 = vrot.slane %v2896_v10, %v4951_v36 }
 0xa68   : > { %v2915_v61 = vcombine.low %v2887_v11, %v2894_v12  ;;  %v4199_v6 = vcombine.high %v2887_v11, %v2894_v12  ;;  %v2931_v14 = vcombine.low %v2903_v15, %v2910_v13  ;;  %v4200_v21 = vcombine.high %v2903_v15, %v2910_v13  ;;  %v4585_v26 = vpop.eup %4584 }
 0xa69   : > { %v4587_v32 = vpop.eup %4586  ;;  %v3217_v40 = vmul.f32 %v4585_v26, %v5238_v41 }
 0xa6a   : > { %v2922_v25 = vrot.slane %v2915_v61, %v4948_v29  ;;  %v2930_v16 = vrot.slane %v4199_v6, %v4948_v29  ;;  %v2938_v17 = vrot.slane %v2931_v14, %v4948_v29  ;;  %v2946_v18 = vrot.slane %v4200_v21, %v4948_v29 }
 0xa6b   : > { %v3218_v45 = vmul.f32 %v4587_v32, %v5240_v44  ;;  %v3221_v50 = vpack.c.bf16 %v3217_v40, %v3217_v40 }
 0xa6c   : > { %v2947_v19 = vcombine.low %v2922_v25, %v2930_v16  ;;  %v2963_v20 = vcombine.low %v2938_v17, %v2946_v18  ;;  %v2948_v22 = vcombine.high %v2922_v25, %v2930_v16  ;;  %v2964_v23 = vcombine.high %v2938_v17, %v2946_v18 }
 0xa6d   : > { %v3222_v42 = vpack.c.bf16 %v3218_v45, %v3218_v45 }
 0xa6e   : > { %v2955_v27 = vrot.slane %v2947_v19, %v4951_v36  ;;  %v2971_v28 = vrot.slane %v2963_v20, %v4951_v36  ;;  %v2962_v30 = vrot.slane %v2948_v22, %v4951_v36  ;;  %v2978_v31 = vrot.slane %v2964_v23, %v4951_v36  ;;  %v4550_v20 = vld [vmem:[%s5498_s9 + $0x8] sm:$0xff]  }
 0xa70   : > { %v2979_v33 = vcombine.low %v2955_v27, %v2971_v28  ;;  %v2980_v34 = vcombine.high %v2955_v27, %v2971_v28  ;;  %v2981_v35 = vcombine.low %v2962_v30, %v2978_v31  ;;  %v2982_v37 = vcombine.high %v2962_v30, %v2978_v31 }
 0xa72   : > { %v2983_v38 = vpack.c.bf16 %v2979_v33, %v2979_v33  ;;  %v2984_v39 = vpack.c.bf16 %v2980_v34, %v2980_v34  ;;  %v2985_v48 = vpack.c.bf16 %v2981_v35, %v2981_v35  ;;  %v2986_v49 = vpack.c.bf16 %v2982_v37, %v2982_v37  ;;  %v4551_v34 = vld [vmem:[%s5498_s9] sm:$0xff]  }
 0xa74   : > { %v3229_v46 = vsel %vm1935_vm5, %v2983_v38, 0  ;;  %v3275_v47 = vsel %vm1935_vm5, %v2984_v39, 0  ;;  %v3321_v41 = vsel %vm1935_vm5, %v2985_v48, 0  ;;  %v3367_v44 = vsel %vm1935_vm5, %v2986_v49, 0 }
 0xa75   : > { %4435 = vmatpush3.bf16.msra.mxu1 %v3229_v46  ;;  %4441 = vmatpush3.bf16.msra.mxu0 %v3275_v47 }
 0xa76   : > { %4446 = vmatprep.subr.bf16.mxu1 %v4636_v3  ;;  %4452 = vmatprep.subr.bf16.mxu0 %v4636_v3 }
 0xa78   : > { %4437 = vmatmul.mubr.msk.bf16.vlgmr.msra.gmra.mxu1 %vm1689_vm3, %v3221_v50  ;;  %4443 = vmatmul.mubr.msk.bf16.vlgmr.msra.gmra.mxu0 %vm1689_vm3, %v3222_v42 }
 0xa79   : > { %4447 = vmatpush3.bf16.msra.mxu1 %v3321_v41  ;;  %4453 = vmatpush3.bf16.msra.mxu0 %v3367_v44 }
 0xa7a   : > { %4448 = vmatprep.mubr.msk.bf16.mxu1 %vm4637_vm1, %v4636_v3  ;;  %4454 = vmatprep.mubr.msk.bf16.mxu0 %vm4637_vm1, %v4636_v3 }
 0xa7b   : > { %4458 = vmatprep.subr.bf16.mxu1 %v4636_v3  ;;  %4466 = vmatprep.subr.bf16.mxu0 %v4636_v3 }
 0xa8f   : > { %v3209_v43 = vpop.xlane.xlu1 %3208 }
 0xa90   : > { %4588 = vrcp.f32 %v3209_v43  ;;  %v3212_v55 = vpop.xlane.xlu0 %3211 }
 0xa91   : > { %4590 = vrcp.f32 %v3212_v55 }
 0xa9d   : > { %v4589_v56 = vpop.eup %4588 }
 0xa9e   : > { %v4591_v57 = vpop.eup %4590  ;;  %v3219_v58 = vmul.f32 %v4589_v56, %v5250_v51 }
 0xa9f   : > { %v3220_v59 = vmul.f32 %v4591_v57, %v5252_v54 }
 0xaa0   : > { %v3223_v60 = vpack.c.bf16 %v3219_v58, %v3219_v58 }
 0xaa1   : > { %v3224_v62 = vpack.c.bf16 %v3220_v59, %v3220_v59 }
 0xaa2   : > { %4449 = vmatmul.mubr.msk.bf16.vlgmr.msra.gmra.mxu1 %vm1689_vm3, %v3223_v60 }
 0xaa3   : > { %4455 = vmatmul.mubr.msk.bf16.vlgmr.msra.gmra.mxu0 %vm1689_vm3, %v3224_v62  ;;  %4462 = vmatprep.mubr.msk.bf16.mxu1 %vm4637_vm1, %v4636_v3 }
 0xaa4   : > { %4470 = vmatprep.mubr.msk.bf16.mxu0 %vm4637_vm1, %v4636_v3  ;;  %4459 = vmatpush3.bf16.msra.mxu1 %v4550_v20 }
 0xaa5   : > { %4460 = vmatprep.subr.bf16.mxu1 %v4636_v3 }
 0xaa8   : > { %4461 = vmatpush3.bf16.msra.mxu1 %v4551_v34 }
 0xaa9   : > { %4474 = vmatprep.subr.bf16.mxu1 %v4636_v3 }
 0xb38   : > { %v3265_v63 = vpop.f32.mrf.mxu1  ;;  %v3311_v0 = vpop.f32.mrf.mxu0 }
 0xb3a   : > { %v4438_v1 = vpop.f32.mrf.mxu1  ;;  %v4444_v2 = vpop.f32.mrf.mxu0 }
 0xb3c   : > { %v3268_v52 = vpop.f32.mrf.mxu1  ;;  %v3314_v51 = vpop.f32.mrf.mxu0 }
 0xb3e   : > { %v4439_v4 = vpop.f32.mrf.mxu1  ;;  %v4445_v54 = vpop.f32.mrf.mxu0 }
 0xb62   : > { %v3357_v53 = vpop.f32.mrf.mxu1 }
 0xb63   : > { %v3409_v5 = vcombine.low %v3265_v63, %v3357_v53  ;;  %v3410_v7 = vcombine.high %v3265_v63, %v3357_v53  ;;  %v3403_v8 = vpop.f32.mrf.mxu0 }
 0xb64   : > { %v3425_v9 = vcombine.low %v3311_v0, %v3403_v8  ;;  %v3426_v10 = vcombine.high %v3311_v0, %v3403_v8  ;;  %v4450_v11 = vpop.f32.mrf.mxu1  ;;  %v4553_v8 = vld [vmem:[%s5499_s13] sm:$0xff]  }
 0xb65   : > { %v3417_v12 = vrot.slane %v3409_v5, %v4948_v29  ;;  %v3424_v15 = vrot.slane %v3410_v7, %v4948_v29  ;;  %v4456_v13 = vpop.f32.mrf.mxu0  ;;  %v4552_v7 = vld [vmem:[%s5499_s13 + $0x8] sm:$0xff]  }
 0xb66   : > { %v3433_v61 = vrot.slane %v3425_v9, %v4948_v29  ;;  %v3440_v6 = vrot.slane %v3426_v10, %v4948_v29  ;;  %v3360_v14 = vpop.f32.mrf.mxu1  ;;  %4467 = vmatpush3.bf16.msra.mxu0 %v4552_v7  ;;  %v4555_v9 = vld [vmem:[%s4892_s14 + $0x10] sm:$0xff]  }
 0xb67   : > { %v3406_v21 = vpop.f32.mrf.mxu0  ;;  %4468 = vmatprep.subr.bf16.mxu0 %v4636_v3 }
 0xb68   : > { %v3441_v25 = vcombine.low %v3417_v12, %v3433_v61  ;;  %v3442_v16 = vcombine.high %v3417_v12, %v3433_v61  ;;  %v3457_v17 = vcombine.low %v3424_v15, %v3440_v6  ;;  %v3458_v18 = vcombine.high %v3424_v15, %v3440_v6  ;;  %v4451_v19 = vpop.f32.mrf.mxu1  ;;  %v4216_v6 = vld [vmem:[%s5503_s23] ss:$0 sm:$0xff] }
 0xb69   : > { %v4457_v22 = vpop.f32.mrf.mxu0 }
 0xb6a   : > { %v3449_v23 = vrot.slane %v3441_v25, %v4951_v36  ;;  %v3456_v26 = vrot.slane %v3442_v16, %v4951_v36  ;;  %v3465_v27 = vrot.slane %v3457_v17, %v4951_v36  ;;  %v3472_v28 = vrot.slane %v3458_v18, %v4951_v36  ;;  %4469 = vmatpush3.bf16.msra.mxu0 %v4553_v8  ;;  %v4556_v16 = vld [vmem:[%s4892_s14 + $0x8] sm:$0xff]   ;;  %v4557_v17 = vld [vmem:[%s4892_s14] sm:$0xff]  }
 0xb6b   : > { %v4217_v18 = vld [vmem:[%s5505_s10] ss:$0 sm:$0xff] }
 0xb6c   : > { %v3477_v30 = vcombine.low %v3449_v23, %v3456_v26  ;;  %v4210_v31 = vcombine.high %v3449_v23, %v3456_v26  ;;  %v3493_v32 = vcombine.low %v3465_v27, %v3472_v28  ;;  %v4211_v33 = vcombine.high %v3465_v27, %v3472_v28 }
 0xb6e   : > { %v3484_v35 = vrot.slane %v3477_v30, %v4948_v29  ;;  %v3492_v37 = vrot.slane %v4210_v31, %v4948_v29  ;;  %v3500_v38 = vrot.slane %v3493_v32, %v4948_v29  ;;  %v3508_v39 = vrot.slane %v4211_v33, %v4948_v29 }
 0xb70   : > { %v3510_v40 = vcombine.high %v3484_v35, %v3492_v37  ;;  %v3526_v45 = vcombine.high %v3500_v38, %v3508_v39  ;;  %v3509_v46 = vcombine.low %v3484_v35, %v3492_v37  ;;  %v3525_v47 = vcombine.low %v3500_v38, %v3508_v39 }
 0xb72   : > { %v3524_v48 = vrot.slane %v3510_v40, %v4951_v36  ;;  %v3540_v49 = vrot.slane %v3526_v45, %v4951_v36  ;;  %v3517_v50 = vrot.slane %v3509_v46, %v4951_v36  ;;  %v3533_v42 = vrot.slane %v3525_v47, %v4951_v36 }
 0xb74   : > { %v3543_v41 = vcombine.low %v3524_v48, %v3540_v49  ;;  %v3542_v44 = vcombine.high %v3517_v50, %v3533_v42  ;;  %v3541_v43 = vcombine.low %v3517_v50, %v3533_v42  ;;  %v3544_v29 = vcombine.high %v3524_v48, %v3540_v49  ;;  %v4227_v42 = vld [vmem:[%s1040_s11] ss:$0 sm:$0xff] }
 0xb76   : > { %3550 = vrot.lane.b32.xlu1 %v3543_v41, %s4643_s18  ;;  %3546 = vrot.lane.b32.xlu0 %v3542_v44, %s4644_s3  ;;  %s5500_s18 = sld [smem:[#allocation27_spill]]  ;;  %v4228_v44 = vld [vmem:[%s1043_s15] ss:$0 sm:$0xff] }
 0xb7a   : > { %3554 = vrot.lane.b32.xlu1 %v3544_v29, %s4645_s28 }
 0xb7c   : > { %s5501_s3 = scalar_lea.vmem %s5500_s18, %s4797_s1 }
 0xb7d   : > { %v4215_v13 = vld [vmem:[%s5501_s3] ss:$0 sm:$0xff] }
 0xbe8   : > { %v3551_v55 = vpop.permute.xlu1 %3550  ;;  %v3547_v56 = vpop.permute.xlu0 %3546 }
 0xbe9   : > { %v3557_v57 = vsel %vm1689_vm3, %v3541_v43, %v3547_v56 }
 0xbea   : > { %v3558_v59 = vsel %vm2266_vm6, %v3557_v57, %v3551_v55 }
 0xbec   : > { %v3555_v58 = vpop.permute.xlu1 %3554 }
 0xbed   : > { %v3559_v60 = vsel %vm2268_vm7, %v3558_v59, %v3555_v58 }
 0xbee   : > { %v3560_v36 = vpack.c.bf16 %v3559_v60, %v3559_v60 }
 0xbf0   : > { %4463 = vmatmul.mubr.msk.bf16.vlgmr.msra.gmra.mxu1 %vm1077_vm2, %v3560_v36 }
 0xbf1   : > { %4482 = vmatprep.mubr.msk.bf16.mxu1 %vm4637_vm1, %v4636_v3 }
 0xcb0   : > { %v3614_v62 = vpop.f32.mrf.mxu1 }
 0xcb1   : > { %v3620_v63 = vadd.f32 %v3614_v62, %v5147_v24  ;;  %v4554_v24 = vld [vmem:[%s4892_s14 + $0x18] sm:$0xff]  }
 0xcb2   : > { %v4464_v0 = vpop.f32.mrf.mxu1  ;;  %4475 = vmatpush3.bf16.msra.mxu1 %v4554_v24 }
 0xcb3   : > { %v3623_v1 = vsel %vm1077_vm2, %v3620_v63, 0.0  ;;  %4476 = vmatprep.subr.bf16.mxu1 %v4636_v3 }
 0xcb4   : > { %3624 = vadd.xlane.f32.xlu0 %v3623_v1  ;;  %v3617_v2 = vpop.f32.mrf.mxu1 }
 0xcb6   : > { %v4465_v52 = vpop.f32.mrf.mxu1  ;;  %4477 = vmatpush3.bf16.msra.mxu1 %v4555_v9 }
 0xcb7   : > { %4478 = vmatprep.subr.bf16.mxu1 %v4636_v3 }
 0xcba   : > { %4479 = vmatpush3.bf16.msra.mxu1 %v4556_v16 }
 0xcbb   : > { %4480 = vmatprep.subr.bf16.mxu1 %v4636_v3  ;;  %v4221_v3 = vld [vmem:[%s1037_s8] ss:$0 sm:$0xff] }
 0xcbe   : > { %4481 = vmatpush3.bf16.msra.mxu1 %v4557_v17 }
 0xd3d   : > { %v3625_v51 = vpop.xlane.xlu0 %3624 }
 0xd3e   : > { %v3626_v4 = vmul.f32 0.03125, %v3625_v51 }
 0xd40   : > { %v3627_v54 = vsub.f32 %v3620_v63, %v3626_v4 }
 0xd42   : > { %v3628_v53 = vmul.f32 %v3627_v54, %v3627_v54 }
 0xd44   : > { %v3629_v5 = vsel %vm1077_vm2, %v3628_v53, 0.0 }
 0xd45   : > { %3630 = vadd.xlane.f32.xlu1 %v3629_v5 }
 0xdce   : > { %v3631_v10 = vpop.xlane.xlu1 %3630 }
 0xdcf   : > { %v3632_v11 = vmul.f32 0.03125, %v3631_v10 }
 0xdd1   : > { %v3633_v12 = vadd.f32 1e-05, %v3632_v11 }
 0xdd3   : > { %4592 = vrsqrt.f32 %v3633_v12 }
 0xde0   : > { %v4593_v15 = vpop.eup %4592 }
 0xde1   : > { %v3635_v61 = vmul.f32 %v4593_v15, %v3627_v54 }
 0xde3   : > { %v3642_v14 = vmul.f32 %v4215_v13, %v3635_v61 }
 0xde5   : > { %v3649_v21 = vadd.f32 %v4216_v6, %v3642_v14 }
 0xde7   : > { %v3650_v25 = vpack.c.bf16 %v3649_v21, %v3649_v21 }
 0xde9   : > { %4471 = vmatmul.mubr.msk.bf16.vlgmr.msra.gmra.mxu0 %vm1077_vm2, %v3650_v25 }
 0xea9   : > { %v3711_v19 = vpop.f32.mrf.mxu0 }
 0xeaa   : > { %v3712_v20 = vadd.f32 %v4217_v18, %v3711_v19 }
 0xeab   : > { %v4472_v22 = vpop.f32.mrf.mxu0 }
 0xeac   : > { %v3717_v23 = vmax.f32 %v3712_v20, 0.0 }
 0xead   : > { %v3714_v26 = vpop.f32.mrf.mxu0 }
 0xeae   : > { %v3718_v27 = vpack.c.bf16 %v3717_v23, %v3717_v23 }
 0xeaf   : > { %v4473_v28 = vpop.f32.mrf.mxu0 }
 0xeb0   : > { %4483 = vmatmul.mubr.msk.bf16.vlgmr.msra.gmra.mxu1 %vm3758_vm8, %v3718_v27 }
 0xf70   : > { %v3796_v30 = vpop.f32.mrf.mxu1 }
 0xf71   : > { %v3797_v31 = vadd.f32 %v4221_v3, %v3796_v30 }
 0xf72   : > { %v4484_v32 = vpop.f32.mrf.mxu1 }
 0xf73   : > { %v3802_v33 = vadd.f32 %v3797_v31, %v3649_v21 }
 0xf74   : > { %v3799_v34 = vpop.f32.mrf.mxu1 }
 0xf75   : > { %v3805_v35 = vsel %vm1077_vm2, %v3802_v33, 0.0 }
 0xf76   : > { %3806 = vadd.xlane.f32.xlu0 %v3805_v35  ;;  %v4485_v37 = vpop.f32.mrf.mxu1 }
 0xfff   : > { %v3807_v38 = vpop.xlane.xlu0 %3806 }
0x1000   : > { %v3808_v39 = vmul.f32 0.03125, %v3807_v38 }
0x1002   : > { %v3809_v40 = vsub.f32 %v3802_v33, %v3808_v39 }
0x1004   : > { %v3810_v45 = vmul.f32 %v3809_v40, %v3809_v40 }
0x1006   : > { %v3811_v46 = vsel %vm1077_vm2, %v3810_v45, 0.0 }
0x1007   : > { %3812 = vadd.xlane.f32.xlu0 %v3811_v46 }
0x1090   : > { %v3813_v47 = vpop.xlane.xlu0 %3812 }
0x1091   : > { %v3814_v48 = vmul.f32 0.03125, %v3813_v47 }
0x1093   : > { %v3815_v49 = vadd.f32 1e-05, %v3814_v48 }
0x1095   : > { %4594 = vrsqrt.f32 %v3815_v49 }
0x10a2   : > { %v4595_v50 = vpop.eup %4594 }
0x10a3   : > { %v3817_v41 = vmul.f32 %v4595_v50, %v3809_v40 }
0x10a5   : > { %v3824_v43 = vmul.f32 %v4227_v42, %v3817_v41  ;;  %3836 = sbr.rel (%p4229_p8) target bundleno = 4269 (0x10ad), region = 116 }
0x10a7   : > { %v3831_v29 = vadd.f32 %v4228_v44, %v3824_v43 }
0x10a9   : > { %3832 = vst.msk [vmem:[#allocation2] sm:$0xff] %vm1077_vm2, %v3831_v29 }
0x10aa   : > { %v3837_v55 = vpack.c.bf16 %v3831_v29, %v3831_v29  ;;  %vm3838_vm9 = vcmask 257024  }
0x10ac   : > { %3839 = vst.msk [vmem:[%s1047_s19] sm:$0xf] %vm3838_vm9, %v3837_v55 }
0x10ad PF: > { %s5511_s11 = sld [smem:[#allocation6_spill]] }
0x10ae   : > { %s5512_s3 = sld [smem:[#allocation4_spill]] }
0x10af   : > { %s5513_s28 = sld [smem:[#allocation5_spill]] }
0x10b0   : > { %s5514_s29 = sld [smem:[#allocation7_spill]] }
0x10b1   : > { %s5515_s30 = sld [smem:[#allocation8_spill]] }
0x10b3   : > { %s32_s4 = sadd.s32 1, %s5511_s11  }
0x10b4   : > { %p29_p9 = scmp.ge.s32.totalorder %s32_s4, 6  }
0x10b6   :  { %31 = sbr.rel (!%p29_p9) target bundleno = 24 (0x18), region = 209 }

</bundles_post_ra>
